<compile_context>
chip_gen: v7x
topology: tpu7x:2x2x1
jax: 0.10.0
libtpu: 0.0.40
codegen_flags: <defaults>
</compile_context>

<pallas_src>
import functools

import jax
import jax.numpy as jnp
import numpy as np
from jax.experimental import pallas as pl
from jax.experimental.pallas import tpu as pltpu

_EPS = 1e-5          # nn.GroupNorm default
_NEG_INF = -1e30


def _rup(x, m=128):
    return ((x + m - 1) // m) * m


def _vmem_limit_bytes():
    """Generation-aware scoped-VMEM limit (v7x: 64 MiB physical, v5e/v6e: 128 MiB)."""
    try:
        kind = jax.devices()[0].device_kind.lower()
    except Exception:
        return None
    if "v7" in kind:
        return 56 * 1024 * 1024
    if "lite" in kind or "v5e" in kind or "v6" in kind:
        return 100 * 1024 * 1024
    return None


# --------------------------------------------------------------------------------------
# in-kernel helpers
# --------------------------------------------------------------------------------------
def _gn_relu(x, gamma, beta, n_real):
    """GroupNorm(1)+ReLU on a zero-padded f32 tile that fully contains the sample.

    Padded entries of `x` are exactly zero and padded gamma/beta are zero, so full-tile sums
    divided by the real element count reproduce the unpadded statistics exactly.  The GN
    epilogue is folded into one per-channel scale/shift (single FMA + relu).
    """
    inv = 1.0 / n_real
    rs = jnp.sum(x, axis=-1, keepdims=True)          # lane reduce first
    rss = jnp.sum(x * x, axis=-1, keepdims=True)
    mean = jnp.sum(rs) * inv
    var = jnp.maximum(jnp.sum(rss) * inv - mean * mean, 0.0)
    s = jax.lax.rsqrt(var + _EPS) * gamma            # (1, C)
    t = beta - mean * s
    return jnp.maximum(x * s + t, 0.0)


def _apply_gn_relu_bf16(z_ref, sc_ref, sh_ref):
    """relu(z*scale + shift) with pre-folded GN scale/shift; returns bf16 for the next MXU op."""
    a = z_ref[...].astype(jnp.float32) * sc_ref[...] + sh_ref[...]
    return jnp.maximum(a, 0.0).astype(jnp.bfloat16)


def _tile_stats(z, n_real, tile_n):
    """Masked (sum, sumsq) of an f32 (tile_n, C) tile.  Rows with global index >= n_real are
    N-padding and are dropped from the statistics (lane reduce first, mask the tiny vectors)."""
    row = (jax.lax.broadcasted_iota(jnp.int32, (tile_n, 1), 0)
           + pl.program_id(1) * tile_n)
    valid = (row < n_real).astype(jnp.float32)
    rs = jnp.sum(z, axis=-1, keepdims=True) * valid
    rss = jnp.sum(z * z, axis=-1, keepdims=True) * valid
    return jnp.sum(rs), jnp.sum(rss)


def _write_stats(st_ref, s, ss):
    """st_ref is a (16, 128) f32 tile: rows 0..7 hold sum, rows 8..15 hold sumsq (broadcast)."""
    st_ref[0:8, :] = jnp.broadcast_to(s, (8, 128))
    st_ref[8:16, :] = jnp.broadcast_to(ss, (8, 128))


# --------------------------------------------------------------------------------------
# kernels
# --------------------------------------------------------------------------------------
def _proxy_kernel(m_real, ck_real,
                  p_ref, wo1d_ref, go1_ref, bo1_ref, gd_ref, bd_ref,
                  wo2_ref, go2_ref, bo2_ref,
                  k2t_ref, v_ref):
    """f_object / f_down on the (small) proxy features -> pre-transposed K^T and V."""
    f32, bf16 = jnp.float32, jnp.bfloat16
    mp = p_ref.shape[0]
    ckp = wo2_ref.shape[0]
    cnt = m_real * ck_real

    # f_object[0] and f_down share the proxy LHS: one fused (Mp, 2*Ckp) matmul.
    kv = jnp.dot(p_ref[...], wo1d_ref[...], preferred_element_type=f32)
    k1 = _gn_relu(kv[:, :ckp], go1_ref[...], bo1_ref[...], cnt)
    v = _gn_relu(kv[:, ckp:], gd_ref[...], bd_ref[...], cnt)

    row = jax.lax.broadcasted_iota(jnp.int32, (mp, 1), 0)
    valid = row < m_real
    k1 = jnp.where(valid, k1, 0.0)     # keep the next GN's statistics exact
    v = jnp.where(valid, v, 0.0)       # padded objects contribute nothing to the context

    k2 = _gn_relu(jnp.dot(k1.astype(bf16), wo2_ref[...], preferred_element_type=f32),
                  go2_ref[...], bo2_ref[...], cnt)
    k2t_ref[...] = jnp.transpose(k2).astype(bf16)     # (Ckp, Mp): no relayout in stage C
    v_ref[...] = v.astype(bf16)


def _conv_stats_kernel(n_real, tile_n, x_ref, w_ref, z_ref, st_ref):
    """z = x @ W ; emit bf16 pre-activation + per-tile GN partial stats."""
    z = jnp.dot(x_ref[...], w_ref[...], preferred_element_type=jnp.float32)
    z_ref[...] = z.astype(z_ref.dtype)
    s, ss = _tile_stats(z, n_real, tile_n)
    _write_stats(st_ref, s, ss)


def _gn_conv_stats_kernel(n_real, tile_n, z_in_ref, sc_ref, sh_ref, w_ref, z_ref, st_ref):
    """z = relu(gn(z_in)) @ W ; emit bf16 pre-activation + per-tile GN partial stats."""
    a = _apply_gn_relu_bf16(z_in_ref, sc_ref, sh_ref)
    z = jnp.dot(a, w_ref[...], preferred_element_type=jnp.float32)
    z_ref[...] = z.astype(z_ref.dtype)
    s, ss = _tile_stats(z, n_real, tile_n)
    _write_stats(st_ref, s, ss)


def _attn_stats_kernel(n_real, m_real, tile_n,
                       z2_ref, sc_ref, sh_ref, k2t_ref, v_ref, wu_ref,
                       z3_ref, st_ref):
    """q = relu(gn(z2)); ctx = softmax(q K^T) V; z3 = ctx @ Wu ; + GN partial stats."""
    f32, bf16 = jnp.float32, jnp.bfloat16
    mp = v_ref.shape[0]

    q = _apply_gn_relu_bf16(z2_ref, sc_ref, sh_ref)               # key_channels**-0.5 folded in
    sim = jnp.dot(q, k2t_ref[...], preferred_element_type=f32)    # (tile_n, Mp)
    col = jax.lax.broadcasted_iota(jnp.int32, (1, mp), 1)
    sim = jnp.where(col < m_real, sim, _NEG_INF)                  # mask padded objects
    e = jnp.exp(sim - jnp.max(sim, axis=-1, keepdims=True))
    # single expression: sim/e/attn do not stay live together; approx reciprocal -> EUP slot
    attn = (e * pl.reciprocal(jnp.sum(e, axis=-1, keepdims=True), approx=True)).astype(bf16)
    ctx = jnp.dot(attn, v_ref[...], preferred_element_type=f32).astype(bf16)
    z3 = jnp.dot(ctx, wu_ref[...], preferred_element_type=f32)    # f_up 1x1 conv
    z3_ref[...] = z3.astype(z3_ref.dtype)
    s, ss = _tile_stats(z3, n_real, tile_n)
    _write_stats(st_ref, s, ss)


def _gn_fuse_stats_kernel(n_real, tile_n, z3_ref, sc_ref, sh_ref, x_ref,
                          wfc_ref, wfx_ref, z4_ref, st_ref):
    """z4 = relu(gn(z3)) @ Wf_ctx + x @ Wf_x (no concat tile); + GN partial stats."""
    cu = _apply_gn_relu_bf16(z3_ref, sc_ref, sh_ref)
    z = (jnp.dot(cu, wfc_ref[...], preferred_element_type=jnp.float32)
         + jnp.dot(x_ref[...], wfx_ref[...], preferred_element_type=jnp.float32))
    z4_ref[...] = z.astype(z4_ref.dtype)
    s, ss = _tile_stats(z, n_real, tile_n)
    _write_stats(st_ref, s, ss)


def _gn_out_kernel(z4_ref, sc_ref, sh_ref, out_ref):
    """out = relu(gn(z4)), emitted bf16 and lane-dense."""
    out_ref[...] = _apply_gn_relu_bf16(z4_ref, sc_ref, sh_ref)


# --------------------------------------------------------------------------------------
# parameter handling
# --------------------------------------------------------------------------------------
def init_params(key, in_channels, key_channels, out_channels):
    """Deterministic synthetic parameters (1x1 conv weights stored as (Cin, Cout))."""
    ks = jax.random.split(key, 7)

    def w(k, cin, cout):
        return jax.random.normal(k, (cin, cout), jnp.float32) * 0.1

    def gn(c):
        return jnp.ones((1, c), jnp.float32), jnp.zeros((1, c), jnp.float32)

    p = {}
    p["wp1"] = w(ks[0], in_channels, key_channels);   p["gp1"], p["bp1"] = gn(key_channels)
    p["wp2"] = w(ks[1], key_channels, key_channels);  p["gp2"], p["bp2"] = gn(key_channels)
    p["wo1"] = w(ks[2], in_channels, key_channels);   p["go1"], p["bo1"] = gn(key_channels)
    p["wo2"] = w(ks[3], key_channels, key_channels);  p["go2"], p["bo2"] = gn(key_channels)
    p["wd"] = w(ks[4], in_channels, key_channels);    p["gd"], p["bd"] = gn(key_channels)
    p["wu"] = w(ks[5], key_channels, in_channels);    p["gu"], p["bu"] = gn(in_channels)
    p["wf"] = w(ks[6], 2 * in_channels, out_channels); p["gf"], p["bf"] = gn(out_channels)
    return p


def _prepare_params(params, in_channels, key_channels, out_channels):
    """Pad to lane-dense (128-multiple) channel dims, cast weights to bf16, fuse/split."""
    cinp, ckp, coutp = _rup(in_channels), _rup(key_channels), _rup(out_channels)
    bf16, f32 = jnp.bfloat16, jnp.float32

    def pad_w(w, rows, cols):
        return jnp.pad(w, ((0, rows - w.shape[0]), (0, cols - w.shape[1]))).astype(bf16)

    def pad_row(v, cols):   # (1, C) -> (1, cols) f32, consumed in-kernel (proxy GNs)
        return jnp.pad(v, ((0, 0), (0, cols - v.shape[1]))).astype(f32)

    def pad_vec(v, cols):   # (1, C) -> (cols,) f32, consumed by the wrapper-side GN folds
        return jnp.pad(v.reshape(-1), (0, cols - v.shape[1])).astype(f32)

    scale = key_channels ** (-0.5)
    p = {}
    p["wp1"] = pad_w(params["wp1"], cinp, ckp)
    p["wp2"] = pad_w(params["wp2"], ckp, ckp)
    # fused f_object[0] | f_down weight: halves split at a 128-lane boundary
    p["wo1d"] = jnp.concatenate([pad_w(params["wo1"], cinp, ckp),
                                 pad_w(params["wd"], cinp, ckp)], axis=1)
    p["wo2"] = pad_w(params["wo2"], ckp, ckp)
    p["wu"] = pad_w(params["wu"], ckp, cinp)
    # final conv split: rows [0, Cin) act on the context, rows [Cin, 2*Cin) on feats
    p["wfc"] = pad_w(params["wf"][:in_channels], cinp, coutp)
    p["wfx"] = pad_w(params["wf"][in_channels:], cinp, coutp)
    # proxy-path GN affines (used in-kernel as (1, Ckp) rows)
    p["go1"], p["bo1"] = pad_row(params["go1"], ckp), pad_row(params["bo1"], ckp)
    p["gd"], p["bd"] = pad_row(params["gd"], ckp), pad_row(params["bd"], ckp)
    p["go2"], p["bo2"] = pad_row(params["go2"], ckp), pad_row(params["bo2"], ckp)
    # pixel/context/output GN affines (folded wrapper-side into per-batch scale/shift)
    p["gp1"], p["bp1"] = pad_vec(params["gp1"], ckp), pad_vec(params["bp1"], ckp)
    p["gp2"] = pad_vec(params["gp2"], ckp) * scale     # attention scale folded in (s > 0)
    p["bp2"] = pad_vec(params["bp2"], ckp) * scale
    p["gu"], p["bu"] = pad_vec(params["gu"], cinp), pad_vec(params["bu"], cinp)
    p["gf"], p["bf"] = pad_vec(params["gf"], coutp), pad_vec(params["bf"], coutp)
    return p


def _fold_gn(stats, nt, gamma, beta, count):
    """Reduce per-tile (sum, sumsq) partials and fold GroupNorm(1) + affine into a per-batch,
    per-channel (scale, shift) pair so the consuming kernel does y = relu(x*scale + shift)."""
    st = stats.reshape(stats.shape[0], nt, 16, 128)
    tot = jnp.sum(st[:, :, 0, 0], axis=1)                 # (B,)
    tot2 = jnp.sum(st[:, :, 8, 0], axis=1)
    mean = tot / count
    # TODO(synk): E[x^2]-mean^2 can cancel for large-mean activations; clamping keeps rsqrt
    # finite, but a shifted two-pass variance would be needed for exact PyTorch parity.
    var = jnp.maximum(tot2 / count - mean * mean, 0.0)
    inv = jax.lax.rsqrt(var + _EPS)
    scale = gamma[None, :] * inv[:, None]                 # (B, Cp)
    shift = beta[None, :] - mean[:, None] * scale
    return scale[:, None, :], shift[:, None, :]           # (B, 1, Cp) f32


# --------------------------------------------------------------------------------------
# forward
# --------------------------------------------------------------------------------------
def spatial_ocr_forward(feats, proxy, params, key_channels, out_channels, *, tile_n=1024):
    """feats, proxy in NCHW (like PyTorch).  Returns NCHW bf16 output."""
    assert tile_n % 16 == 0
    B, Cin, H, W = feats.shape
    _, _, Hp, Wp = proxy.shape
    N, M = H * W, Hp * Wp
    Cinp, Ckp, Coutp, Mp = _rup(Cin), _rup(key_channels), _rup(out_channels), _rup(M)
    tn = min(tile_n, _rup(N, 16))
    Np = _rup(N, tn)
    NT = Np // tn

    # channels-last, flattened, zero-padded (see header TODO about NHWC pipelines)
    x = jnp.transpose(feats, (0, 2, 3, 1)).reshape(B, N, Cin)
    x = jnp.pad(x, ((0, 0), (0, Np - N), (0, Cinp - Cin))).astype(jnp.bfloat16)
    pr = jnp.transpose(proxy, (0, 2, 3, 1)).reshape(B, M, Cin)
    pr = jnp.pad(pr, ((0, 0), (0, Mp - M), (0, Cinp - Cin))).astype(jnp.bfloat16)

    pp = _prepare_params(params, Cin, key_channels, out_channels)

    vlim = _vmem_limit_bytes()
    cp1 = pltpu.CompilerParams(dimension_semantics=("parallel",), vmem_limit_bytes=vlim)
    cp2 = pltpu.CompilerParams(dimension_semantics=("parallel", "parallel"),
                               vmem_limit_bytes=vlim)

    def const(arr):
        nd = arr.ndim
        return pl.BlockSpec(arr.shape, lambda *args, nd=nd: (0,) * nd)

    def rows(c):
        return pl.BlockSpec((None, tn, c), lambda b, n: (b, n, 0))

    def vec(c):
        return pl.BlockSpec((None, 1, c), lambda b, n: (b, 0, 0))

    stat_spec = pl.BlockSpec((None, 16, 128), lambda b, n: (b, n, 0))
    stat_shape = jax.ShapeDtypeStruct((B, NT * 16, 128), jnp.float32)

    def z_shape(c):
        return jax.ShapeDtypeStruct((B, Np, c), jnp.bfloat16)

    # ---- stage P: proxy path -> pre-transposed K^T and V (per batch) -----------------
    k2t, v = pl.pallas_call(
        functools.partial(_proxy_kernel, M, key_channels),
        grid=(B,),
        in_specs=[pl.BlockSpec((None, Mp, Cinp), lambda b: (b, 0, 0))]
                 + [const(pp[k]) for k in ("wo1d", "go1", "bo1", "gd", "bd",
                                           "wo2", "go2", "bo2")],
        out_specs=(pl.BlockSpec((None, Ckp, Mp), lambda b: (b, 0, 0)),
                   pl.BlockSpec((None, Mp, Ckp), lambda b: (b, 0, 0))),
        out_shape=(jax.ShapeDtypeStruct((B, Ckp, Mp), jnp.bfloat16),
                   jax.ShapeDtypeStruct((B, Mp, Ckp), jnp.bfloat16)),
        compiler_params=cp1,
    )(pr, pp["wo1d"], pp["go1"], pp["bo1"], pp["gd"], pp["bd"],
      pp["wo2"], pp["go2"], pp["bo2"])

    # ---- stage A: z1 = x @ Wp1 --------------------------------------------------------
    z1, st = pl.pallas_call(
        functools.partial(_conv_stats_kernel, N, tn),
        grid=(B, NT),
        in_specs=[rows(Cinp), const(pp["wp1"])],
        out_specs=(rows(Ckp), stat_spec),
        out_shape=(z_shape(Ckp), stat_shape),
        compiler_params=cp2,
    )(x, pp["wp1"])
    sc, sh = _fold_gn(st, NT, pp["gp1"], pp["bp1"], N * key_channels)

    # ---- stage B: z2 = relu(gn1(z1)) @ Wp2 ---------------------------------------------
    z2, st = pl.pallas_call(
        functools.partial(_gn_conv_stats_kernel, N, tn),
        grid=(B, NT),
        in_specs=[rows(Ckp), vec(Ckp), vec(Ckp), const(pp["wp2"])],
        out_specs=(rows(Ckp), stat_spec),
        out_shape=(z_shape(Ckp), stat_shape),
        compiler_params=cp2,
    )(z1, sc, sh, pp["wp2"])
    sc, sh = _fold_gn(st, NT, pp["gp2"], pp["bp2"], N * key_channels)

    # ---- stage C: attention + f_up conv ------------------------------------------------
    z3, st = pl.pallas_call(
        functools.partial(_attn_stats_kernel, N, M, tn),
        grid=(B, NT),
        in_specs=[rows(Ckp), vec(Ckp), vec(Ckp),
                  pl.BlockSpec((None, Ckp, Mp), lambda b, n: (b, 0, 0)),
                  pl.BlockSpec((None, Mp, Ckp), lambda b, n: (b, 0, 0)),
                  const(pp["wu"])],
        out_specs=(rows(Cinp), stat_spec),
        out_shape=(z_shape(Cinp), stat_shape),
        compiler_params=cp2,
    )(z2, sc, sh, k2t, v, pp["wu"])
    sc, sh = _fold_gn(st, NT, pp["gu"], pp["bu"], N * Cin)

    # ---- stage D: z4 = relu(gn_up(z3)) @ Wf_ctx + x @ Wf_x ------------------------------
    z4, st = pl.pallas_call(
        functools.partial(_gn_fuse_stats_kernel, N, tn),
        grid=(B, NT),
        in_specs=[rows(Cinp), vec(Cinp), vec(Cinp), rows(Cinp),
                  const(pp["wfc"]), const(pp["wfx"])],
        out_specs=(rows(Coutp), stat_spec),
        out_shape=(z_shape(Coutp), stat_shape),
        compiler_params=cp2,
    )(z3, sc, sh, x, pp["wfc"], pp["wfx"])
    sc, sh = _fold_gn(st, NT, pp["gf"], pp["bf"], N * out_channels)

    # ---- stage E: out = relu(gn_f(z4)), bf16 -------------------------------------------
    out = pl.pallas_call(
        _gn_out_kernel,
        grid=(B, NT),
        in_specs=[rows(Coutp), vec(Coutp), vec(Coutp)],
        out_specs=rows(Coutp),
        out_shape=z_shape(Coutp),
        compiler_params=cp2,
    )(z4, sc, sh)

    out = out[:, :N, :out_channels]                        # drop N / lane padding
    return jnp.transpose(out.reshape(B, H, W, out_channels), (0, 3, 1, 2))


# --------------------------------------------------------------------------------------
# pure-JAX reference (unpadded; mirrors the bf16-matmul / bf16-staging / f32-stats recipe)
# --------------------------------------------------------------------------------------
def reference_forward(feats, proxy, p, key_channels, out_channels):
    bf16, f32 = jnp.bfloat16, jnp.float32
    B, Cin, H, W = feats.shape
    _, _, Hp, Wp = proxy.shape
    scale = key_channels ** (-0.5)

    def mm(a, b):
        return jnp.dot(a.astype(bf16), b.astype(bf16), preferred_element_type=f32)

    def gn_relu(x, gamma, beta):
        mean = jnp.mean(x)
        var = jnp.maximum(jnp.mean(x * x) - mean * mean, 0.0)
        s = jax.lax.rsqrt(var + _EPS) * gamma
        return jnp.maximum(x * s + (beta - mean * s), 0.0)

    def stage(x):   # bf16 HBM staging of the kernel's intermediates
        return x.astype(bf16).astype(f32)

    x = jnp.transpose(feats, (0, 2, 3, 1)).reshape(B, H * W, Cin)
    pr = jnp.transpose(proxy, (0, 2, 3, 1)).reshape(B, Hp * Wp, Cin)
    outs = []
    for b in range(B):
        xb, pb = x[b], pr[b]
        q1 = gn_relu(stage(mm(xb, p["wp1"])), p["gp1"], p["bp1"])
        q = gn_relu(stage(mm(q1, p["wp2"])), p["gp2"] * scale, p["bp2"] * scale)
        k = gn_relu(mm(pb, p["wo1"]), p["go1"], p["bo1"])
        k = gn_relu(mm(k, p["wo2"]), p["go2"], p["bo2"])
        v = gn_relu(mm(pb, p["wd"]), p["gd"], p["bd"])
        sim = jnp.dot(q.astype(bf16), k.astype(bf16).T, preferred_element_type=f32)
        attn = jax.nn.softmax(sim, axis=-1)
        ctx = jnp.dot(attn.astype(bf16), v.astype(bf16), preferred_element_type=f32)
        cu = gn_relu(stage(mm(ctx, p["wu"])), p["gu"], p["bu"])
        z4 = stage(mm(cu, p["wf"][:Cin]) + mm(xb, p["wf"][Cin:]))
        outs.append(gn_relu(z4, p["gf"], p["bf"]))
    out = jnp.stack(outs, 0)
    return jnp.transpose(out.reshape(B, H, W, out_channels), (0, 3, 1, 2))


if __name__ == "__main__":
    B, Cin, Ck, Cout = 2, 32, 16, 32
    H = W = 14          # N = 196: exercises N padding and a ragged last tile with tile_n=128
    Hp, Wp = 8, 1       # M = 8 proxy / object-region features (padded to 128 lanes)

    key = jax.random.PRNGKey(0)
    k_feats, k_proxy, k_params = jax.random.split(key, 3)
    feats = jax.random.normal(k_feats, (B, Cin, H, W), jnp.float32)
    proxy = jax.random.normal(k_proxy, (B, Cin, Hp, Wp), jnp.float32)
    params = init_params(k_params, Cin, Ck, Cout)

    fwd = jax.jit(functools.partial(spatial_ocr_forward,
                                    key_channels=Ck, out_channels=Cout, tile_n=128))
    out = jax.block_until_ready(fwd(feats, proxy, params))
    assert out.shape == (B, Cout, H, W), out.shape

    ref = jax.block_until_ready(reference_forward(feats, proxy, params, Ck, Cout))
    # bf16 matmuls + bf16 HBM staging + approx softmax reciprocal -> compare at 2e-2
    np.testing.assert_allclose(np.asarray(out.astype(jnp.float32)), np.asarray(ref),
                               rtol=2e-2, atol=2e-2)
    print("KERNEL_OK")
</pallas_src>

<mosaic_0001>
module attributes {stable_mosaic.version = 11 : i64} {
  func.func @_gn_conv_stats_kernel(%arg0: i32, %arg1: i32, %arg2: memref<1x128x128xbf16, #tpu.memory_space<vmem>>, %arg3: memref<1x1x128xf32, #tpu.memory_space<vmem>>, %arg4: memref<1x1x128xf32, #tpu.memory_space<vmem>>, %arg5: memref<128x128xbf16, #tpu.memory_space<vmem>>, %arg6: memref<1x128x128xbf16, #tpu.memory_space<vmem>>, %arg7: memref<1x16x128xf32, #tpu.memory_space<vmem>>) attributes {dimension_semantics = [#tpu.dimension_semantics<parallel>, #tpu.dimension_semantics<parallel>], iteration_bounds = array<i64: 2, 2>, scalar_prefetch = 0 : i64, scratch_operands = 0 : i64, tpu.core_type = #tpu.core_type<tc>, window_params = [{transform_indices = @transform_0, window_bounds = array<i64: 1, 128, 128>}, {transform_indices = @transform_1, window_bounds = array<i64: 1, 1, 128>}, {transform_indices = @transform_2, window_bounds = array<i64: 1, 1, 128>}, {pipeline_mode = #tpu.pipeline_mode<synchronous>, transform_indices = @transform_3, window_bounds = array<i64: 128, 128>}, {transform_indices = @transform_4, window_bounds = array<i64: 1, 128, 128>}, {transform_indices = @transform_5, window_bounds = array<i64: 1, 16, 128>}]} {
    %c0 = arith.constant 0 : index
    %c0_0 = arith.constant 0 : index
    %c0_1 = arith.constant 0 : index
    %0 = vector.load %arg2[%c0, %c0_0, %c0_1] : memref<1x128x128xbf16, #tpu.memory_space<vmem>>, vector<1x128x128xbf16>
    %1 = vector.shape_cast %0 : vector<1x128x128xbf16> to vector<128x128xbf16>
    %2 = arith.extf %1 : vector<128x128xbf16> to vector<128x128xf32>
    %c0_2 = arith.constant 0 : index
    %c0_3 = arith.constant 0 : index
    %c0_4 = arith.constant 0 : index
    %3 = vector.load %arg3[%c0_2, %c0_3, %c0_4] : memref<1x1x128xf32, #tpu.memory_space<vmem>>, vector<1x1x128xf32>
    %4 = vector.shape_cast %3 : vector<1x1x128xf32> to vector<1x128xf32>
    %5 = vector.broadcast %4 : vector<1x128xf32> to vector<128x128xf32>
    %6 = arith.mulf %2, %5 : vector<128x128xf32>
    %c0_5 = arith.constant 0 : index
    %c0_6 = arith.constant 0 : index
    %c0_7 = arith.constant 0 : index
    %7 = vector.load %arg4[%c0_5, %c0_6, %c0_7] : memref<1x1x128xf32, #tpu.memory_space<vmem>>, vector<1x1x128xf32>
    %8 = vector.shape_cast %7 : vector<1x1x128xf32> to vector<1x128xf32>
    %9 = vector.broadcast %8 : vector<1x128xf32> to vector<128x128xf32>
    %10 = arith.addf %6, %9 : vector<128x128xf32>
    %cst = arith.constant 0.000000e+00 : f32
    %11 = vector.broadcast %cst : f32 to vector<128x128xf32>
    %12 = arith.maximumf %10, %11 : vector<128x128xf32>
    %13 = arith.truncf %12 : vector<128x128xf32> to vector<128x128xbf16>
    %c0_8 = arith.constant 0 : index
    %c0_9 = arith.constant 0 : index
    %14 = vector.load %arg5[%c0_8, %c0_9] : memref<128x128xbf16, #tpu.memory_space<vmem>>, vector<128x128xbf16>
    %cst_10 = arith.constant dense<0.000000e+00> : vector<128x128xf32>
    %15 = tpu.matmul %13, %14, %cst_10 {dimension_numbers = #tpu.dot_dimension_numbers<[1], [0], [0], [1], [0, 0, 1, 1], [], []>} : vector<128x128xbf16>, vector<128x128xbf16>, vector<128x128xf32> -> vector<128x128xf32>
    %16 = arith.truncf %15 : vector<128x128xf32> to vector<128x128xbf16>
    %c0_11 = arith.constant 0 : index
    %c0_12 = arith.constant 0 : index
    %c0_13 = arith.constant 0 : index
    %17 = vector.load %arg6[%c0_11, %c0_12, %c0_13] : memref<1x128x128xbf16, #tpu.memory_space<vmem>>, vector<1x128x128xbf16>
    %18 = vector.shape_cast %17 : vector<1x128x128xbf16> to vector<128x128xbf16>
    %19 = vector.shape_cast %16 : vector<128x128xbf16> to vector<1x128x128xbf16>
    tpu.vector_store %arg6[%c0_11, %c0_12, %c0_13], %19 {strides = array<i32>} : memref<1x128x128xbf16, #tpu.memory_space<vmem>>, vector<1x128x128xbf16>,
    %20 = tpu.iota {dimensions = array<i32: 0>} : vector<128x1xi32>
    %c128_i32 = arith.constant 128 : i32
    %21 = arith.muli %arg1, %c128_i32 : i32
    %22 = vector.broadcast %21 : i32 to vector<128x1xi32>
    %23 = arith.addi %20, %22 : vector<128x1xi32>
    %c196_i32 = arith.constant 196 : i32
    %24 = vector.broadcast %c196_i32 : i32 to vector<128x1xi32>
    %25 = arith.cmpi slt, %23, %24 : vector<128x1xi32>
    %26 = arith.extui %25 : vector<128x1xi1> to vector<128x1xi32>
    %27 = arith.sitofp %26 : vector<128x1xi32> to vector<128x1xf32>
    %cst_14 = arith.constant dense<0.000000e+00> : vector<128xf32>
    %28 = vector.multi_reduction <add>, %15, %cst_14 [1] : vector<128x128xf32> to vector<128xf32>
    %29 = vector.shape_cast %28 : vector<128xf32> to vector<128x1xf32>
    %30 = arith.mulf %29, %27 : vector<128x1xf32>
    %31 = arith.mulf %15, %15 : vector<128x128xf32>
    %cst_15 = arith.constant dense<0.000000e+00> : vector<128xf32>
    %32 = vector.multi_reduction <add>, %31, %cst_15 [1] : vector<128x128xf32> to vector<128xf32>
    %33 = vector.shape_cast %32 : vector<128xf32> to vector<128x1xf32>
    %34 = arith.mulf %33, %27 : vector<128x1xf32>
    %35 = vector.shape_cast %30 : vector<128x1xf32> to vector<1x128x1xf32>
    %cst_16 = arith.constant dense<0.000000e+00> : vector<1xf32>
    %36 = vector.multi_reduction <add>, %35, %cst_16 [1, 2] : vector<1x128x1xf32> to vector<1xf32>
    %37 = vector.shape_cast %36 : vector<1xf32> to vector<1x1x1xf32>
    %38 = vector.extract %37[0, 0, 0] : f32 from vector<1x1x1xf32>
    %39 = vector.shape_cast %34 : vector<128x1xf32> to vector<1x128x1xf32>
    %cst_17 = arith.constant dense<0.000000e+00> : vector<1xf32>
    %40 = vector.multi_reduction <add>, %39, %cst_17 [1, 2] : vector<1x128x1xf32> to vector<1xf32>
    %41 = vector.shape_cast %40 : vector<1xf32> to vector<1x1x1xf32>
    %42 = vector.extract %41[0, 0, 0] : f32 from vector<1x1x1xf32>
    %43 = vector.broadcast %38 : f32 to vector<8x128xf32>
    %c0_18 = arith.constant 0 : index
    %c0_19 = arith.constant 0 : index
    %c0_20 = arith.constant 0 : index
    %44 = vector.load %arg7[%c0_18, %c0_19, %c0_20] : memref<1x16x128xf32, #tpu.memory_space<vmem>>, vector<1x8x128xf32>
    %45 = vector.shape_cast %44 : vector<1x8x128xf32> to vector<8x128xf32>
    %46 = vector.shape_cast %43 : vector<8x128xf32> to vector<1x8x128xf32>
    tpu.vector_store %arg7[%c0_18, %c0_19, %c0_20], %46 {strides = array<i32>} : memref<1x16x128xf32, #tpu.memory_space<vmem>>, vector<1x8x128xf32>,
    %47 = vector.broadcast %42 : f32 to vector<8x128xf32>
    %c0_21 = arith.constant 0 : index
    %c8 = arith.constant 8 : index
    %c0_22 = arith.constant 0 : index
    %48 = vector.load %arg7[%c0_21, %c8, %c0_22] : memref<1x16x128xf32, #tpu.memory_space<vmem>>, vector<1x8x128xf32>
    %49 = vector.shape_cast %48 : vector<1x8x128xf32> to vector<8x128xf32>
    %50 = vector.shape_cast %47 : vector<8x128xf32> to vector<1x8x128xf32>
    tpu.vector_store %arg7[%c0_21, %c8, %c0_22], %50 {strides = array<i32>} : memref<1x16x128xf32, #tpu.memory_space<vmem>>, vector<1x8x128xf32>,
    return
  }
  func.func @transform_0(%arg0: i32, %arg1: i32) -> (i32, i32, i32) {
    %c0_i32 = arith.constant 0 : i32
    %c0_i32_0 = arith.constant 0 : i32
    return %arg0, %arg1, %c0_i32 : i32, i32, i32
  }
  func.func @transform_1(%arg0: i32, %arg1: i32) -> (i32, i32, i32) {
    %c0_i32 = arith.constant 0 : i32
    %c0_i32_0 = arith.constant 0 : i32
    %c0_i32_1 = arith.constant 0 : i32
    return %arg0, %c0_i32, %c0_i32_0 : i32, i32, i32
  }
  func.func @transform_2(%arg0: i32, %arg1: i32) -> (i32, i32, i32) {
    %c0_i32 = arith.constant 0 : i32
    %c0_i32_0 = arith.constant 0 : i32
    %c0_i32_1 = arith.constant 0 : i32
    return %arg0, %c0_i32, %c0_i32_0 : i32, i32, i32
  }
  func.func @transform_3(%arg0: i32, %arg1: i32) -> (i32, i32) {
    %c0_i32 = arith.constant 0 : i32
    %c0_i32_0 = arith.constant 0 : i32
    %c0_i32_1 = arith.constant 0 : i32
    return %c0_i32, %c0_i32_0 : i32, i32
  }
  func.func @transform_4(%arg0: i32, %arg1: i32) -> (i32, i32, i32) {
    %c0_i32 = arith.constant 0 : i32
    %c0_i32_0 = arith.constant 0 : i32
    return %arg0, %arg1, %c0_i32 : i32, i32, i32
  }
  func.func @transform_5(%arg0: i32, %arg1: i32) -> (i32, i32, i32) {
    %c0_i32 = arith.constant 0 : i32
    %c0_i32_0 = arith.constant 0 : i32
    return %arg0, %arg1, %c0_i32 : i32, i32, i32
  }
}

module attributes {stable_mosaic.version = 11 : i64} {
  func.func @_conv_stats_kernel(%arg0: i32, %arg1: i32, %arg2: memref<1x128x128xbf16, #tpu.memory_space<vmem>>, %arg3: memref<128x128xbf16, #tpu.memory_space<vmem>>, %arg4: memref<1x128x128xbf16, #tpu.memory_space<vmem>>, %arg5: memref<1x16x128xf32, #tpu.memory_space<vmem>>) attributes {dimension_semantics = [#tpu.dimension_semantics<parallel>, #tpu.dimension_semantics<parallel>], iteration_bounds = array<i64: 2, 2>, scalar_prefetch = 0 : i64, scratch_operands = 0 : i64, tpu.core_type = #tpu.core_type<tc>, window_params = [{transform_indices = @transform_0, window_bounds = array<i64: 1, 128, 128>}, {pipeline_mode = #tpu.pipeline_mode<synchronous>, transform_indices = @transform_1, window_bounds = array<i64: 128, 128>}, {transform_indices = @transform_2, window_bounds = array<i64: 1, 128, 128>}, {transform_indices = @transform_3, window_bounds = array<i64: 1, 16, 128>}]} {
    %c0 = arith.constant 0 : index
    %c0_0 = arith.constant 0 : index
    %c0_1 = arith.constant 0 : index
    %0 = vector.load %arg2[%c0, %c0_0, %c0_1] : memref<1x128x128xbf16, #tpu.memory_space<vmem>>, vector<1x128x128xbf16>
    %1 = vector.shape_cast %0 : vector<1x128x128xbf16> to vector<128x128xbf16>
    %c0_2 = arith.constant 0 : index
    %c0_3 = arith.constant 0 : index
    %2 = vector.load %arg3[%c0_2, %c0_3] : memref<128x128xbf16, #tpu.memory_space<vmem>>, vector<128x128xbf16>
    %cst = arith.constant dense<0.000000e+00> : vector<128x128xf32>
    %3 = tpu.matmul %1, %2, %cst {dimension_numbers = #tpu.dot_dimension_numbers<[1], [0], [0], [1], [0, 0, 1, 1], [], []>} : vector<128x128xbf16>, vector<128x128xbf16>, vector<128x128xf32> -> vector<128x128xf32>
    %4 = arith.truncf %3 : vector<128x128xf32> to vector<128x128xbf16>
    %c0_4 = arith.constant 0 : index
    %c0_5 = arith.constant 0 : index
    %c0_6 = arith.constant 0 : index
    %5 = vector.load %arg4[%c0_4, %c0_5, %c0_6] : memref<1x128x128xbf16, #tpu.memory_space<vmem>>, vector<1x128x128xbf16>
    %6 = vector.shape_cast %5 : vector<1x128x128xbf16> to vector<128x128xbf16>
    %7 = vector.shape_cast %4 : vector<128x128xbf16> to vector<1x128x128xbf16>
    tpu.vector_store %arg4[%c0_4, %c0_5, %c0_6], %7 {strides = array<i32>} : memref<1x128x128xbf16, #tpu.memory_space<vmem>>, vector<1x128x128xbf16>,
    %8 = tpu.iota {dimensions = array<i32: 0>} : vector<128x1xi32>
    %c128_i32 = arith.constant 128 : i32
    %9 = arith.muli %arg1, %c128_i32 : i32
    %10 = vector.broadcast %9 : i32 to vector<128x1xi32>
    %11 = arith.addi %8, %10 : vector<128x1xi32>
    %c196_i32 = arith.constant 196 : i32
    %12 = vector.broadcast %c196_i32 : i32 to vector<128x1xi32>
    %13 = arith.cmpi slt, %11, %12 : vector<128x1xi32>
    %14 = arith.extui %13 : vector<128x1xi1> to vector<128x1xi32>
    %15 = arith.sitofp %14 : vector<128x1xi32> to vector<128x1xf32>
    %cst_7 = arith.constant dense<0.000000e+00> : vector<128xf32>
    %16 = vector.multi_reduction <add>, %3, %cst_7 [1] : vector<128x128xf32> to vector<128xf32>
    %17 = vector.shape_cast %16 : vector<128xf32> to vector<128x1xf32>
    %18 = arith.mulf %17, %15 : vector<128x1xf32>
    %19 = arith.mulf %3, %3 : vector<128x128xf32>
    %cst_8 = arith.constant dense<0.000000e+00> : vector<128xf32>
    %20 = vector.multi_reduction <add>, %19, %cst_8 [1] : vector<128x128xf32> to vector<128xf32>
    %21 = vector.shape_cast %20 : vector<128xf32> to vector<128x1xf32>
    %22 = arith.mulf %21, %15 : vector<128x1xf32>
    %23 = vector.shape_cast %18 : vector<128x1xf32> to vector<1x128x1xf32>
    %cst_9 = arith.constant dense<0.000000e+00> : vector<1xf32>
    %24 = vector.multi_reduction <add>, %23, %cst_9 [1, 2] : vector<1x128x1xf32> to vector<1xf32>
    %25 = vector.shape_cast %24 : vector<1xf32> to vector<1x1x1xf32>
    %26 = vector.extract %25[0, 0, 0] : f32 from vector<1x1x1xf32>
    %27 = vector.shape_cast %22 : vector<128x1xf32> to vector<1x128x1xf32>
    %cst_10 = arith.constant dense<0.000000e+00> : vector<1xf32>
    %28 = vector.multi_reduction <add>, %27, %cst_10 [1, 2] : vector<1x128x1xf32> to vector<1xf32>
    %29 = vector.shape_cast %28 : vector<1xf32> to vector<1x1x1xf32>
    %30 = vector.extract %29[0, 0, 0] : f32 from vector<1x1x1xf32>
    %31 = vector.broadcast %26 : f32 to vector<8x128xf32>
    %c0_11 = arith.constant 0 : index
    %c0_12 = arith.constant 0 : index
    %c0_13 = arith.constant 0 : index
    %32 = vector.load %arg5[%c0_11, %c0_12, %c0_13] : memref<1x16x128xf32, #tpu.memory_space<vmem>>, vector<1x8x128xf32>
    %33 = vector.shape_cast %32 : vector<1x8x128xf32> to vector<8x128xf32>
    %34 = vector.shape_cast %31 : vector<8x128xf32> to vector<1x8x128xf32>
    tpu.vector_store %arg5[%c0_11, %c0_12, %c0_13], %34 {strides = array<i32>} : memref<1x16x128xf32, #tpu.memory_space<vmem>>, vector<1x8x128xf32>,
    %35 = vector.broadcast %30 : f32 to vector<8x128xf32>
    %c0_14 = arith.constant 0 : index
    %c8 = arith.constant 8 : index
    %c0_15 = arith.constant 0 : index
    %36 = vector.load %arg5[%c0_14, %c8, %c0_15] : memref<1x16x128xf32, #tpu.memory_space<vmem>>, vector<1x8x128xf32>
    %37 = vector.shape_cast %36 : vector<1x8x128xf32> to vector<8x128xf32>
    %38 = vector.shape_cast %35 : vector<8x128xf32> to vector<1x8x128xf32>
    tpu.vector_store %arg5[%c0_14, %c8, %c0_15], %38 {strides = array<i32>} : memref<1x16x128xf32, #tpu.memory_space<vmem>>, vector<1x8x128xf32>,
    return
  }
  func.func @transform_0(%arg0: i32, %arg1: i32) -> (i32, i32, i32) {
    %c0_i32 = arith.constant 0 : i32
    %c0_i32_0 = arith.constant 0 : i32
    return %arg0, %arg1, %c0_i32 : i32, i32, i32
  }
  func.func @transform_1(%arg0: i32, %arg1: i32) -> (i32, i32) {
    %c0_i32 = arith.constant 0 : i32
    %c0_i32_0 = arith.constant 0 : i32
    %c0_i32_1 = arith.constant 0 : i32
    return %c0_i32, %c0_i32_0 : i32, i32
  }
  func.func @transform_2(%arg0: i32, %arg1: i32) -> (i32, i32, i32) {
    %c0_i32 = arith.constant 0 : i32
    %c0_i32_0 = arith.constant 0 : i32
    return %arg0, %arg1, %c0_i32 : i32, i32, i32
  }
  func.func @transform_3(%arg0: i32, %arg1: i32) -> (i32, i32, i32) {
    %c0_i32 = arith.constant 0 : i32
    %c0_i32_0 = arith.constant 0 : i32
    return %arg0, %arg1, %c0_i32 : i32, i32, i32
  }
}

module attributes {stable_mosaic.version = 11 : i64} {
  func.func @_proxy_kernel(%arg0: i32, %arg1: memref<1x128x128xbf16, #tpu.memory_space<vmem>>, %arg2: memref<128x256xbf16, #tpu.memory_space<vmem>>, %arg3: memref<1x128xf32, #tpu.memory_space<vmem>>, %arg4: memref<1x128xf32, #tpu.memory_space<vmem>>, %arg5: memref<1x128xf32, #tpu.memory_space<vmem>>, %arg6: memref<1x128xf32, #tpu.memory_space<vmem>>, %arg7: memref<128x128xbf16, #tpu.memory_space<vmem>>, %arg8: memref<1x128xf32, #tpu.memory_space<vmem>>, %arg9: memref<1x128xf32, #tpu.memory_space<vmem>>, %arg10: memref<1x128x128xbf16, #tpu.memory_space<vmem>>, %arg11: memref<1x128x128xbf16, #tpu.memory_space<vmem>>) attributes {dimension_semantics = [#tpu.dimension_semantics<parallel>], iteration_bounds = array<i64: 2>, scalar_prefetch = 0 : i64, scratch_operands = 0 : i64, tpu.core_type = #tpu.core_type<tc>, window_params = [{transform_indices = @transform_0, window_bounds = array<i64: 1, 128, 128>}, {pipeline_mode = #tpu.pipeline_mode<synchronous>, transform_indices = @transform_1, window_bounds = array<i64: 128, 256>}, {pipeline_mode = #tpu.pipeline_mode<synchronous>, transform_indices = @transform_2, window_bounds = array<i64: 1, 128>}, {pipeline_mode = #tpu.pipeline_mode<synchronous>, transform_indices = @transform_3, window_bounds = array<i64: 1, 128>}, {pipeline_mode = #tpu.pipeline_mode<synchronous>, transform_indices = @transform_4, window_bounds = array<i64: 1, 128>}, {pipeline_mode = #tpu.pipeline_mode<synchronous>, transform_indices = @transform_5, window_bounds = array<i64: 1, 128>}, {pipeline_mode = #tpu.pipeline_mode<synchronous>, transform_indices = @transform_6, window_bounds = array<i64: 128, 128>}, {pipeline_mode = #tpu.pipeline_mode<synchronous>, transform_indices = @transform_7, window_bounds = array<i64: 1, 128>}, {pipeline_mode = #tpu.pipeline_mode<synchronous>, transform_indices = @transform_8, window_bounds = array<i64: 1, 128>}, {transform_indices = @transform_9, window_bounds = array<i64: 1, 128, 128>}, {transform_indices = @transform_10, window_bounds = array<i64: 1, 128, 128>}]} {
    %c0 = arith.constant 0 : index
    %c0_0 = arith.constant 0 : index
    %c0_1 = arith.constant 0 : index
    %0 = vector.load %arg1[%c0, %c0_0, %c0_1] : memref<1x128x128xbf16, #tpu.memory_space<vmem>>, vector<1x128x128xbf16>
    %1 = vector.shape_cast %0 : vector<1x128x128xbf16> to vector<128x128xbf16>
    %c0_2 = arith.constant 0 : index
    %c0_3 = arith.constant 0 : index
    %2 = vector.load %arg2[%c0_2, %c0_3] : memref<128x256xbf16, #tpu.memory_space<vmem>>, vector<128x256xbf16>
    %cst = arith.constant dense<0.000000e+00> : vector<128x256xf32>
    %3 = tpu.matmul %1, %2, %cst {dimension_numbers = #tpu.dot_dimension_numbers<[1], [0], [0], [1], [0, 0, 1, 1], [], []>} : vector<128x128xbf16>, vector<128x256xbf16>, vector<128x256xf32> -> vector<128x256xf32>
    %4 = vector.extract_strided_slice %3 {offsets = [0, 0], sizes = [128, 128], strides = [1, 1]} : vector<128x256xf32> to vector<128x128xf32>
    %c0_4 = arith.constant 0 : index
    %c0_5 = arith.constant 0 : index
    %5 = vector.load %arg3[%c0_4, %c0_5] : memref<1x128xf32, #tpu.memory_space<vmem>>, vector<1x128xf32>
    %c0_6 = arith.constant 0 : index
    %c0_7 = arith.constant 0 : index
    %6 = vector.load %arg4[%c0_6, %c0_7] : memref<1x128xf32, #tpu.memory_space<vmem>>, vector<1x128xf32>
    %cst_8 = arith.constant dense<0.000000e+00> : vector<128xf32>
    %7 = vector.multi_reduction <add>, %4, %cst_8 [1] : vector<128x128xf32> to vector<128xf32>
    %8 = vector.shape_cast %7 : vector<128xf32> to vector<128x1xf32>
    %9 = arith.mulf %4, %4 : vector<128x128xf32>
    %cst_9 = arith.constant dense<0.000000e+00> : vector<128xf32>
    %10 = vector.multi_reduction <add>, %9, %cst_9 [1] : vector<128x128xf32> to vector<128xf32>
    %11 = vector.shape_cast %10 : vector<128xf32> to vector<128x1xf32>
    %12 = vector.shape_cast %8 : vector<128x1xf32> to vector<1x128x1xf32>
    %cst_10 = arith.constant dense<0.000000e+00> : vector<1xf32>
    %13 = vector.multi_reduction <add>, %12, %cst_10 [1, 2] : vector<1x128x1xf32> to vector<1xf32>
    %14 = vector.shape_cast %13 : vector<1xf32> to vector<1x1x1xf32>
    %15 = vector.extract %14[0, 0, 0] : f32 from vector<1x1x1xf32>
    %cst_11 = arith.constant 7.812500e-03 : f32
    %16 = arith.mulf %15, %cst_11 : f32
    %17 = vector.shape_cast %11 : vector<128x1xf32> to vector<1x128x1xf32>
    %cst_12 = arith.constant dense<0.000000e+00> : vector<1xf32>
    %18 = vector.multi_reduction <add>, %17, %cst_12 [1, 2] : vector<1x128x1xf32> to vector<1xf32>
    %19 = vector.shape_cast %18 : vector<1xf32> to vector<1x1x1xf32>
    %20 = vector.extract %19[0, 0, 0] : f32 from vector<1x1x1xf32>
    %cst_13 = arith.constant 7.812500e-03 : f32
    %21 = arith.mulf %20, %cst_13 : f32
    %22 = arith.mulf %16, %16 : f32
    %23 = arith.subf %21, %22 : f32
    %cst_14 = arith.constant 0.000000e+00 : f32
    %24 = arith.maximumf %23, %cst_14 : f32
    %cst_15 = arith.constant 9.99999974E-6 : f32
    %25 = arith.addf %24, %cst_15 : f32
    %26 = math.rsqrt %25 : f32
    %27 = vector.broadcast %26 : f32 to vector<1x128xf32>
    %28 = arith.mulf %27, %5 : vector<1x128xf32>
    %29 = vector.broadcast %16 : f32 to vector<1x128xf32>
    %30 = arith.mulf %29, %28 : vector<1x128xf32>
    %31 = arith.subf %6, %30 : vector<1x128xf32>
    %32 = vector.broadcast %28 : vector<1x128xf32> to vector<128x128xf32>
    %33 = arith.mulf %4, %32 : vector<128x128xf32>
    %34 = vector.broadcast %31 : vector<1x128xf32> to vector<128x128xf32>
    %35 = arith.addf %33, %34 : vector<128x128xf32>
    %cst_16 = arith.constant 0.000000e+00 : f32
    %36 = vector.broadcast %cst_16 : f32 to vector<128x128xf32>
    %37 = arith.maximumf %35, %36 : vector<128x128xf32>
    %38 = vector.extract_strided_slice %3 {offsets = [0, 128], sizes = [128, 128], strides = [1, 1]} : vector<128x256xf32> to vector<128x128xf32>
    %c0_17 = arith.constant 0 : index
    %c0_18 = arith.constant 0 : index
    %39 = vector.load %arg5[%c0_17, %c0_18] : memref<1x128xf32, #tpu.memory_space<vmem>>, vector<1x128xf32>
    %c0_19 = arith.constant 0 : index
    %c0_20 = arith.constant 0 : index
    %40 = vector.load %arg6[%c0_19, %c0_20] : memref<1x128xf32, #tpu.memory_space<vmem>>, vector<1x128xf32>
    %cst_21 = arith.constant dense<0.000000e+00> : vector<128xf32>
    %41 = vector.multi_reduction <add>, %38, %cst_21 [1] : vector<128x128xf32> to vector<128xf32>
    %42 = vector.shape_cast %41 : vector<128xf32> to vector<128x1xf32>
    %43 = arith.mulf %38, %38 : vector<128x128xf32>
    %cst_22 = arith.constant dense<0.000000e+00> : vector<128xf32>
    %44 = vector.multi_reduction <add>, %43, %cst_22 [1] : vector<128x128xf32> to vector<128xf32>
    %45 = vector.shape_cast %44 : vector<128xf32> to vector<128x1xf32>
    %46 = vector.shape_cast %42 : vector<128x1xf32> to vector<1x128x1xf32>
    %cst_23 = arith.constant dense<0.000000e+00> : vector<1xf32>
    %47 = vector.multi_reduction <add>, %46, %cst_23 [1, 2] : vector<1x128x1xf32> to vector<1xf32>
    %48 = vector.shape_cast %47 : vector<1xf32> to vector<1x1x1xf32>
    %49 = vector.extract %48[0, 0, 0] : f32 from vector<1x1x1xf32>
    %cst_24 = arith.constant 7.812500e-03 : f32
    %50 = arith.mulf %49, %cst_24 : f32
    %51 = vector.shape_cast %45 : vector<128x1xf32> to vector<1x128x1xf32>
    %cst_25 = arith.constant dense<0.000000e+00> : vector<1xf32>
    %52 = vector.multi_reduction <add>, %51, %cst_25 [1, 2] : vector<1x128x1xf32> to vector<1xf32>
    %53 = vector.shape_cast %52 : vector<1xf32> to vector<1x1x1xf32>
    %54 = vector.extract %53[0, 0, 0] : f32 from vector<1x1x1xf32>
    %cst_26 = arith.constant 7.812500e-03 : f32
    %55 = arith.mulf %54, %cst_26 : f32
    %56 = arith.mulf %50, %50 : f32
    %57 = arith.subf %55, %56 : f32
    %cst_27 = arith.constant 0.000000e+00 : f32
    %58 = arith.maximumf %57, %cst_27 : f32
    %cst_28 = arith.constant 9.99999974E-6 : f32
    %59 = arith.addf %58, %cst_28 : f32
    %60 = math.rsqrt %59 : f32
    %61 = vector.broadcast %60 : f32 to vector<1x128xf32>
    %62 = arith.mulf %61, %39 : vector<1x128xf32>
    %63 = vector.broadcast %50 : f32 to vector<1x128xf32>
    %64 = arith.mulf %63, %62 : vector<1x128xf32>
    %65 = arith.subf %40, %64 : vector<1x128xf32>
    %66 = vector.broadcast %62 : vector<1x128xf32> to vector<128x128xf32>
    %67 = arith.mulf %38, %66 : vector<128x128xf32>
    %68 = vector.broadcast %65 : vector<1x128xf32> to vector<128x128xf32>
    %69 = arith.addf %67, %68 : vector<128x128xf32>
    %cst_29 = arith.constant 0.000000e+00 : f32
    %70 = vector.broadcast %cst_29 : f32 to vector<128x128xf32>
    %71 = arith.maximumf %69, %70 : vector<128x128xf32>
    %72 = tpu.iota {dimensions = array<i32: 0>} : vector<128x1xi32>
    %c8_i32 = arith.constant 8 : i32
    %73 = vector.broadcast %c8_i32 : i32 to vector<128x1xi32>
    %74 = arith.cmpi slt, %72, %73 : vector<128x1xi32>
    %cst_30 = arith.constant 0.000000e+00 : f32
    %75 = vector.shape_cast %74 : vector<128x1xi1> to vector<128x1xi1>
    %76 = vector.broadcast %75 : vector<128x1xi1> to vector<128x128xi1>
    %77 = vector.broadcast %cst_30 : f32 to vector<128x128xf32>
    %78 = arith.select %76, %37, %77 : vector<128x128xi1>, vector<128x128xf32>
    %cst_31 = arith.constant 0.000000e+00 : f32
    %79 = vector.shape_cast %74 : vector<128x1xi1> to vector<128x1xi1>
    %80 = vector.broadcast %79 : vector<128x1xi1> to vector<128x128xi1>
    %81 = vector.broadcast %cst_31 : f32 to vector<128x128xf32>
    %82 = arith.select %80, %71, %81 : vector<128x128xi1>, vector<128x128xf32>
    %83 = arith.truncf %78 : vector<128x128xf32> to vector<128x128xbf16>
    %c0_32 = arith.constant 0 : index
    %c0_33 = arith.constant 0 : index
    %84 = vector.load %arg7[%c0_32, %c0_33] : memref<128x128xbf16, #tpu.memory_space<vmem>>, vector<128x128xbf16>
    %cst_34 = arith.constant dense<0.000000e+00> : vector<128x128xf32>
    %85 = tpu.matmul %83, %84, %cst_34 {dimension_numbers = #tpu.dot_dimension_numbers<[1], [0], [0], [1], [0, 0, 1, 1], [], []>} : vector<128x128xbf16>, vector<128x128xbf16>, vector<128x128xf32> -> vector<128x128xf32>
    %c0_35 = arith.constant 0 : index
    %c0_36 = arith.constant 0 : index
    %86 = vector.load %arg8[%c0_35, %c0_36] : memref<1x128xf32, #tpu.memory_space<vmem>>, vector<1x128xf32>
    %c0_37 = arith.constant 0 : index
    %c0_38 = arith.constant 0 : index
    %87 = vector.load %arg9[%c0_37, %c0_38] : memref<1x128xf32, #tpu.memory_space<vmem>>, vector<1x128xf32>
    %cst_39 = arith.constant dense<0.000000e+00> : vector<128xf32>
    %88 = vector.multi_reduction <add>, %85, %cst_39 [1] : vector<128x128xf32> to vector<128xf32>
    %89 = vector.shape_cast %88 : vector<128xf32> to vector<128x1xf32>
    %90 = arith.mulf %85, %85 : vector<128x128xf32>
    %cst_40 = arith.constant dense<0.000000e+00> : vector<128xf32>
    %91 = vector.multi_reduction <add>, %90, %cst_40 [1] : vector<128x128xf32> to vector<128xf32>
    %92 = vector.shape_cast %91 : vector<128xf32> to vector<128x1xf32>
    %93 = vector.shape_cast %89 : vector<128x1xf32> to vector<1x128x1xf32>
    %cst_41 = arith.constant dense<0.000000e+00> : vector<1xf32>
    %94 = vector.multi_reduction <add>, %93, %cst_41 [1, 2] : vector<1x128x1xf32> to vector<1xf32>
    %95 = vector.shape_cast %94 : vector<1xf32> to vector<1x1x1xf32>
    %96 = vector.extract %95[0, 0, 0] : f32 from vector<1x1x1xf32>
    %cst_42 = arith.constant 7.812500e-03 : f32
    %97 = arith.mulf %96, %cst_42 : f32
    %98 = vector.shape_cast %92 : vector<128x1xf32> to vector<1x128x1xf32>
    %cst_43 = arith.constant dense<0.000000e+00> : vector<1xf32>
    %99 = vector.multi_reduction <add>, %98, %cst_43 [1, 2] : vector<1x128x1xf32> to vector<1xf32>
    %100 = vector.shape_cast %99 : vector<1xf32> to vector<1x1x1xf32>
    %101 = vector.extract %100[0, 0, 0] : f32 from vector<1x1x1xf32>
    %cst_44 = arith.constant 7.812500e-03 : f32
    %102 = arith.mulf %101, %cst_44 : f32
    %103 = arith.mulf %97, %97 : f32
    %104 = arith.subf %102, %103 : f32
    %cst_45 = arith.constant 0.000000e+00 : f32
    %105 = arith.maximumf %104, %cst_45 : f32
    %cst_46 = arith.constant 9.99999974E-6 : f32
    %106 = arith.addf %105, %cst_46 : f32
    %107 = math.rsqrt %106 : f32
    %108 = vector.broadcast %107 : f32 to vector<1x128xf32>
    %109 = arith.mulf %108, %86 : vector<1x128xf32>
    %110 = vector.broadcast %97 : f32 to vector<1x128xf32>
    %111 = arith.mulf %110, %109 : vector<1x128xf32>
    %112 = arith.subf %87, %111 : vector<1x128xf32>
    %113 = vector.broadcast %109 : vector<1x128xf32> to vector<128x128xf32>
    %114 = arith.mulf %85, %113 : vector<128x128xf32>
    %115 = vector.broadcast %112 : vector<1x128xf32> to vector<128x128xf32>
    %116 = arith.addf %114, %115 : vector<128x128xf32>
    %cst_47 = arith.constant 0.000000e+00 : f32
    %117 = vector.broadcast %cst_47 : f32 to vector<128x128xf32>
    %118 = arith.maximumf %116, %117 : vector<128x128xf32>
    %119 = tpu.transpose %118, [1, 0] : vector<128x128xf32> -> vector<128x128xf32>
    %120 = arith.truncf %119 : vector<128x128xf32> to vector<128x128xbf16>
    %c0_48 = arith.constant 0 : index
    %c0_49 = arith.constant 0 : index
    %c0_50 = arith.constant 0 : index
    %121 = vector.load %arg10[%c0_48, %c0_49, %c0_50] : memref<1x128x128xbf16, #tpu.memory_space<vmem>>, vector<1x128x128xbf16>
    %122 = vector.shape_cast %121 : vector<1x128x128xbf16> to vector<128x128xbf16>
    %123 = vector.shape_cast %120 : vector<128x128xbf16> to vector<1x128x128xbf16>
    tpu.vector_store %arg10[%c0_48, %c0_49, %c0_50], %123 {strides = array<i32>} : memref<1x128x128xbf16, #tpu.memory_space<vmem>>, vector<1x128x128xbf16>,
    %124 = arith.truncf %82 : vector<128x128xf32> to vector<128x128xbf16>
    %c0_51 = arith.constant 0 : index
    %c0_52 = arith.constant 0 : index
    %c0_53 = arith.constant 0 : index
    %125 = vector.load %arg11[%c0_51, %c0_52, %c0_53] : memref<1x128x128xbf16, #tpu.memory_space<vmem>>, vector<1x128x128xbf16>
    %126 = vector.shape_cast %125 : vector<1x128x128xbf16> to vector<128x128xbf16>
    %127 = vector.shape_cast %124 : vector<128x128xbf16> to vector<1x128x128xbf16>
    tpu.vector_store %arg11[%c0_51, %c0_52, %c0_53], %127 {strides = array<i32>} : memref<1x128x128xbf16, #tpu.memory_space<vmem>>, vector<1x128x128xbf16>,
    return
  }
  func.func @transform_0(%arg0: i32) -> (i32, i32, i32) {
    %c0_i32 = arith.constant 0 : i32
    %c0_i32_0 = arith.constant 0 : i32
    %c0_i32_1 = arith.constant 0 : i32
    return %arg0, %c0_i32, %c0_i32_0 : i32, i32, i32
  }
  func.func @transform_1(%arg0: i32) -> (i32, i32) {
    %c0_i32 = arith.constant 0 : i32
    %c0_i32_0 = arith.constant 0 : i32
    %c0_i32_1 = arith.constant 0 : i32
    return %c0_i32, %c0_i32_0 : i32, i32
  }
  func.func @transform_2(%arg0: i32) -> (i32, i32) {
    %c0_i32 = arith.constant 0 : i32
    %c0_i32_0 = arith.constant 0 : i32
    %c0_i32_1 = arith.constant 0 : i32
    return %c0_i32, %c0_i32_0 : i32, i32
  }
  func.func @transform_3(%arg0: i32) -> (i32, i32) {
    %c0_i32 = arith.constant 0 : i32
    %c0_i32_0 = arith.constant 0 : i32
    %c0_i32_1 = arith.constant 0 : i32
    return %c0_i32, %c0_i32_0 : i32, i32
  }
  func.func @transform_4(%arg0: i32) -> (i32, i32) {
    %c0_i32 = arith.constant 0 : i32
    %c0_i32_0 = arith.constant 0 : i32
    %c0_i32_1 = arith.constant 0 : i32
    return %c0_i32, %c0_i32_0 : i32, i32
  }
  func.func @transform_5(%arg0: i32) -> (i32, i32) {
    %c0_i32 = arith.constant 0 : i32
    %c0_i32_0 = arith.constant 0 : i32
    %c0_i32_1 = arith.constant 0 : i32
    return %c0_i32, %c0_i32_0 : i32, i32
  }
  func.func @transform_6(%arg0: i32) -> (i32, i32) {
    %c0_i32 = arith.constant 0 : i32
    %c0_i32_0 = arith.constant 0 : i32
    %c0_i32_1 = arith.constant 0 : i32
    return %c0_i32, %c0_i32_0 : i32, i32
  }
  func.func @transform_7(%arg0: i32) -> (i32, i32) {
    %c0_i32 = arith.constant 0 : i32
    %c0_i32_0 = arith.constant 0 : i32
    %c0_i32_1 = arith.constant 0 : i32
    return %c0_i32, %c0_i32_0 : i32, i32
  }
  func.func @transform_8(%arg0: i32) -> (i32, i32) {
    %c0_i32 = arith.constant 0 : i32
    %c0_i32_0 = arith.constant 0 : i32
    %c0_i32_1 = arith.constant 0 : i32
    return %c0_i32, %c0_i32_0 : i32, i32
  }
  func.func @transform_9(%arg0: i32) -> (i32, i32, i32) {
    %c0_i32 = arith.constant 0 : i32
    %c0_i32_0 = arith.constant 0 : i32
    %c0_i32_1 = arith.constant 0 : i32
    return %arg0, %c0_i32, %c0_i32_0 : i32, i32, i32
  }
  func.func @transform_10(%arg0: i32) -> (i32, i32, i32) {
    %c0_i32 = arith.constant 0 : i32
    %c0_i32_0 = arith.constant 0 : i32
    %c0_i32_1 = arith.constant 0 : i32
    return %arg0, %c0_i32, %c0_i32_0 : i32, i32, i32
  }
}

module attributes {stable_mosaic.version = 11 : i64} {
  func.func @_attn_stats_kernel(%arg0: i32, %arg1: i32, %arg2: memref<1x128x128xbf16, #tpu.memory_space<vmem>>, %arg3: memref<1x1x128xf32, #tpu.memory_space<vmem>>, %arg4: memref<1x1x128xf32, #tpu.memory_space<vmem>>, %arg5: memref<1x128x128xbf16, #tpu.memory_space<vmem>>, %arg6: memref<1x128x128xbf16, #tpu.memory_space<vmem>>, %arg7: memref<128x128xbf16, #tpu.memory_space<vmem>>, %arg8: memref<1x128x128xbf16, #tpu.memory_space<vmem>>, %arg9: memref<1x16x128xf32, #tpu.memory_space<vmem>>) attributes {dimension_semantics = [#tpu.dimension_semantics<parallel>, #tpu.dimension_semantics<parallel>], iteration_bounds = array<i64: 2, 2>, scalar_prefetch = 0 : i64, scratch_operands = 0 : i64, tpu.core_type = #tpu.core_type<tc>, window_params = [{transform_indices = @transform_0, window_bounds = array<i64: 1, 128, 128>}, {transform_indices = @transform_1, window_bounds = array<i64: 1, 1, 128>}, {transform_indices = @transform_2, window_bounds = array<i64: 1, 1, 128>}, {transform_indices = @transform_3, window_bounds = array<i64: 1, 128, 128>}, {transform_indices = @transform_4, window_bounds = array<i64: 1, 128, 128>}, {pipeline_mode = #tpu.pipeline_mode<synchronous>, transform_indices = @transform_5, window_bounds = array<i64: 128, 128>}, {transform_indices = @transform_6, window_bounds = array<i64: 1, 128, 128>}, {transform_indices = @transform_7, window_bounds = array<i64: 1, 16, 128>}]} {
    %c0 = arith.constant 0 : index
    %c0_0 = arith.constant 0 : index
    %c0_1 = arith.constant 0 : index
    %0 = vector.load %arg2[%c0, %c0_0, %c0_1] : memref<1x128x128xbf16, #tpu.memory_space<vmem>>, vector<1x128x128xbf16>
    %1 = vector.shape_cast %0 : vector<1x128x128xbf16> to vector<128x128xbf16>
    %2 = arith.extf %1 : vector<128x128xbf16> to vector<128x128xf32>
    %c0_2 = arith.constant 0 : index
    %c0_3 = arith.constant 0 : index
    %c0_4 = arith.constant 0 : index
    %3 = vector.load %arg3[%c0_2, %c0_3, %c0_4] : memref<1x1x128xf32, #tpu.memory_space<vmem>>, vector<1x1x128xf32>
    %4 = vector.shape_cast %3 : vector<1x1x128xf32> to vector<1x128xf32>
    %5 = vector.broadcast %4 : vector<1x128xf32> to vector<128x128xf32>
    %6 = arith.mulf %2, %5 : vector<128x128xf32>
    %c0_5 = arith.constant 0 : index
    %c0_6 = arith.constant 0 : index
    %c0_7 = arith.constant 0 : index
    %7 = vector.load %arg4[%c0_5, %c0_6, %c0_7] : memref<1x1x128xf32, #tpu.memory_space<vmem>>, vector<1x1x128xf32>
    %8 = vector.shape_cast %7 : vector<1x1x128xf32> to vector<1x128xf32>
    %9 = vector.broadcast %8 : vector<1x128xf32> to vector<128x128xf32>
    %10 = arith.addf %6, %9 : vector<128x128xf32>
    %cst = arith.constant 0.000000e+00 : f32
    %11 = vector.broadcast %cst : f32 to vector<128x128xf32>
    %12 = arith.maximumf %10, %11 : vector<128x128xf32>
    %13 = arith.truncf %12 : vector<128x128xf32> to vector<128x128xbf16>
    %c0_8 = arith.constant 0 : index
    %c0_9 = arith.constant 0 : index
    %c0_10 = arith.constant 0 : index
    %14 = vector.load %arg5[%c0_8, %c0_9, %c0_10] : memref<1x128x128xbf16, #tpu.memory_space<vmem>>, vector<1x128x128xbf16>
    %15 = vector.shape_cast %14 : vector<1x128x128xbf16> to vector<128x128xbf16>
    %cst_11 = arith.constant dense<0.000000e+00> : vector<128x128xf32>
    %16 = tpu.matmul %13, %15, %cst_11 {dimension_numbers = #tpu.dot_dimension_numbers<[1], [0], [0], [1], [0, 0, 1, 1], [], []>} : vector<128x128xbf16>, vector<128x128xbf16>, vector<128x128xf32> -> vector<128x128xf32>
    %17 = tpu.iota {dimensions = array<i32: 1>} : vector<1x128xi32>
    %c8_i32 = arith.constant 8 : i32
    %18 = vector.broadcast %c8_i32 : i32 to vector<1x128xi32>
    %19 = arith.cmpi slt, %17, %18 : vector<1x128xi32>
    %cst_12 = arith.constant -1.000000e+30 : f32
    %20 = vector.shape_cast %19 : vector<1x128xi1> to vector<1x128xi1>
    %21 = vector.broadcast %20 : vector<1x128xi1> to vector<128x128xi1>
    %22 = vector.broadcast %cst_12 : f32 to vector<128x128xf32>
    %23 = arith.select %21, %16, %22 : vector<128x128xi1>, vector<128x128xf32>
    %cst_13 = arith.constant dense<0xFF800000> : vector<128xf32>
    %24 = vector.multi_reduction <maximumf>, %23, %cst_13 [1] : vector<128x128xf32> to vector<128xf32>
    %25 = vector.shape_cast %24 : vector<128xf32> to vector<128x1xf32>
    %26 = vector.broadcast %25 : vector<128x1xf32> to vector<128x128xf32>
    %27 = arith.subf %23, %26 : vector<128x128xf32>
    %28 = math.exp %27 : vector<128x128xf32>
    %cst_14 = arith.constant dense<0.000000e+00> : vector<128xf32>
    %29 = vector.multi_reduction <add>, %28, %cst_14 [1] : vector<128x128xf32> to vector<128xf32>
    %30 = vector.shape_cast %29 : vector<128xf32> to vector<128x1xf32>
    %31 = tpu.reciprocal %30 {approx = true} : vector<128x1xf32> -> vector<128x1xf32>
    %32 = vector.broadcast %31 : vector<128x1xf32> to vector<128x128xf32>
    %33 = arith.mulf %28, %32 : vector<128x128xf32>
    %34 = arith.truncf %33 : vector<128x128xf32> to vector<128x128xbf16>
    %c0_15 = arith.constant 0 : index
    %c0_16 = arith.constant 0 : index
    %c0_17 = arith.constant 0 : index
    %35 = vector.load %arg6[%c0_15, %c0_16, %c0_17] : memref<1x128x128xbf16, #tpu.memory_space<vmem>>, vector<1x128x128xbf16>
    %36 = vector.shape_cast %35 : vector<1x128x128xbf16> to vector<128x128xbf16>
    %cst_18 = arith.constant dense<0.000000e+00> : vector<128x128xf32>
    %37 = tpu.matmul %34, %36, %cst_18 {dimension_numbers = #tpu.dot_dimension_numbers<[1], [0], [0], [1], [0, 0, 1, 1], [], []>} : vector<128x128xbf16>, vector<128x128xbf16>, vector<128x128xf32> -> vector<128x128xf32>
    %38 = arith.truncf %37 : vector<128x128xf32> to vector<128x128xbf16>
    %c0_19 = arith.constant 0 : index
    %c0_20 = arith.constant 0 : index
    %39 = vector.load %arg7[%c0_19, %c0_20] : memref<128x128xbf16, #tpu.memory_space<vmem>>, vector<128x128xbf16>
    %cst_21 = arith.constant dense<0.000000e+00> : vector<128x128xf32>
    %40 = tpu.matmul %38, %39, %cst_21 {dimension_numbers = #tpu.dot_dimension_numbers<[1], [0], [0], [1], [0, 0, 1, 1], [], []>} : vector<128x128xbf16>, vector<128x128xbf16>, vector<128x128xf32> -> vector<128x128xf32>
    %41 = arith.truncf %40 : vector<128x128xf32> to vector<128x128xbf16>
    %c0_22 = arith.constant 0 : index
    %c0_23 = arith.constant 0 : index
    %c0_24 = arith.constant 0 : index
    %42 = vector.load %arg8[%c0_22, %c0_23, %c0_24] : memref<1x128x128xbf16, #tpu.memory_space<vmem>>, vector<1x128x128xbf16>
    %43 = vector.shape_cast %42 : vector<1x128x128xbf16> to vector<128x128xbf16>
    %44 = vector.shape_cast %41 : vector<128x128xbf16> to vector<1x128x128xbf16>
    tpu.vector_store %arg8[%c0_22, %c0_23, %c0_24], %44 {strides = array<i32>} : memref<1x128x128xbf16, #tpu.memory_space<vmem>>, vector<1x128x128xbf16>,
    %45 = tpu.iota {dimensions = array<i32: 0>} : vector<128x1xi32>
    %c128_i32 = arith.constant 128 : i32
    %46 = arith.muli %arg1, %c128_i32 : i32
    %47 = vector.broadcast %46 : i32 to vector<128x1xi32>
    %48 = arith.addi %45, %47 : vector<128x1xi32>
    %c196_i32 = arith.constant 196 : i32
    %49 = vector.broadcast %c196_i32 : i32 to vector<128x1xi32>
    %50 = arith.cmpi slt, %48, %49 : vector<128x1xi32>
    %51 = arith.extui %50 : vector<128x1xi1> to vector<128x1xi32>
    %52 = arith.sitofp %51 : vector<128x1xi32> to vector<128x1xf32>
    %cst_25 = arith.constant dense<0.000000e+00> : vector<128xf32>
    %53 = vector.multi_reduction <add>, %40, %cst_25 [1] : vector<128x128xf32> to vector<128xf32>
    %54 = vector.shape_cast %53 : vector<128xf32> to vector<128x1xf32>
    %55 = arith.mulf %54, %52 : vector<128x1xf32>
    %56 = arith.mulf %40, %40 : vector<128x128xf32>
    %cst_26 = arith.constant dense<0.000000e+00> : vector<128xf32>
    %57 = vector.multi_reduction <add>, %56, %cst_26 [1] : vector<128x128xf32> to vector<128xf32>
    %58 = vector.shape_cast %57 : vector<128xf32> to vector<128x1xf32>
    %59 = arith.mulf %58, %52 : vector<128x1xf32>
    %60 = vector.shape_cast %55 : vector<128x1xf32> to vector<1x128x1xf32>
    %cst_27 = arith.constant dense<0.000000e+00> : vector<1xf32>
    %61 = vector.multi_reduction <add>, %60, %cst_27 [1, 2] : vector<1x128x1xf32> to vector<1xf32>
    %62 = vector.shape_cast %61 : vector<1xf32> to vector<1x1x1xf32>
    %63 = vector.extract %62[0, 0, 0] : f32 from vector<1x1x1xf32>
    %64 = vector.shape_cast %59 : vector<128x1xf32> to vector<1x128x1xf32>
    %cst_28 = arith.constant dense<0.000000e+00> : vector<1xf32>
    %65 = vector.multi_reduction <add>, %64, %cst_28 [1, 2] : vector<1x128x1xf32> to vector<1xf32>
    %66 = vector.shape_cast %65 : vector<1xf32> to vector<1x1x1xf32>
    %67 = vector.extract %66[0, 0, 0] : f32 from vector<1x1x1xf32>
    %68 = vector.broadcast %63 : f32 to vector<8x128xf32>
    %c0_29 = arith.constant 0 : index
    %c0_30 = arith.constant 0 : index
    %c0_31 = arith.constant 0 : index
    %69 = vector.load %arg9[%c0_29, %c0_30, %c0_31] : memref<1x16x128xf32, #tpu.memory_space<vmem>>, vector<1x8x128xf32>
    %70 = vector.shape_cast %69 : vector<1x8x128xf32> to vector<8x128xf32>
    %71 = vector.shape_cast %68 : vector<8x128xf32> to vector<1x8x128xf32>
    tpu.vector_store %arg9[%c0_29, %c0_30, %c0_31], %71 {strides = array<i32>} : memref<1x16x128xf32, #tpu.memory_space<vmem>>, vector<1x8x128xf32>,
    %72 = vector.broadcast %67 : f32 to vector<8x128xf32>
    %c0_32 = arith.constant 0 : index
    %c8 = arith.constant 8 : index
    %c0_33 = arith.constant 0 : index
    %73 = vector.load %arg9[%c0_32, %c8, %c0_33] : memref<1x16x128xf32, #tpu.memory_space<vmem>>, vector<1x8x128xf32>
    %74 = vector.shape_cast %73 : vector<1x8x128xf32> to vector<8x128xf32>
    %75 = vector.shape_cast %72 : vector<8x128xf32> to vector<1x8x128xf32>
    tpu.vector_store %arg9[%c0_32, %c8, %c0_33], %75 {strides = array<i32>} : memref<1x16x128xf32, #tpu.memory_space<vmem>>, vector<1x8x128xf32>,
    return
  }
  func.func @transform_0(%arg0: i32, %arg1: i32) -> (i32, i32, i32) {
    %c0_i32 = arith.constant 0 : i32
    %c0_i32_0 = arith.constant 0 : i32
    return %arg0, %arg1, %c0_i32 : i32, i32, i32
  }
  func.func @transform_1(%arg0: i32, %arg1: i32) -> (i32, i32, i32) {
    %c0_i32 = arith.constant 0 : i32
    %c0_i32_0 = arith.constant 0 : i32
    %c0_i32_1 = arith.constant 0 : i32
    return %arg0, %c0_i32, %c0_i32_0 : i32, i32, i32
  }
  func.func @transform_2(%arg0: i32, %arg1: i32) -> (i32, i32, i32) {
    %c0_i32 = arith.constant 0 : i32
    %c0_i32_0 = arith.constant 0 : i32
    %c0_i32_1 = arith.constant 0 : i32
    return %arg0, %c0_i32, %c0_i32_0 : i32, i32, i32
  }
  func.func @transform_3(%arg0: i32, %arg1: i32) -> (i32, i32, i32) {
    %c0_i32 = arith.constant 0 : i32
    %c0_i32_0 = arith.constant 0 : i32
    %c0_i32_1 = arith.constant 0 : i32
    return %arg0, %c0_i32, %c0_i32_0 : i32, i32, i32
  }
  func.func @transform_4(%arg0: i32, %arg1: i32) -> (i32, i32, i32) {
    %c0_i32 = arith.constant 0 : i32
    %c0_i32_0 = arith.constant 0 : i32
    %c0_i32_1 = arith.constant 0 : i32
    return %arg0, %c0_i32, %c0_i32_0 : i32, i32, i32
  }
  func.func @transform_5(%arg0: i32, %arg1: i32) -> (i32, i32) {
    %c0_i32 = arith.constant 0 : i32
    %c0_i32_0 = arith.constant 0 : i32
    %c0_i32_1 = arith.constant 0 : i32
    return %c0_i32, %c0_i32_0 : i32, i32
  }
  func.func @transform_6(%arg0: i32, %arg1: i32) -> (i32, i32, i32) {
    %c0_i32 = arith.constant 0 : i32
    %c0_i32_0 = arith.constant 0 : i32
    return %arg0, %arg1, %c0_i32 : i32, i32, i32
  }
  func.func @transform_7(%arg0: i32, %arg1: i32) -> (i32, i32, i32) {
    %c0_i32 = arith.constant 0 : i32
    %c0_i32_0 = arith.constant 0 : i32
    return %arg0, %arg1, %c0_i32 : i32, i32, i32
  }
}

module attributes {stable_mosaic.version = 11 : i64} {
  func.func @_gn_out_kernel(%arg0: i32, %arg1: i32, %arg2: memref<1x128x128xbf16, #tpu.memory_space<vmem>>, %arg3: memref<1x1x128xf32, #tpu.memory_space<vmem>>, %arg4: memref<1x1x128xf32, #tpu.memory_space<vmem>>, %arg5: memref<1x128x128xbf16, #tpu.memory_space<vmem>>) attributes {dimension_semantics = [#tpu.dimension_semantics<parallel>, #tpu.dimension_semantics<parallel>], iteration_bounds = array<i64: 2, 2>, scalar_prefetch = 0 : i64, scratch_operands = 0 : i64, tpu.core_type = #tpu.core_type<tc>, window_params = [{transform_indices = @transform_0, window_bounds = array<i64: 1, 128, 128>}, {transform_indices = @transform_1, window_bounds = array<i64: 1, 1, 128>}, {transform_indices = @transform_2, window_bounds = array<i64: 1, 1, 128>}, {transform_indices = @transform_3, window_bounds = array<i64: 1, 128, 128>}]} {
    %c0 = arith.constant 0 : index
    %c0_0 = arith.constant 0 : index
    %c0_1 = arith.constant 0 : index
    %0 = vector.load %arg2[%c0, %c0_0, %c0_1] : memref<1x128x128xbf16, #tpu.memory_space<vmem>>, vector<1x128x128xbf16>
    %1 = vector.shape_cast %0 : vector<1x128x128xbf16> to vector<128x128xbf16>
    %2 = arith.extf %1 : vector<128x128xbf16> to vector<128x128xf32>
    %c0_2 = arith.constant 0 : index
    %c0_3 = arith.constant 0 : index
    %c0_4 = arith.constant 0 : index
    %3 = vector.load %arg3[%c0_2, %c0_3, %c0_4] : memref<1x1x128xf32, #tpu.memory_space<vmem>>, vector<1x1x128xf32>
    %4 = vector.shape_cast %3 : vector<1x1x128xf32> to vector<1x128xf32>
    %5 = vector.broadcast %4 : vector<1x128xf32> to vector<128x128xf32>
    %6 = arith.mulf %2, %5 : vector<128x128xf32>
    %c0_5 = arith.constant 0 : index
    %c0_6 = arith.constant 0 : index
    %c0_7 = arith.constant 0 : index
    %7 = vector.load %arg4[%c0_5, %c0_6, %c0_7] : memref<1x1x128xf32, #tpu.memory_space<vmem>>, vector<1x1x128xf32>
    %8 = vector.shape_cast %7 : vector<1x1x128xf32> to vector<1x128xf32>
    %9 = vector.broadcast %8 : vector<1x128xf32> to vector<128x128xf32>
    %10 = arith.addf %6, %9 : vector<128x128xf32>
    %cst = arith.constant 0.000000e+00 : f32
    %11 = vector.broadcast %cst : f32 to vector<128x128xf32>
    %12 = arith.maximumf %10, %11 : vector<128x128xf32>
    %13 = arith.truncf %12 : vector<128x128xf32> to vector<128x128xbf16>
    %c0_8 = arith.constant 0 : index
    %c0_9 = arith.constant 0 : index
    %c0_10 = arith.constant 0 : index
    %14 = vector.load %arg5[%c0_8, %c0_9, %c0_10] : memref<1x128x128xbf16, #tpu.memory_space<vmem>>, vector<1x128x128xbf16>
    %15 = vector.shape_cast %14 : vector<1x128x128xbf16> to vector<128x128xbf16>
    %16 = vector.shape_cast %13 : vector<128x128xbf16> to vector<1x128x128xbf16>
    tpu.vector_store %arg5[%c0_8, %c0_9, %c0_10], %16 {strides = array<i32>} : memref<1x128x128xbf16, #tpu.memory_space<vmem>>, vector<1x128x128xbf16>,
    return
  }
  func.func @transform_0(%arg0: i32, %arg1: i32) -> (i32, i32, i32) {
    %c0_i32 = arith.constant 0 : i32
    %c0_i32_0 = arith.constant 0 : i32
    return %arg0, %arg1, %c0_i32 : i32, i32, i32
  }
  func.func @transform_1(%arg0: i32, %arg1: i32) -> (i32, i32, i32) {
    %c0_i32 = arith.constant 0 : i32
    %c0_i32_0 = arith.constant 0 : i32
    %c0_i32_1 = arith.constant 0 : i32
    return %arg0, %c0_i32, %c0_i32_0 : i32, i32, i32
  }
  func.func @transform_2(%arg0: i32, %arg1: i32) -> (i32, i32, i32) {
    %c0_i32 = arith.constant 0 : i32
    %c0_i32_0 = arith.constant 0 : i32
    %c0_i32_1 = arith.constant 0 : i32
    return %arg0, %c0_i32, %c0_i32_0 : i32, i32, i32
  }
  func.func @transform_3(%arg0: i32, %arg1: i32) -> (i32, i32, i32) {
    %c0_i32 = arith.constant 0 : i32
    %c0_i32_0 = arith.constant 0 : i32
    return %arg0, %arg1, %c0_i32 : i32, i32, i32
  }
}

module attributes {stable_mosaic.version = 11 : i64} {
  func.func @_gn_fuse_stats_kernel(%arg0: i32, %arg1: i32, %arg2: memref<1x128x128xbf16, #tpu.memory_space<vmem>>, %arg3: memref<1x1x128xf32, #tpu.memory_space<vmem>>, %arg4: memref<1x1x128xf32, #tpu.memory_space<vmem>>, %arg5: memref<1x128x128xbf16, #tpu.memory_space<vmem>>, %arg6: memref<128x128xbf16, #tpu.memory_space<vmem>>, %arg7: memref<128x128xbf16, #tpu.memory_space<vmem>>, %arg8: memref<1x128x128xbf16, #tpu.memory_space<vmem>>, %arg9: memref<1x16x128xf32, #tpu.memory_space<vmem>>) attributes {dimension_semantics = [#tpu.dimension_semantics<parallel>, #tpu.dimension_semantics<parallel>], iteration_bounds = array<i64: 2, 2>, scalar_prefetch = 0 : i64, scratch_operands = 0 : i64, tpu.core_type = #tpu.core_type<tc>, window_params = [{transform_indices = @transform_0, window_bounds = array<i64: 1, 128, 128>}, {transform_indices = @transform_1, window_bounds = array<i64: 1, 1, 128>}, {transform_indices = @transform_2, window_bounds = array<i64: 1, 1, 128>}, {transform_indices = @transform_3, window_bounds = array<i64: 1, 128, 128>}, {pipeline_mode = #tpu.pipeline_mode<synchronous>, transform_indices = @transform_4, window_bounds = array<i64: 128, 128>}, {pipeline_mode = #tpu.pipeline_mode<synchronous>, transform_indices = @transform_5, window_bounds = array<i64: 128, 128>}, {transform_indices = @transform_6, window_bounds = array<i64: 1, 128, 128>}, {transform_indices = @transform_7, window_bounds = array<i64: 1, 16, 128>}]} {
    %c0 = arith.constant 0 : index
    %c0_0 = arith.constant 0 : index
    %c0_1 = arith.constant 0 : index
    %0 = vector.load %arg2[%c0, %c0_0, %c0_1] : memref<1x128x128xbf16, #tpu.memory_space<vmem>>, vector<1x128x128xbf16>
    %1 = vector.shape_cast %0 : vector<1x128x128xbf16> to vector<128x128xbf16>
    %2 = arith.extf %1 : vector<128x128xbf16> to vector<128x128xf32>
    %c0_2 = arith.constant 0 : index
    %c0_3 = arith.constant 0 : index
    %c0_4 = arith.constant 0 : index
    %3 = vector.load %arg3[%c0_2, %c0_3, %c0_4] : memref<1x1x128xf32, #tpu.memory_space<vmem>>, vector<1x1x128xf32>
    %4 = vector.shape_cast %3 : vector<1x1x128xf32> to vector<1x128xf32>
    %5 = vector.broadcast %4 : vector<1x128xf32> to vector<128x128xf32>
    %6 = arith.mulf %2, %5 : vector<128x128xf32>
    %c0_5 = arith.constant 0 : index
    %c0_6 = arith.constant 0 : index
    %c0_7 = arith.constant 0 : index
    %7 = vector.load %arg4[%c0_5, %c0_6, %c0_7] : memref<1x1x128xf32, #tpu.memory_space<vmem>>, vector<1x1x128xf32>
    %8 = vector.shape_cast %7 : vector<1x1x128xf32> to vector<1x128xf32>
    %9 = vector.broadcast %8 : vector<1x128xf32> to vector<128x128xf32>
    %10 = arith.addf %6, %9 : vector<128x128xf32>
    %cst = arith.constant 0.000000e+00 : f32
    %11 = vector.broadcast %cst : f32 to vector<128x128xf32>
    %12 = arith.maximumf %10, %11 : vector<128x128xf32>
    %13 = arith.truncf %12 : vector<128x128xf32> to vector<128x128xbf16>
    %c0_8 = arith.constant 0 : index
    %c0_9 = arith.constant 0 : index
    %14 = vector.load %arg6[%c0_8, %c0_9] : memref<128x128xbf16, #tpu.memory_space<vmem>>, vector<128x128xbf16>
    %cst_10 = arith.constant dense<0.000000e+00> : vector<128x128xf32>
    %15 = tpu.matmul %13, %14, %cst_10 {dimension_numbers = #tpu.dot_dimension_numbers<[1], [0], [0], [1], [0, 0, 1, 1], [], []>} : vector<128x128xbf16>, vector<128x128xbf16>, vector<128x128xf32> -> vector<128x128xf32>
    %c0_11 = arith.constant 0 : index
    %c0_12 = arith.constant 0 : index
    %c0_13 = arith.constant 0 : index
    %16 = vector.load %arg5[%c0_11, %c0_12, %c0_13] : memref<1x128x128xbf16, #tpu.memory_space<vmem>>, vector<1x128x128xbf16>
    %17 = vector.shape_cast %16 : vector<1x128x128xbf16> to vector<128x128xbf16>
    %c0_14 = arith.constant 0 : index
    %c0_15 = arith.constant 0 : index
    %18 = vector.load %arg7[%c0_14, %c0_15] : memref<128x128xbf16, #tpu.memory_space<vmem>>, vector<128x128xbf16>
    %cst_16 = arith.constant dense<0.000000e+00> : vector<128x128xf32>
    %19 = tpu.matmul %17, %18, %cst_16 {dimension_numbers = #tpu.dot_dimension_numbers<[1], [0], [0], [1], [0, 0, 1, 1], [], []>} : vector<128x128xbf16>, vector<128x128xbf16>, vector<128x128xf32> -> vector<128x128xf32>
    %20 = arith.addf %15, %19 : vector<128x128xf32>
    %21 = arith.truncf %20 : vector<128x128xf32> to vector<128x128xbf16>
    %c0_17 = arith.constant 0 : index
    %c0_18 = arith.constant 0 : index
    %c0_19 = arith.constant 0 : index
    %22 = vector.load %arg8[%c0_17, %c0_18, %c0_19] : memref<1x128x128xbf16, #tpu.memory_space<vmem>>, vector<1x128x128xbf16>
    %23 = vector.shape_cast %22 : vector<1x128x128xbf16> to vector<128x128xbf16>
    %24 = vector.shape_cast %21 : vector<128x128xbf16> to vector<1x128x128xbf16>
    tpu.vector_store %arg8[%c0_17, %c0_18, %c0_19], %24 {strides = array<i32>} : memref<1x128x128xbf16, #tpu.memory_space<vmem>>, vector<1x128x128xbf16>,
    %25 = tpu.iota {dimensions = array<i32: 0>} : vector<128x1xi32>
    %c128_i32 = arith.constant 128 : i32
    %26 = arith.muli %arg1, %c128_i32 : i32
    %27 = vector.broadcast %26 : i32 to vector<128x1xi32>
    %28 = arith.addi %25, %27 : vector<128x1xi32>
    %c196_i32 = arith.constant 196 : i32
    %29 = vector.broadcast %c196_i32 : i32 to vector<128x1xi32>
    %30 = arith.cmpi slt, %28, %29 : vector<128x1xi32>
    %31 = arith.extui %30 : vector<128x1xi1> to vector<128x1xi32>
    %32 = arith.sitofp %31 : vector<128x1xi32> to vector<128x1xf32>
    %cst_20 = arith.constant dense<0.000000e+00> : vector<128xf32>
    %33 = vector.multi_reduction <add>, %20, %cst_20 [1] : vector<128x128xf32> to vector<128xf32>
    %34 = vector.shape_cast %33 : vector<128xf32> to vector<128x1xf32>
    %35 = arith.mulf %34, %32 : vector<128x1xf32>
    %36 = arith.mulf %20, %20 : vector<128x128xf32>
    %cst_21 = arith.constant dense<0.000000e+00> : vector<128xf32>
    %37 = vector.multi_reduction <add>, %36, %cst_21 [1] : vector<128x128xf32> to vector<128xf32>
    %38 = vector.shape_cast %37 : vector<128xf32> to vector<128x1xf32>
    %39 = arith.mulf %38, %32 : vector<128x1xf32>
    %40 = vector.shape_cast %35 : vector<128x1xf32> to vector<1x128x1xf32>
    %cst_22 = arith.constant dense<0.000000e+00> : vector<1xf32>
    %41 = vector.multi_reduction <add>, %40, %cst_22 [1, 2] : vector<1x128x1xf32> to vector<1xf32>
    %42 = vector.shape_cast %41 : vector<1xf32> to vector<1x1x1xf32>
    %43 = vector.extract %42[0, 0, 0] : f32 from vector<1x1x1xf32>
    %44 = vector.shape_cast %39 : vector<128x1xf32> to vector<1x128x1xf32>
    %cst_23 = arith.constant dense<0.000000e+00> : vector<1xf32>
    %45 = vector.multi_reduction <add>, %44, %cst_23 [1, 2] : vector<1x128x1xf32> to vector<1xf32>
    %46 = vector.shape_cast %45 : vector<1xf32> to vector<1x1x1xf32>
    %47 = vector.extract %46[0, 0, 0] : f32 from vector<1x1x1xf32>
    %48 = vector.broadcast %43 : f32 to vector<8x128xf32>
    %c0_24 = arith.constant 0 : index
    %c0_25 = arith.constant 0 : index
    %c0_26 = arith.constant 0 : index
    %49 = vector.load %arg9[%c0_24, %c0_25, %c0_26] : memref<1x16x128xf32, #tpu.memory_space<vmem>>, vector<1x8x128xf32>
    %50 = vector.shape_cast %49 : vector<1x8x128xf32> to vector<8x128xf32>
    %51 = vector.shape_cast %48 : vector<8x128xf32> to vector<1x8x128xf32>
    tpu.vector_store %arg9[%c0_24, %c0_25, %c0_26], %51 {strides = array<i32>} : memref<1x16x128xf32, #tpu.memory_space<vmem>>, vector<1x8x128xf32>,
    %52 = vector.broadcast %47 : f32 to vector<8x128xf32>
    %c0_27 = arith.constant 0 : index
    %c8 = arith.constant 8 : index
    %c0_28 = arith.constant 0 : index
    %53 = vector.load %arg9[%c0_27, %c8, %c0_28] : memref<1x16x128xf32, #tpu.memory_space<vmem>>, vector<1x8x128xf32>
    %54 = vector.shape_cast %53 : vector<1x8x128xf32> to vector<8x128xf32>
    %55 = vector.shape_cast %52 : vector<8x128xf32> to vector<1x8x128xf32>
    tpu.vector_store %arg9[%c0_27, %c8, %c0_28], %55 {strides = array<i32>} : memref<1x16x128xf32, #tpu.memory_space<vmem>>, vector<1x8x128xf32>,
    return
  }
  func.func @transform_0(%arg0: i32, %arg1: i32) -> (i32, i32, i32) {
    %c0_i32 = arith.constant 0 : i32
    %c0_i32_0 = arith.constant 0 : i32
    return %arg0, %arg1, %c0_i32 : i32, i32, i32
  }
  func.func @transform_1(%arg0: i32, %arg1: i32) -> (i32, i32, i32) {
    %c0_i32 = arith.constant 0 : i32
    %c0_i32_0 = arith.constant 0 : i32
    %c0_i32_1 = arith.constant 0 : i32
    return %arg0, %c0_i32, %c0_i32_0 : i32, i32, i32
  }
  func.func @transform_2(%arg0: i32, %arg1: i32) -> (i32, i32, i32) {
    %c0_i32 = arith.constant 0 : i32
    %c0_i32_0 = arith.constant 0 : i32
    %c0_i32_1 = arith.constant 0 : i32
    return %arg0, %c0_i32, %c0_i32_0 : i32, i32, i32
  }
  func.func @transform_3(%arg0: i32, %arg1: i32) -> (i32, i32, i32) {
    %c0_i32 = arith.constant 0 : i32
    %c0_i32_0 = arith.constant 0 : i32
    return %arg0, %arg1, %c0_i32 : i32, i32, i32
  }
  func.func @transform_4(%arg0: i32, %arg1: i32) -> (i32, i32) {
    %c0_i32 = arith.constant 0 : i32
    %c0_i32_0 = arith.constant 0 : i32
    %c0_i32_1 = arith.constant 0 : i32
    return %c0_i32, %c0_i32_0 : i32, i32
  }
  func.func @transform_5(%arg0: i32, %arg1: i32) -> (i32, i32) {
    %c0_i32 = arith.constant 0 : i32
    %c0_i32_0 = arith.constant 0 : i32
    %c0_i32_1 = arith.constant 0 : i32
    return %c0_i32, %c0_i32_0 : i32, i32
  }
  func.func @transform_6(%arg0: i32, %arg1: i32) -> (i32, i32, i32) {
    %c0_i32 = arith.constant 0 : i32
    %c0_i32_0 = arith.constant 0 : i32
    return %arg0, %arg1, %c0_i32 : i32, i32, i32
  }
  func.func @transform_7(%arg0: i32, %arg1: i32) -> (i32, i32, i32) {
    %c0_i32 = arith.constant 0 : i32
    %c0_i32_0 = arith.constant 0 : i32
    return %arg0, %arg1, %c0_i32 : i32, i32, i32
  }
}

</mosaic_0001>

<bundles_post_ra>
// kernel: spatial_ocr_forward.8
= control target key start
LH: loop header
LB: loop body
LE: loop exit
PB: predicated region body
PF: predicated region fallthrough
CT: control target
= control target key end

     0   :  { %s1447_s18 = smov 0   ;;  %s1449_s19 = smov 0   ;;  %s1718_s0 = inlined_call_operand.vmem [shape: bf16[2,256,128], index: 0, kind: input, shape index: {}]   ;;  %s1719_s1 = inlined_call_operand.vmem [shape: f32[2,1,128], index: 1, kind: input, shape index: {}]   ;;  %s1720_s2 = inlined_call_operand.vmem [shape: f32[2,1,128], index: 2, kind: input, shape index: {}]   ;;  %s1721_s3 = inlined_call_operand.vmem [shape: bf16[128,128], index: 3, kind: input, shape index: {}]   ;;  %s1722_s4 = inlined_call_operand.vmem [shape: bf16[2,256,128], index: 4, kind: output, shape index: {0}]   ;;  %s1723_s5 = inlined_call_operand.vmem [shape: f32[2,32,128], index: 5, kind: output, shape index: {1}]  }
   0x1   :  { %s1451_s20 = smov 0   ;;  %s1453_s21 = smov 0  }
   0x2   :  { %s1455_s22 = smov 0  }
   0x3 LB: > { %s25_s23 = sadd.s32 1, %s1406_s20  ;;  %s28_s24 = sadd.s32 1, %s1410_s21  ;;  %s1414_s22 = sphi %s1455_s22, %s16_s22   ;;  %s1410_s21 = sphi %s1453_s21, %s1727_s21   ;;  %s1406_s20 = sphi %s1451_s20, %s1726_s20   ;;  %s1402_s19 = sphi %s1449_s19, %s1725_s19   ;;  %s1398_s18 = sphi %s1447_s18, %s1724_s18  }
   0x4   : > { %p26_p0 = scmp.ge.s32.totalorder %s25_s23, 2  ;;  %p1102_p1 = scmp.ge.s32.totalorder %s1414_s22, 1 }
   0x5   : > { %p229_p2 = scmp.lt.s32.totalorder %s1414_s22, 5 }
   0x6   : > { %s1729_s23 = smov (%p26_p0, %s25_s23), 0  ;;  %s1731_s24 = smov (!%p26_p0, %s28_s24), %s1410_s21 }
   0x7   : > { %p230_p3 = pnand %p1102_p1, %p229_p2  ;;  %p30_p4 = scmp.ge.s32.totalorder %s1731_s24, 2 }
   0x8   : > { %v1368_v0 = vld [vmem:[%s1721_s3] sm:$0xff] (!%p230_p3)   ;;  %s1103_s27 = sshll.u32 (!%p230_p3), %s1398_s18, 4  ;;  %v1369_v1 = vld [vmem:[%s1721_s3 + $0x8] sm:$0xff] (!%p230_p3)   ;;  %p281_p5 = scmp.lt.s32.totalorder (!%p230_p3), %s1402_s19, 1  ;;  %v1370_v2 = vld [vmem:[%s1721_s3 + $0x10] sm:$0xff] (!%p230_p3)   ;;  %vm855_vm3 = vcmask (!%p230_p3), 7168  }
   0x9   : > { %s1733_s24 = smov (%p30_p4, %s1731_s24), 0  ;;  %233 = sbr.rel (%p230_p3) target bundleno = 669 (0x29d), region = 36 }
   0xa   : > { %1275 = vmatprep.subr.bf16.mxu0 (!%p230_p3), %v1368_v0  ;;  %1307 = vmatprep.subr.bf16.mxu1 (!%p230_p3), %v1368_v0  ;;  %p283_p6 = scmp.lt.s32.totalorder (!%p230_p3), %s1103_s27, 31  ;;  %v1371_v3 = vld [vmem:[%s1721_s3 + $0x18] sm:$0xff] (!%p230_p3)   ;;  %v1372_v14 = vld [vmem:[%s1721_s3 + $0x20] sm:$0xff] (!%p230_p3)   ;;  %v1373_v30 = vld [vmem:[%s1721_s3 + $0x28] sm:$0xff] (!%p230_p3)  }
   0xb   : > { %1276 = vmatpush3.bf16.msra.mxu0 (!%p230_p3), %v1368_v0  ;;  %1315 = vmatpush3.bf16.msra.mxu1 (!%p230_p3), %v1368_v0  ;;  %v1374_v46 = vld [vmem:[%s1721_s3 + $0x30] sm:$0xff] (!%p230_p3)   ;;  %v1375_v61 = vld [vmem:[%s1721_s3 + $0x38] sm:$0xff] (!%p230_p3)  }
   0xc   : > { %1277 = vmatprep.subr.bf16.mxu0 (!%p230_p3), %v1369_v1  ;;  %1308 = vmatprep.subr.bf16.mxu1 (!%p230_p3), %v1369_v1 }
   0xf   : > { %1278 = vmatpush3.bf16.msra.mxu0 (!%p230_p3), %v1369_v1  ;;  %1316 = vmatpush3.bf16.msra.mxu1 (!%p230_p3), %v1369_v1 }
  0x10   : > { %s1735_s19 = smov (!%p281_p5, %s1402_s19), 1  ;;  %s1737_s27 = smov (!%p283_p6, %s1103_s27), 31  ;;  %1279 = vmatprep.subr.bf16.mxu0 %v1370_v2  ;;  %1309 = vmatprep.subr.bf16.mxu1 %v1370_v2 }
  0x11   : > { %s1104_s7 = sshll.u32 %s1735_s19, 5  ;;  %s292_s10 = scalar_lea.vmem %s1719_s1, %s1735_s19 }
  0x12   : > { %s1496_s11 = sadd.s32 %s1104_s7, %s1737_s27  ;;  %s295_s27 = scalar_lea.vmem %s1720_s2, %s1735_s19  ;;  %v1513_v4 = vld [vmem:[%s292_s10] ss:$0 sm:$0xff] }
  0x13   : > { %s1105_s12 = sshll.u32 %s1496_s11, 2  ;;  %1280 = vmatpush3.bf16.msra.mxu0 %v1370_v2  ;;  %1317 = vmatpush3.bf16.msra.mxu1 %v1370_v2  ;;  %v1519_v11 = vld [vmem:[%s295_s27] ss:$0 sm:$0xff]  ;;  %s1138_s11 = sshll.u32 %s1398_s18, 7 }
  0x14   : > { %s1507_s17 = scalar_lea.vmem %s1718_s0, %s1105_s12  ;;  %1281 = vmatprep.subr.bf16.mxu0 %v1371_v3  ;;  %1310 = vmatprep.subr.bf16.mxu1 %v1371_v3  ;;  %s1574_s15 = scalar_lea.vmem %s1722_s4, %s1105_s12 }
  0x15   : > { %v1174_v5 = vld [vmem:[%s1507_s17] sm:$0xff]   ;;  %v1245_v6 = vld [vmem:[%s1507_s17 + $0x8] sm:$0xff]   ;;  %v1246_v19 = vld [vmem:[%s1507_s17 + $0x10] sm:$0xff]   ;;  %s1109_s12 = sshll.u32 %s1398_s18, 1  ;;  %s1110_s16 = sshll.u32 %s1735_s19, 2 }
  0x16   : > { %v1248_v7 = vld [vmem:[%s1507_s17 + $0x20] sm:$0xff]   ;;  %v1175_v8 = vunpack.c.l.bf16 %v1174_v5  ;;  %v1176_v9 = vunpack.c.h.bf16 %v1174_v5  ;;  %v1249_v10 = vld [vmem:[%s1507_s17 + $0x28] sm:$0xff]   ;;  %v1179_v17 = vunpack.c.l.bf16 %v1245_v6  ;;  %v1180_v18 = vunpack.c.h.bf16 %v1245_v6  ;;  %v1250_v39 = vld [vmem:[%s1507_s17 + $0x30] sm:$0xff]   ;;  %p309_p7 = scmp.lt.s32.totalorder %s1109_s12, 3 }
  0x17   : > { %v1191_v12 = vunpack.c.l.bf16 %v1248_v7  ;;  %v1192_v13 = vunpack.c.h.bf16 %v1248_v7  ;;  %v1195_v22 = vunpack.c.l.bf16 %v1249_v10  ;;  %v1196_v23 = vunpack.c.h.bf16 %v1249_v10  ;;  %1282 = vmatpush3.bf16.msra.mxu0 %v1371_v3  ;;  %1318 = vmatpush3.bf16.msra.mxu1 %v1371_v3  ;;  %v1247_v44 = vld [vmem:[%s1507_s17 + $0x18] sm:$0xff]  }
  0x18   : > { %v356_v15 = vmul.f32 %v1175_v8, %v1513_v4  ;;  %v357_v16 = vmul.f32 %v1176_v9, %v1513_v4  ;;  %v1183_v28 = vunpack.c.l.bf16 %v1246_v19  ;;  %v1184_v29 = vunpack.c.h.bf16 %v1246_v19  ;;  %1283 = vmatprep.subr.bf16.mxu0 %v1372_v14  ;;  %1311 = vmatprep.subr.bf16.mxu1 %v1372_v14  ;;  %v1251_v45 = vld [vmem:[%s1507_s17 + $0x38] sm:$0xff]   ;;  %s1739_s12 = smov (!%p309_p7, %s1109_s12), 3 }
  0x19   : > { %v364_v20 = vmul.f32 %v1191_v12, %v1513_v4  ;;  %v365_v21 = vmul.f32 %v1192_v13, %v1513_v4  ;;  %v358_v33 = vmul.f32 %v1179_v17, %v1513_v4  ;;  %v359_v34 = vmul.f32 %v1180_v18, %v1513_v4  ;;  %s312_s17 = sadd.s32 %s1110_s16, %s1739_s12 }
  0x1a   : > { %v379_v24 = vadd.f32 %v1519_v11, %v356_v15  ;;  %v380_v25 = vadd.f32 %v1519_v11, %v357_v16  ;;  %v366_v37 = vmul.f32 %v1195_v22, %v1513_v4  ;;  %v367_v38 = vmul.f32 %v1196_v23, %v1513_v4  ;;  %s1111_s25 = sshll.u32 %s312_s17, 3 }
  0x1b   : > { %v387_v26 = vadd.f32 %v1519_v11, %v364_v20  ;;  %v388_v27 = vadd.f32 %v1519_v11, %v365_v21  ;;  %1284 = vmatpush3.bf16.msra.mxu0 %v1372_v14  ;;  %1319 = vmatpush3.bf16.msra.mxu1 %v1372_v14  ;;  %v360_v42 = vmul.f32 %v1183_v28, %v1513_v4  ;;  %v1199_v48 = vunpack.c.l.bf16 %v1250_v39  ;;  %s314_s28 = scalar_lea.vmem %s1723_s5, %s1111_s25 }
  0x1c   : > { %v395_v31 = vmax.f32 %v379_v24, 0.0  ;;  %v396_v32 = vmax.f32 %v380_v25, 0.0  ;;  %v361_v43 = vmul.f32 %v1184_v29, %v1513_v4  ;;  %1285 = vmatprep.subr.bf16.mxu0 %v1373_v30  ;;  %1312 = vmatprep.subr.bf16.mxu1 %v1373_v30  ;;  %v381_v47 = vadd.f32 %v1519_v11, %v358_v33 }
  0x1d   : > { %v403_v35 = vmax.f32 %v387_v26, 0.0  ;;  %v404_v36 = vmax.f32 %v388_v27, 0.0  ;;  %v382_v49 = vadd.f32 %v1519_v11, %v359_v34  ;;  %v389_v50 = vadd.f32 %v1519_v11, %v366_v37 }
  0x1e   : > { %v411_v40 = vpack.c.bf16 %v396_v32, %v395_v31  ;;  %v390_v51 = vadd.f32 %v1519_v11, %v367_v38  ;;  %v1200_v52 = vunpack.c.h.bf16 %v1250_v39  ;;  %v1187_v53 = vunpack.c.l.bf16 %v1247_v44 }
  0x1f   : > { %v415_v41 = vpack.c.bf16 %v404_v36, %v403_v35  ;;  %v1188_v54 = vunpack.c.h.bf16 %v1247_v44  ;;  %v368_v55 = vmul.f32 %v1199_v48, %v1513_v4  ;;  %v1203_v56 = vunpack.c.l.bf16 %v1251_v45  ;;  %1286 = vmatpush3.bf16.msra.mxu0 %v1373_v30  ;;  %1320 = vmatpush3.bf16.msra.mxu1 %v1373_v30 }
  0x20   : > { %1291 = vmatprep.mubr.bf16.mxu0 %v411_v40  ;;  %v383_v57 = vadd.f32 %v1519_v11, %v360_v42  ;;  %v384_v58 = vadd.f32 %v1519_v11, %v361_v43  ;;  %v369_v59 = vmul.f32 %v1200_v52, %v1513_v4  ;;  %v1204_v60 = vunpack.c.h.bf16 %v1251_v45  ;;  %1287 = vmatprep.subr.bf16.mxu0 %v1374_v46 }
  0x21   : > { %1299 = vmatprep.mubr.bf16.mxu1 %v415_v41  ;;  %1313 = vmatprep.subr.bf16.mxu1 %v1374_v46  ;;  %v397_v62 = vmax.f32 %v381_v47, 0.0  ;;  %v391_v63 = vadd.f32 %v1519_v11, %v368_v55  ;;  %v398_v0 = vmax.f32 %v382_v49, 0.0  ;;  %v405_v1 = vmax.f32 %v389_v50, 0.0 }
  0x22   : > { %v406_v2 = vmax.f32 %v390_v51, 0.0  ;;  %v392_v3 = vadd.f32 %v1519_v11, %v369_v59  ;;  %v362_v5 = vmul.f32 %v1187_v53, %v1513_v4  ;;  %v363_v6 = vmul.f32 %v1188_v54, %v1513_v4 }
  0x23   : > { %v370_v7 = vmul.f32 %v1203_v56, %v1513_v4  ;;  %v371_v8 = vmul.f32 %v1204_v60, %v1513_v4  ;;  %1288 = vmatpush3.bf16.msra.mxu0 %v1374_v46  ;;  %1321 = vmatpush3.bf16.msra.mxu1 %v1374_v46  ;;  %v399_v9 = vmax.f32 %v383_v57, 0.0  ;;  %v400_v10 = vmax.f32 %v384_v58, 0.0 }
  0x24   : > { %v407_v12 = vmax.f32 %v391_v63, 0.0  ;;  %v408_v13 = vmax.f32 %v392_v3, 0.0  ;;  %1289 = vmatprep.subr.bf16.mxu0 %v1375_v61  ;;  %1314 = vmatprep.subr.bf16.mxu1 %v1375_v61  ;;  %v412_v14 = vpack.c.bf16 %v398_v0, %v397_v62  ;;  %v416_v15 = vpack.c.bf16 %v406_v2, %v405_v1 }
  0x25   : > { %v385_v16 = vadd.f32 %v1519_v11, %v362_v5  ;;  %v386_v17 = vadd.f32 %v1519_v11, %v363_v6  ;;  %v393_v18 = vadd.f32 %v1519_v11, %v370_v7  ;;  %v394_v19 = vadd.f32 %v1519_v11, %v371_v8 }
  0x26   : > { %v413_v4 = vpack.c.bf16 %v400_v10, %v399_v9  ;;  %v417_v20 = vpack.c.bf16 %v408_v13, %v407_v12  ;;  %v660_v6 = vlaneseq }
  0x27   : > { %1290 = vmatpush3.bf16.msra.mxu0 %v1375_v61  ;;  %1322 = vmatpush3.bf16.msra.mxu1 %v1375_v61  ;;  %v401_v21 = vmax.f32 %v385_v16, 0.0  ;;  %v402_v22 = vmax.f32 %v386_v17, 0.0  ;;  %v409_v23 = vmax.f32 %v393_v18, 0.0  ;;  %v410_v24 = vmax.f32 %v394_v19, 0.0 }
  0x28   : > { %v1588_v9 = vshrl.u32 %v660_v6, 7 }
  0x29   : > { %v414_v25 = vpack.c.bf16 %v402_v22, %v401_v21  ;;  %v418_v26 = vpack.c.bf16 %v410_v24, %v409_v23  ;;  %v1416_v24 = vmov 0.0  }
  0x2a   : > { %1292 = vmatmul.mubr.bf16.vlgmr.msra.gmra.mrb[0].mxu0 %v412_v14  ;;  %1300 = vmatmul.mubr.bf16.vlgmr.msra.gmra.mrb[0].mxu1 %v416_v15  ;;  %v662_v12 = vadd.s32 8, %v1588_v9  ;;  %v1594_v14 = vstv %s1138_s11  ;;  %v663_v18 = vadd.s32 16, %v1588_v9  ;;  %v665_v23 = vadd.s32 32, %v1588_v9 }
  0x2b   : > { %1295 = vmatprep.mubr.bf16.mxu0 %v413_v4  ;;  %1303 = vmatprep.mubr.bf16.mxu1 %v417_v20  ;;  %v679_v19 = vadd.s32 %v1594_v14, %v1588_v9  ;;  %v664_v20 = vadd.s32 24, %v1588_v9 }
  0x2c   : > { %v680_v16 = vadd.s32 %v1594_v14, %v662_v12  ;;  %v681_v22 = vadd.s32 %v1594_v14, %v663_v18 }
  0x2d   : > { %vm695_vm1 = vcmp.lt.s32.totalorder %v679_v19, 196 }
  0x2e   : > { %vm696_vm0 = vcmp.lt.s32.totalorder %v680_v16, 196  ;;  %vm697_vm2 = vcmp.lt.s32.totalorder %v681_v22, 196 }
  0x32   : > { %1296 = vmatmul.mubr.bf16.gmra.mrb[4].mxu0 %v414_v25  ;;  %1304 = vmatmul.mubr.bf16.gmra.mrb[4].mxu1 %v418_v26  ;;  %v1140_v25 = vsel %vm696_vm0, 1.0, %v1416_v24 }
  0xfd   : > { %v1293_v27 = vpop.f32.mrb[0].mxu0  ;;  %v1301_v28 = vpop.f32.mrb[0].mxu1 }
  0xfe   : > { %747 = vadd.xlane.f32.xlu0 %v1293_v27  ;;  %v517_v11 = vpop.f32.mrb[1].mxu0  ;;  %v549_v29 = vpop.f32.mrb[1].mxu1  ;;  %v793_v30 = vmul.f32 %v1293_v27, %v1293_v27  ;;  %v801_v37 = vmul.f32 %v1301_v28, %v1301_v28 }
  0xff   : > { %v1294_v31 = vpop.f32.mrb[2].mxu0  ;;  %v1302_v32 = vpop.f32.mrb[2].mxu1  ;;  %v791_v42 = vmul.f32 %v517_v11, %v517_v11  ;;  %v799_v53 = vmul.f32 %v549_v29, %v549_v29 }
 0x100   : > { %v1213_v33 = vpack.c.bf16 %v1294_v31, %v1293_v27  ;;  %v1233_v34 = vpack.c.bf16 %v1302_v32, %v1301_v28  ;;  %811 = vadd.xlane.f32.xlu1 %v793_v30  ;;  %v520_v35 = vpop.f32.mrb[3].mxu0  ;;  %v552_v36 = vpop.f32.mrb[3].mxu1  ;;  %v794_v54 = vmul.f32 %v1294_v31, %v1294_v31  ;;  %v802_v61 = vmul.f32 %v1302_v32, %v1302_v32 }
 0x101   : > { %v1208_v38 = vpack.c.bf16 %v520_v35, %v517_v11  ;;  %v1228_v39 = vpack.c.bf16 %v552_v36, %v549_v29  ;;  %v792_v55 = vmul.f32 %v520_v35, %v520_v35  ;;  %v800_v56 = vmul.f32 %v552_v36, %v552_v36 }
 0x102   : > { %1252 = vst [vmem:[%s1574_s15 + $0x8] sm:$0xff] %v1213_v33   ;;  %1256 = vst [vmem:[%s1574_s15 + $0x28] sm:$0xff] %v1233_v34   ;;  %763 = vadd.xlane.f32.xlu0 %v1301_v28  ;;  %v671_v27 = vadd.s32 80, %v1588_v9  ;;  %v1139_v28 = vsel %vm695_vm1, 1.0, %v1416_v24  ;;  %v667_v34 = vadd.s32 48, %v1588_v9 }
 0x103   : > { %1209 = vst [vmem:[%s1574_s15] sm:$0xff] %v1208_v38   ;;  %1255 = vst [vmem:[%s1574_s15 + $0x20] sm:$0xff] %v1228_v39   ;;  %v1141_v38 = vsel %vm697_vm2, 1.0, %v1416_v24 }
 0x104   : > { %827 = vadd.xlane.f32.xlu1 %v801_v37  ;;  %v689_v39 = vadd.s32 %v1594_v14, %v671_v27 }
 0x105   : > { %v1297_v40 = vpop.f32.mrb[4].mxu0  ;;  %v1305_v41 = vpop.f32.mrb[4].mxu1 }
 0x106   : > { %743 = vadd.xlane.f32.xlu0 %v517_v11  ;;  %v533_v43 = vpop.f32.mrb[5].mxu0  ;;  %v565_v44 = vpop.f32.mrb[5].mxu1  ;;  %v797_v57 = vmul.f32 %v1297_v40, %v1297_v40  ;;  %v805_v63 = vmul.f32 %v1305_v41, %v1305_v41  ;;  %v682_v11 = vadd.s32 %v1594_v14, %v664_v20  ;;  %vm705_vm6 = vcmp.lt.s32.totalorder %v689_v39, 196 }
 0x107   : > { %v1298_v45 = vpop.f32.mrb[6].mxu0  ;;  %v1306_v46 = vpop.f32.mrb[6].mxu1  ;;  %v795_v58 = vmul.f32 %v533_v43, %v533_v43  ;;  %v803_v62 = vmul.f32 %v565_v44, %v565_v44  ;;  %v1638_v6 = vsel %vm705_vm6, 1.0, %v1416_v24 }
 0x108   : > { %807 = vadd.xlane.f32.xlu1 %v791_v42  ;;  %v1223_v47 = vpack.c.bf16 %v1298_v45, %v1297_v40  ;;  %v536_v48 = vpop.f32.mrb[7].mxu0  ;;  %v1243_v49 = vpack.c.bf16 %v1306_v46, %v1305_v41  ;;  %v568_v50 = vpop.f32.mrb[7].mxu1  ;;  %v798_v59 = vmul.f32 %v1298_v45, %v1298_v45  ;;  %v806_v1 = vmul.f32 %v1306_v46, %v1306_v46 }
 0x109   : > { %v1218_v51 = vpack.c.bf16 %v536_v48, %v533_v43  ;;  %v1238_v52 = vpack.c.bf16 %v568_v50, %v565_v44  ;;  %v796_v60 = vmul.f32 %v536_v48, %v536_v48  ;;  %v804_v0 = vmul.f32 %v568_v50, %v568_v50 }
 0x10a   : > { %759 = vadd.xlane.f32.xlu0 %v549_v29  ;;  %1254 = vst [vmem:[%s1574_s15 + $0x18] sm:$0xff] %v1223_v47   ;;  %1258 = vst [vmem:[%s1574_s15 + $0x38] sm:$0xff] %v1243_v49   ;;  %vm698_vm4 = vcmp.lt.s32.totalorder %v682_v11, 196  ;;  %v674_v11 = vadd.s32 104, %v1588_v9 }
 0x10b   : > { %1253 = vst [vmem:[%s1574_s15 + $0x10] sm:$0xff] %v1218_v51   ;;  %1257 = vst [vmem:[%s1574_s15 + $0x30] sm:$0xff] %v1238_v52   ;;  %v672_v52 = vadd.s32 88, %v1588_v9 }
 0x10c   : > { %823 = vadd.xlane.f32.xlu1 %v799_v53  ;;  %v1142_v53 = vsel %vm698_vm4, 1.0, %v1416_v24 }
 0x10e   : > { %749 = vadd.xlane.f32.xlu0 %v1294_v31  ;;  %v683_v31 = vadd.s32 %v1594_v14, %v665_v23 }
 0x110   : > { %813 = vadd.xlane.f32.xlu1 %v794_v54  ;;  %vm699_vm5 = vcmp.lt.s32.totalorder %v683_v31, 196 }
 0x112   : > { %745 = vadd.xlane.f32.xlu0 %v520_v35  ;;  %v666_v35 = vadd.s32 40, %v1588_v9 }
 0x114   : > { %809 = vadd.xlane.f32.xlu1 %v792_v55 }
 0x116   : > { %761 = vadd.xlane.f32.xlu0 %v552_v36 }
 0x118   : > { %825 = vadd.xlane.f32.xlu1 %v800_v56  ;;  %v1143_v56 = vsel %vm699_vm5, 1.0, %v1416_v24 }
 0x11a   : > { %755 = vadd.xlane.f32.xlu0 %v1297_v40  ;;  %v670_v40 = vadd.s32 72, %v1588_v9 }
 0x11c   : > { %819 = vadd.xlane.f32.xlu1 %v797_v57  ;;  %v688_v55 = vadd.s32 %v1594_v14, %v670_v40 }
 0x11e   : > { %751 = vadd.xlane.f32.xlu0 %v533_v43  ;;  %vm704_vm10 = vcmp.lt.s32.totalorder %v688_v55, 196 }
 0x120   : > { %815 = vadd.xlane.f32.xlu1 %v795_v58 }
 0x122   : > { %757 = vadd.xlane.f32.xlu0 %v1298_v45 }
 0x124   : > { %821 = vadd.xlane.f32.xlu1 %v798_v59 }
 0x126   : > { %753 = vadd.xlane.f32.xlu0 %v536_v48  ;;  %v684_v48 = vadd.s32 %v1594_v14, %v666_v35 }
 0x128   : > { %817 = vadd.xlane.f32.xlu1 %v796_v60  ;;  %vm700_vm8 = vcmp.lt.s32.totalorder %v684_v48, 196 }
 0x129   : > { %v1144_v20 = vsel %vm700_vm8, 1.0, %v1416_v24 }
 0x12a   : > { %765 = vadd.xlane.f32.xlu0 %v1302_v32  ;;  %v669_v32 = vadd.s32 64, %v1588_v9 }
 0x12c   : > { %829 = vadd.xlane.f32.xlu1 %v802_v61  ;;  %v687_v45 = vadd.s32 %v1594_v14, %v669_v32 }
 0x12e   : > { %767 = vadd.xlane.f32.xlu0 %v565_v44  ;;  %v668_v44 = vadd.s32 56, %v1588_v9  ;;  %vm703_vm9 = vcmp.lt.s32.totalorder %v687_v45, 196 }
 0x12f   : > { %v1147_v22 = vsel %vm703_vm9, 1.0, %v1416_v24 }
 0x130   : > { %831 = vadd.xlane.f32.xlu1 %v803_v62  ;;  %v686_v60 = vadd.s32 %v1594_v14, %v668_v44 }
 0x132   : > { %769 = vadd.xlane.f32.xlu0 %v568_v50  ;;  %vm702_vm11 = vcmp.lt.s32.totalorder %v686_v60, 196 }
 0x133   : > { %v1146_v27 = vsel %vm702_vm11, 1.0, %v1416_v24 }
 0x134   : > { %835 = vadd.xlane.f32.xlu1 %v805_v63 }
 0x136   : > { %771 = vadd.xlane.f32.xlu0 %v1305_v41 }
 0x138   : > { %833 = vadd.xlane.f32.xlu1 %v804_v0 }
 0x13a   : > { %773 = vadd.xlane.f32.xlu0 %v1306_v46  ;;  %v685_v46 = vadd.s32 %v1594_v14, %v667_v34 }
 0x13c   : > { %837 = vadd.xlane.f32.xlu1 %v806_v1  ;;  %vm701_vm7 = vcmp.lt.s32.totalorder %v685_v46, 196 }
 0x18b   : > { %v748_v2 = vpop.xlane.xlu0 %747 }
 0x18c   : > { %v777_v49 = vmul.f32 %v1141_v38, %v748_v2  ;;  %v690_v2 = vadd.s32 %v1594_v14, %v672_v52 }
 0x18d   : > { %v812_v3 = vpop.xlane.xlu1 %811 }
 0x18e   : > { %v841_v58 = vmul.f32 %v1141_v38, %v812_v3  ;;  %v859_v63 = vsel %vm855_vm3, %v777_v49, 0.0  ;;  %vm706_vm12 = vcmp.lt.s32.totalorder %v690_v2, 196  ;;  %v675_v49 = vadd.s32 112, %v1588_v9 }
 0x18f   : > { %v1584_v5 = vpop.xlane.xlu0 %763  ;;  %v1150_v38 = vsel %vm706_vm12, 1.0, %v1416_v24 }
 0x191   : > { %v1586_v7 = vpop.xlane.xlu1 %827 }
 0x193   : > { %v744_v8 = vpop.xlane.xlu0 %743 }
 0x194   : > { %v775_v36 = vmul.f32 %v1139_v28, %v744_v8 }
 0x195   : > { %v808_v10 = vpop.xlane.xlu1 %807 }
 0x196   : > { %v839_v42 = vmul.f32 %v1139_v28, %v808_v10  ;;  %v856_v50 = vsel %vm855_vm3, %v775_v36, 0.0  ;;  %v899_v10 = vsel %vm855_vm3, %v841_v58, 0.0 }
 0x197   : > { %v1592_v13 = vpop.xlane.xlu0 %759 }
 0x198   : > { %v896_v59 = vsel %vm855_vm3, %v839_v42, 0.0 }
 0x199   : > { %v1596_v15 = vpop.xlane.xlu1 %823 }
 0x19b   : > { %v750_v17 = vpop.xlane.xlu0 %749 }
 0x19c   : > { %v778_v0 = vmul.f32 %v1142_v53, %v750_v17  ;;  %v1145_v17 = vsel %vm701_vm7, 1.0, %v1416_v24 }
 0x19d   : > { %v1602_v4 = vpop.xlane.xlu1 %813 }
 0x19e   : > { %v842_v12 = vmul.f32 %v1142_v53, %v1602_v4  ;;  %v861_v23 = vsel %vm855_vm3, %v778_v0, 0.0  ;;  %v1148_v4 = vsel %vm704_vm10, 1.0, %v1416_v24  ;;  %v785_v0 = vmul.f32 %v1638_v6, %v1584_v5 }
 0x19f   : > { %v746_v21 = vpop.xlane.xlu0 %745 }
 0x1a0   : > { %v776_v30 = vmul.f32 %v1140_v25, %v746_v21  ;;  %v673_v21 = vadd.s32 96, %v1588_v9 }
 0x1a1   : > { %v810_v26 = vpop.xlane.xlu1 %809 }
 0x1a2   : > { %v840_v37 = vmul.f32 %v1140_v25, %v810_v26  ;;  %v857_v43 = vsel %vm855_vm3, %v776_v30, 0.0  ;;  %v901_v30 = vsel %vm855_vm3, %v842_v12, 0.0  ;;  %v691_v39 = vadd.s32 %v1594_v14, %v673_v21 }
 0x1a3   : > { %v1611_v29 = vpop.xlane.xlu0 %761  ;;  %v858_v54 = vadd.f32 %v857_v43, %v856_v50  ;;  %v783_v50 = vmul.f32 %v1147_v22, %v1592_v13  ;;  %v849_v12 = vmul.f32 %v1638_v6, %v1586_v7  ;;  %v875_v21 = vsel %vm855_vm3, %v785_v0, 0.0 }
 0x1a4   : > { %v897_v51 = vsel %vm855_vm3, %v840_v37, 0.0  ;;  %vm707_vm13 = vcmp.lt.s32.totalorder %v691_v39, 196  ;;  %v784_v58 = vmul.f32 %v1148_v4, %v1611_v29 }
 0x1a5   : > { %v1615_v33 = vpop.xlane.xlu1 %825  ;;  %v898_v61 = vadd.f32 %v897_v51, %v896_v59  ;;  %v860_v3 = vadd.f32 %v859_v63, %v858_v54  ;;  %v693_v63 = vadd.s32 %v1594_v14, %v675_v49 }
 0x1a6   : > { %v873_v5 = vsel %vm855_vm3, %v784_v58, 0.0 }
 0x1a7   : > { %v756_v41 = vpop.xlane.xlu0 %755  ;;  %v900_v18 = vadd.f32 %v899_v10, %v898_v61  ;;  %v862_v26 = vadd.f32 %v861_v23, %v860_v3  ;;  %v1151_v3 = vsel %vm707_vm13, 1.0, %v1416_v24  ;;  %vm709_vm15 = vcmp.lt.s32.totalorder %v693_v63, 196 }
 0x1a8   : > { %v781_v31 = vmul.f32 %v1145_v17, %v756_v41  ;;  %v692_v41 = vadd.s32 %v1594_v14, %v674_v11 }
 0x1a9   : > { %v820_v47 = vpop.xlane.xlu1 %819  ;;  %v902_v36 = vadd.f32 %v901_v30, %v900_v18 }
 0x1aa   : > { %v845_v40 = vmul.f32 %v1145_v17, %v820_v47  ;;  %v867_v51 = vsel %vm855_vm3, %v781_v31, 0.0  ;;  %vm708_vm14 = vcmp.lt.s32.totalorder %v692_v41, 196  ;;  %v1153_v31 = vsel %vm709_vm15, 1.0, %v1416_v24 }
 0x1ab   : > { %v752_v57 = vpop.xlane.xlu0 %751 }
 0x1ac   : > { %v779_v1 = vmul.f32 %v1143_v56, %v752_v57  ;;  %v847_v57 = vmul.f32 %v1147_v22, %v1596_v15  ;;  %v907_v59 = vsel %vm855_vm3, %v845_v40, 0.0 }
 0x1ad   : > { %v816_v62 = vpop.xlane.xlu1 %815 }
 0x1ae   : > { %v843_v16 = vmul.f32 %v1143_v56, %v816_v62  ;;  %v863_v25 = vsel %vm855_vm3, %v779_v1, 0.0  ;;  %v676_v56 = vadd.s32 120, %v1588_v9  ;;  %v871_v1 = vsel %vm855_vm3, %v783_v50, 0.0 }
 0x1af   : > { %v758_v8 = vpop.xlane.xlu0 %757  ;;  %v864_v35 = vadd.f32 %v863_v25, %v862_v26  ;;  %v848_v9 = vmul.f32 %v1148_v4, %v1615_v33  ;;  %v915_v4 = vsel %vm855_vm3, %v849_v12, 0.0 }
 0x1b0   : > { %v903_v32 = vsel %vm855_vm3, %v843_v16, 0.0  ;;  %v782_v42 = vmul.f32 %v1146_v27, %v758_v8  ;;  %v694_v10 = vadd.s32 %v1594_v14, %v676_v56  ;;  %v911_v16 = vsel %vm855_vm3, %v847_v57, 0.0 }
 0x1b1   : > { %v822_v19 = vpop.xlane.xlu1 %821  ;;  %v904_v45 = vadd.f32 %v903_v32, %v902_v36  ;;  %v913_v22 = vsel %vm855_vm3, %v848_v9, 0.0 }
 0x1b2   : > { %v846_v52 = vmul.f32 %v1146_v27, %v822_v19  ;;  %v869_v60 = vsel %vm855_vm3, %v782_v42, 0.0  ;;  %v1152_v19 = vsel %vm708_vm14, 1.0, %v1416_v24  ;;  %vm710_vm0 = vcmp.lt.s32.totalorder %v694_v10, 196 }
 0x1b3   : > { %v754_v28 = vpop.xlane.xlu0 %753  ;;  %v1154_v40 = vsel %vm710_vm0, 1.0, %v1416_v24 }
 0x1b4   : > { %v780_v34 = vmul.f32 %v1144_v20, %v754_v28  ;;  %v909_v15 = vsel %vm855_vm3, %v846_v52, 0.0 }
 0x1b5   : > { %v818_v37 = vpop.xlane.xlu1 %817 }
 0x1b6   : > { %v865_v43 = vsel %vm855_vm3, %v780_v34, 0.0  ;;  %v844_v44 = vmul.f32 %v1144_v20, %v818_v37 }
 0x1b7   : > { %v866_v46 = vadd.f32 %v865_v43, %v864_v35  ;;  %v766_v48 = vpop.xlane.xlu0 %765 }
 0x1b8   : > { %v905_v53 = vsel %vm855_vm3, %v844_v44, 0.0  ;;  %v786_v18 = vmul.f32 %v1150_v38, %v766_v48 }
 0x1b9   : > { %v868_v54 = vadd.f32 %v867_v51, %v866_v46  ;;  %v906_v47 = vadd.f32 %v905_v53, %v904_v45  ;;  %v830_v55 = vpop.xlane.xlu1 %829 }
 0x1ba   : > { %v850_v14 = vmul.f32 %v1150_v38, %v830_v55  ;;  %v877_v26 = vsel %vm855_vm3, %v786_v18, 0.0 }
 0x1bb   : > { %v870_v13 = vadd.f32 %v869_v60, %v868_v54  ;;  %v908_v61 = vadd.f32 %v907_v59, %v906_v47  ;;  %v768_v62 = vpop.xlane.xlu0 %767 }
 0x1bc   : > { %v787_v23 = vmul.f32 %v1151_v3, %v768_v62  ;;  %v917_v34 = vsel %vm855_vm3, %v850_v14, 0.0 }
 0x1bd   : > { %v910_v29 = vadd.f32 %v909_v15, %v908_v61  ;;  %v872_v2 = vadd.f32 %v871_v1, %v870_v13  ;;  %v832_v8 = vpop.xlane.xlu1 %831 }
 0x1be   : > { %v851_v27 = vmul.f32 %v1151_v3, %v832_v8  ;;  %v879_v35 = vsel %vm855_vm3, %v787_v23, 0.0 }
 0x1bf   : > { %v874_v17 = vadd.f32 %v873_v5, %v872_v2  ;;  %v912_v33 = vadd.f32 %v911_v16, %v910_v29  ;;  %v770_v20 = vpop.xlane.xlu0 %769 }
 0x1c0   : > { %v788_v28 = vmul.f32 %v1152_v19, %v770_v20  ;;  %v919_v42 = vsel %vm855_vm3, %v851_v27, 0.0 }
 0x1c1   : > { %v876_v25 = vadd.f32 %v875_v21, %v874_v17  ;;  %v914_v7 = vadd.f32 %v913_v22, %v912_v33  ;;  %v836_v6 = vpop.xlane.xlu1 %835 }
 0x1c2   : > { %v881_v43 = vsel %vm855_vm3, %v788_v28, 0.0  ;;  %v853_v44 = vmul.f32 %v1153_v31, %v836_v6 }
 0x1c3   : > { %v878_v11 = vadd.f32 %v877_v26, %v876_v25  ;;  %v916_v30 = vadd.f32 %v915_v4, %v914_v7  ;;  %v772_v32 = vpop.xlane.xlu0 %771 }
 0x1c4   : > { %v789_v36 = vmul.f32 %v1153_v31, %v772_v32  ;;  %v923_v47 = vsel %vm855_vm3, %v853_v44, 0.0 }
 0x1c5   : > { %v918_v37 = vadd.f32 %v917_v34, %v916_v30  ;;  %v880_v38 = vadd.f32 %v879_v35, %v878_v11  ;;  %v834_v39 = vpop.xlane.xlu1 %833 }
 0x1c6   : > { %v852_v45 = vmul.f32 %v1152_v19, %v834_v39  ;;  %v883_v49 = vsel %vm855_vm3, %v789_v36, 0.0 }
 0x1c7   : > { %v920_v46 = vadd.f32 %v919_v42, %v918_v37  ;;  %v882_v48 = vadd.f32 %v881_v43, %v880_v38  ;;  %v774_v41 = vpop.xlane.xlu0 %773 }
 0x1c8   : > { %v921_v50 = vsel %vm855_vm3, %v852_v45, 0.0  ;;  %v790_v51 = vmul.f32 %v1154_v40, %v774_v41 }
 0x1c9   : > { %v922_v52 = vadd.f32 %v921_v50, %v920_v46  ;;  %v838_v53 = vpop.xlane.xlu1 %837  ;;  %v884_v54 = vadd.f32 %v883_v49, %v882_v48 }
 0x1ca   : > { %v854_v24 = vmul.f32 %v1154_v40, %v838_v53  ;;  %v885_v55 = vsel %vm855_vm3, %v790_v51, 0.0 }
 0x1cb   : > { %v886_v56 = vadd.f32 %v885_v55, %v884_v54  ;;  %v924_v57 = vadd.f32 %v923_v47, %v922_v52 }
 0x1cc   : > { %v925_v58 = vsel %vm855_vm3, %v854_v24, 0.0 }
 0x1cd   : > { %887 = vadd.xlane.f32.xlu0 %v886_v56  ;;  %v926_v59 = vadd.f32 %v925_v58, %v924_v57 }
 0x1cf   : > { %927 = vadd.xlane.f32.xlu1 %v926_v59 }
 0x25a   : > { %v888_v60 = vpop.xlane.xlu0 %887 }
 0x25b   : > { %v889_v13 = vrot.slane %v888_v60, 4 }
 0x25c   : > { %v928_v61 = vpop.xlane.xlu1 %927 }
 0x25d   : > { %v890_v62 = vadd.f32 %v889_v13, %v888_v60  ;;  %v929_v63 = vrot.slane %v928_v61, 4 }
 0x25f   : > { %v891_v0 = vrot.slane %v890_v62, 2  ;;  %v930_v1 = vadd.f32 %v929_v63, %v928_v61 }
 0x261   : > { %v931_v9 = vrot.slane %v930_v1, 2  ;;  %v892_v15 = vadd.f32 %v891_v0, %v890_v62 }
 0x263   : > { %v932_v29 = vadd.f32 %v931_v9, %v930_v1  ;;  %v893_v2 = vrot.slane %v892_v15, 1 }
 0x265   : > { %v894_v3 = vadd.f32 %v893_v2, %v892_v15  ;;  %v933_v8 = vrot.slane %v932_v29, 1 }
 0x267   : > { %1323 = vpush %v894_v3  ;;  %v934_v10 = vadd.f32 %v933_v8, %v932_v29 }
 0x269   : > { %1325 = vpush %v934_v10 }
 0x298   : > { %s1324_s29 = spop %1323 }
 0x299   : > { %v936_v12 = vstv %s1324_s29 }
 0x29a   : > { %937 = vst [vmem:[%s314_s28] sm:$0xff] %v936_v12  ;;  %s1326_s30 = spop %1325 }
 0x29b   : > { %v938_v16 = vstv %s1326_s30 }
 0x29c   : > { %939 = vst [vmem:[%s314_s28 + $0x8] sm:$0xff] %v938_v16 }
 0x29d PF: > { %s16_s22 = sadd.s32 1, %s1414_s22   ;;  %s1724_s18 = smov %s1406_s20 }
 0x29e   : > { %p13_p8 = scmp.ge.s32.totalorder %s16_s22, 6   ;;  %s1725_s19 = smov %s1410_s21 }
 0x29f   : > { %s1726_s20 = smov %s1729_s23  ;;  %s1727_s21 = smov %s1733_s24 }
 0x2a0   :  { %15 = sbr.rel (!%p13_p8) target bundleno = 3 (0x3), region = 84 }

// kernel: spatial_ocr_forward.7
= control target key start
LH: loop header
LB: loop body
LE: loop exit
PB: predicated region body
PF: predicated region fallthrough
CT: control target
= control target key end

     0   :  { %s1274_s12 = smov 0   ;;  %s1276_s13 = smov 0   ;;  %s1501_s0 = inlined_call_operand.vmem [shape: bf16[2,256,128], index: 0, kind: input, shape index: {}]   ;;  %s1502_s1 = inlined_call_operand.vmem [shape: bf16[128,128], index: 1, kind: input, shape index: {}]   ;;  %s1503_s2 = inlined_call_operand.vmem [shape: bf16[2,256,128], index: 2, kind: output, shape index: {0}]   ;;  %s1504_s3 = inlined_call_operand.vmem [shape: f32[2,32,128], index: 3, kind: output, shape index: {1}]  }
   0x1   :  { %s1278_s14 = smov 0   ;;  %s1280_s15 = smov 0  }
   0x2   :  { %s1282_s16 = smov 0  }
   0x3 LB: > { %s23_s17 = sadd.s32 1, %s1243_s14  ;;  %s26_s18 = sadd.s32 1, %s1247_s15  ;;  %s1251_s16 = sphi %s1282_s16, %s14_s16   ;;  %s1247_s15 = sphi %s1280_s15, %s1508_s15   ;;  %s1243_s14 = sphi %s1278_s14, %s1507_s14   ;;  %s1239_s13 = sphi %s1276_s13, %s1506_s13   ;;  %s1235_s12 = sphi %s1274_s12, %s1505_s12  }
   0x4   : > { %p24_p0 = scmp.ge.s32.totalorder %s23_s17, 2  ;;  %p964_p1 = scmp.ge.s32.totalorder %s1251_s16, 1 }
   0x5   : > { %p163_p2 = scmp.lt.s32.totalorder %s1251_s16, 5 }
   0x6   : > { %s1510_s17 = smov (%p24_p0, %s23_s17), 0  ;;  %s1512_s18 = smov (!%p24_p0, %s26_s18), %s1247_s15 }
   0x7   : > { %p164_p3 = pnand %p964_p1, %p163_p2  ;;  %p28_p4 = scmp.ge.s32.totalorder %s1512_s18, 2 }
   0x8   : > { %v1197_v0 = vld [vmem:[%s1502_s1] sm:$0xff] (!%p164_p3)   ;;  %s965_s21 = sshll.u32 (!%p164_p3), %s1235_s12, 4  ;;  %v1198_v1 = vld [vmem:[%s1502_s1 + $0x8] sm:$0xff] (!%p164_p3)   ;;  %p205_p5 = scmp.lt.s32.totalorder (!%p164_p3), %s1239_s13, 1  ;;  %v1199_v2 = vld [vmem:[%s1502_s1 + $0x10] sm:$0xff] (!%p164_p3)   ;;  %v540_v59 = vlaneseq (!%p164_p3)  ;;  %vm735_vm3 = vcmask (!%p164_p3), 7168  }
   0x9   : > { %s1514_s18 = smov (%p28_p4, %s1512_s18), 0  ;;  %167 = sbr.rel (%p164_p3) target bundleno = 669 (0x29d), region = 28 }
   0xa   : > { %1104 = vmatprep.subr.bf16.mxu0 (!%p164_p3), %v1197_v0  ;;  %1136 = vmatprep.subr.bf16.mxu1 (!%p164_p3), %v1197_v0  ;;  %p207_p6 = scmp.lt.s32.totalorder (!%p164_p3), %s965_s21, 31  ;;  %v1200_v3 = vld [vmem:[%s1502_s1 + $0x18] sm:$0xff] (!%p164_p3)   ;;  %v1201_v6 = vld [vmem:[%s1502_s1 + $0x20] sm:$0xff] (!%p164_p3)   ;;  %v1202_v7 = vld [vmem:[%s1502_s1 + $0x28] sm:$0xff] (!%p164_p3)   ;;  %v1371_v62 = vshrl.u32 (!%p164_p3), %v540_v59, 7  ;;  %s1006_s25 = sshll.u32 (!%p164_p3), %s1235_s12, 7 }
   0xb   : > { %1105 = vmatpush3.bf16.msra.mxu0 (!%p164_p3), %v1197_v0  ;;  %1144 = vmatpush3.bf16.msra.mxu1 (!%p164_p3), %v1197_v0  ;;  %v1203_v8 = vld [vmem:[%s1502_s1 + $0x30] sm:$0xff] (!%p164_p3)   ;;  %v1204_v9 = vld [vmem:[%s1502_s1 + $0x38] sm:$0xff] (!%p164_p3)  }
   0xc   : > { %1106 = vmatprep.subr.bf16.mxu0 (!%p164_p3), %v1198_v1  ;;  %1137 = vmatprep.subr.bf16.mxu1 (!%p164_p3), %v1198_v1  ;;  %v542_v0 = vadd.s32 (!%p164_p3), 8, %v1371_v62 }
   0xf   : > { %1107 = vmatpush3.bf16.msra.mxu0 (!%p164_p3), %v1198_v1  ;;  %1145 = vmatpush3.bf16.msra.mxu1 (!%p164_p3), %v1198_v1 }
  0x10   : > { %s1516_s13 = smov (!%p205_p5, %s1239_s13), 1  ;;  %s1518_s21 = smov (!%p207_p6, %s965_s21), 31  ;;  %1108 = vmatprep.subr.bf16.mxu0 %v1199_v2  ;;  %1138 = vmatprep.subr.bf16.mxu1 %v1199_v2 }
  0x11   : > { %s966_s26 = sshll.u32 %s1516_s13, 5 }
  0x12   : > { %s1319_s27 = sadd.s32 %s966_s26, %s1518_s21  ;;  %s971_s26 = sshll.u32 %s1235_s12, 1 }
  0x13   : > { %s967_s28 = sshll.u32 %s1319_s27, 2  ;;  %1109 = vmatpush3.bf16.msra.mxu0 %v1199_v2  ;;  %1146 = vmatpush3.bf16.msra.mxu1 %v1199_v2  ;;  %v1377_v2 = vstv %s1006_s25  ;;  %p227_p7 = scmp.lt.s32.totalorder %s971_s26, 3 }
  0x14   : > { %s1330_s6 = scalar_lea.vmem %s1501_s0, %s967_s28  ;;  %1110 = vmatprep.subr.bf16.mxu0 %v1200_v3  ;;  %1139 = vmatprep.subr.bf16.mxu1 %v1200_v3  ;;  %s1357_s24 = scalar_lea.vmem %s1503_s2, %s967_s28 }
  0x15   : > { %v1205_v4 = vld [vmem:[%s1330_s6] sm:$0xff]   ;;  %v1206_v10 = vld [vmem:[%s1330_s6 + $0x8] sm:$0xff]   ;;  %v1209_v12 = vld [vmem:[%s1330_s6 + $0x10] sm:$0xff]   ;;  %s1520_s26 = smov (!%p227_p7, %s971_s26), 3  ;;  %s972_s27 = sshll.u32 %s1516_s13, 2 }
  0x16   : > { %v1207_v5 = vld [vmem:[%s1330_s6 + $0x20] sm:$0xff]   ;;  %1120 = vmatprep.mubr.bf16.mxu0 %v1205_v4  ;;  %v1208_v11 = vld [vmem:[%s1330_s6 + $0x28] sm:$0xff]   ;;  %v1211_v13 = vld [vmem:[%s1330_s6 + $0x30] sm:$0xff]   ;;  %v560_v4 = vadd.s32 %v1377_v2, %v542_v0  ;;  %s230_s28 = sadd.s32 %s972_s27, %s1520_s26 }
  0x17   : > { %1128 = vmatprep.mubr.bf16.mxu1 %v1207_v5  ;;  %1111 = vmatpush3.bf16.msra.mxu0 %v1200_v3  ;;  %v1210_v14 = vld [vmem:[%s1330_s6 + $0x18] sm:$0xff]   ;;  %s973_s29 = sshll.u32 %s230_s28, 3 }
  0x18   : > { %1147 = vmatpush3.bf16.msra.mxu1 %v1200_v3  ;;  %1112 = vmatprep.subr.bf16.mxu0 %v1201_v6  ;;  %v1212_v15 = vld [vmem:[%s1330_s6 + $0x38] sm:$0xff]   ;;  %vm576_vm0 = vcmp.lt.s32.totalorder %v560_v4, 196  ;;  %s232_s5 = scalar_lea.vmem %s1504_s3, %s973_s29 }
  0x19   : > { %1140 = vmatprep.subr.bf16.mxu1 %v1201_v6 }
  0x1b   : > { %1113 = vmatpush3.bf16.msra.mxu0 %v1201_v6 }
  0x1c   : > { %1148 = vmatpush3.bf16.msra.mxu1 %v1201_v6  ;;  %1114 = vmatprep.subr.bf16.mxu0 %v1202_v7  ;;  %v543_v6 = vadd.s32 16, %v1371_v62 }
  0x1d   : > { %1141 = vmatprep.subr.bf16.mxu1 %v1202_v7 }
  0x1f   : > { %1115 = vmatpush3.bf16.msra.mxu0 %v1202_v7 }
  0x20   : > { %1149 = vmatpush3.bf16.msra.mxu1 %v1202_v7  ;;  %1116 = vmatprep.subr.bf16.mxu0 %v1203_v8  ;;  %v559_v7 = vadd.s32 %v1377_v2, %v1371_v62 }
  0x21   : > { %1142 = vmatprep.subr.bf16.mxu1 %v1203_v8 }
  0x22   : > { %vm575_vm1 = vcmp.lt.s32.totalorder %v559_v7, 196 }
  0x23   : > { %1117 = vmatpush3.bf16.msra.mxu0 %v1203_v8 }
  0x24   : > { %1150 = vmatpush3.bf16.msra.mxu1 %v1203_v8  ;;  %1118 = vmatprep.subr.bf16.mxu0 %v1204_v9 }
  0x25   : > { %1143 = vmatprep.subr.bf16.mxu1 %v1204_v9 }
  0x27   : > { %1119 = vmatpush3.bf16.msra.mxu0 %v1204_v9 }
  0x28   : > { %1151 = vmatpush3.bf16.msra.mxu1 %v1204_v9  ;;  %v544_v9 = vadd.s32 24, %v1371_v62 }
  0x2a   : > { %1121 = vmatmul.mubr.bf16.vlgmr.msra.gmra.mrb[0].mxu0 %v1206_v10 }
  0x2b   : > { %1129 = vmatmul.mubr.bf16.vlgmr.msra.gmra.mrb[0].mxu1 %v1208_v11  ;;  %1124 = vmatprep.mubr.bf16.mxu0 %v1209_v12  ;;  %v561_v11 = vadd.s32 %v1377_v2, %v543_v6  ;;  %v545_v12 = vadd.s32 32, %v1371_v62 }
  0x2c   : > { %1132 = vmatprep.mubr.bf16.mxu1 %v1211_v13  ;;  %v1253_v13 = vmov 0.0  }
  0x2d   : > { %vm577_vm2 = vcmp.lt.s32.totalorder %v561_v11, 196 }
  0x32   : > { %1125 = vmatmul.mubr.bf16.gmra.mrb[4].mxu0 %v1210_v14  ;;  %v1008_v14 = vsel %vm576_vm0, 1.0, %v1253_v13 }
  0x33   : > { %1133 = vmatmul.mubr.bf16.gmra.mrb[4].mxu1 %v1212_v15 }
  0xfd   : > { %v1122_v16 = vpop.f32.mrb[0].mxu0 }
  0xfe   : > { %v1130_v17 = vpop.f32.mrb[0].mxu1  ;;  %627 = vadd.xlane.f32.xlu0 %v1122_v16  ;;  %v397_v18 = vpop.f32.mrb[1].mxu0  ;;  %v673_v20 = vmul.f32 %v1122_v16, %v1122_v16 }
  0xff   : > { %v429_v19 = vpop.f32.mrb[1].mxu1  ;;  %v1123_v21 = vpop.f32.mrb[2].mxu0  ;;  %v681_v27 = vmul.f32 %v1130_v17, %v1130_v17  ;;  %v671_v32 = vmul.f32 %v397_v18, %v397_v18 }
 0x100   : > { %v1131_v22 = vpop.f32.mrb[2].mxu1  ;;  %v1049_v23 = vpack.c.bf16 %v1123_v21, %v1122_v16  ;;  %691 = vadd.xlane.f32.xlu1 %v673_v20  ;;  %v400_v25 = vpop.f32.mrb[3].mxu0  ;;  %v679_v43 = vmul.f32 %v429_v19, %v429_v19  ;;  %v674_v44 = vmul.f32 %v1123_v21, %v1123_v21  ;;  %v551_v16 = vadd.s32 80, %v1371_v62 }
 0x101   : > { %v1069_v24 = vpack.c.bf16 %v1131_v22, %v1130_v17  ;;  %v432_v26 = vpop.f32.mrb[3].mxu1  ;;  %v1044_v28 = vpack.c.bf16 %v400_v25, %v397_v18  ;;  %v672_v45 = vmul.f32 %v400_v25, %v400_v25  ;;  %v682_v51 = vmul.f32 %v1131_v22, %v1131_v22 }
 0x102   : > { %v1064_v29 = vpack.c.bf16 %v432_v26, %v429_v19  ;;  %1081 = vst [vmem:[%s1357_s24 + $0x8] sm:$0xff] %v1049_v23   ;;  %643 = vadd.xlane.f32.xlu0 %v1130_v17  ;;  %v680_v46 = vmul.f32 %v432_v26, %v432_v26  ;;  %v1007_v17 = vsel %vm575_vm1, 1.0, %v1253_v13 }
 0x103   : > { %1085 = vst [vmem:[%s1357_s24 + $0x28] sm:$0xff] %v1069_v24   ;;  %1045 = vst [vmem:[%s1357_s24] sm:$0xff] %v1044_v28   ;;  %v547_v24 = vadd.s32 48, %v1371_v62  ;;  %v1009_v28 = vsel %vm577_vm2, 1.0, %v1253_v13 }
 0x104   : > { %1084 = vst [vmem:[%s1357_s24 + $0x20] sm:$0xff] %v1064_v29   ;;  %707 = vadd.xlane.f32.xlu1 %v681_v27  ;;  %v569_v29 = vadd.s32 %v1377_v2, %v551_v16 }
 0x105   : > { %v1126_v30 = vpop.f32.mrb[4].mxu0 }
 0x106   : > { %v1134_v31 = vpop.f32.mrb[4].mxu1  ;;  %623 = vadd.xlane.f32.xlu0 %v397_v18  ;;  %v413_v33 = vpop.f32.mrb[5].mxu0  ;;  %v677_v47 = vmul.f32 %v1126_v30, %v1126_v30  ;;  %v562_v18 = vadd.s32 %v1377_v2, %v544_v9  ;;  %vm585_vm6 = vcmp.lt.s32.totalorder %v569_v29, 196 }
 0x107   : > { %v445_v34 = vpop.f32.mrb[5].mxu1  ;;  %v1127_v35 = vpop.f32.mrb[6].mxu0  ;;  %v675_v48 = vmul.f32 %v413_v33, %v413_v33  ;;  %v685_v53 = vmul.f32 %v1134_v31, %v1134_v31  ;;  %v1421_v59 = vsel %vm585_vm6, 1.0, %v1253_v13 }
 0x108   : > { %v1135_v36 = vpop.f32.mrb[6].mxu1  ;;  %687 = vadd.xlane.f32.xlu1 %v671_v32  ;;  %v1059_v37 = vpack.c.bf16 %v1127_v35, %v1126_v30  ;;  %v416_v38 = vpop.f32.mrb[7].mxu0  ;;  %v678_v49 = vmul.f32 %v1127_v35, %v1127_v35  ;;  %v683_v52 = vmul.f32 %v445_v34, %v445_v34  ;;  %vm578_vm4 = vcmp.lt.s32.totalorder %v562_v18, 196 }
 0x109   : > { %v1079_v39 = vpack.c.bf16 %v1135_v36, %v1134_v31  ;;  %v448_v40 = vpop.f32.mrb[7].mxu1  ;;  %v1054_v41 = vpack.c.bf16 %v416_v38, %v413_v33  ;;  %v676_v50 = vmul.f32 %v416_v38, %v416_v38  ;;  %v686_v55 = vmul.f32 %v1135_v36, %v1135_v36 }
 0x10a   : > { %v1074_v42 = vpack.c.bf16 %v448_v40, %v445_v34  ;;  %639 = vadd.xlane.f32.xlu0 %v429_v19  ;;  %1083 = vst [vmem:[%s1357_s24 + $0x18] sm:$0xff] %v1059_v37   ;;  %v684_v54 = vmul.f32 %v448_v40, %v448_v40  ;;  %v554_v18 = vadd.s32 104, %v1371_v62 }
 0x10b   : > { %1087 = vst [vmem:[%s1357_s24 + $0x38] sm:$0xff] %v1079_v39   ;;  %1082 = vst [vmem:[%s1357_s24 + $0x10] sm:$0xff] %v1054_v41  }
 0x10c   : > { %1086 = vst [vmem:[%s1357_s24 + $0x30] sm:$0xff] %v1074_v42   ;;  %703 = vadd.xlane.f32.xlu1 %v679_v43  ;;  %v552_v42 = vadd.s32 88, %v1371_v62  ;;  %v1010_v43 = vsel %vm578_vm4, 1.0, %v1253_v13 }
 0x10e   : > { %629 = vadd.xlane.f32.xlu0 %v1123_v21  ;;  %v563_v21 = vadd.s32 %v1377_v2, %v545_v12 }
 0x110   : > { %693 = vadd.xlane.f32.xlu1 %v674_v44  ;;  %vm579_vm5 = vcmp.lt.s32.totalorder %v563_v21, 196 }
 0x112   : > { %625 = vadd.xlane.f32.xlu0 %v400_v25  ;;  %v546_v25 = vadd.s32 40, %v1371_v62 }
 0x114   : > { %689 = vadd.xlane.f32.xlu1 %v672_v45 }
 0x116   : > { %641 = vadd.xlane.f32.xlu0 %v432_v26 }
 0x118   : > { %705 = vadd.xlane.f32.xlu1 %v680_v46  ;;  %v1011_v46 = vsel %vm579_vm5, 1.0, %v1253_v13 }
 0x11a   : > { %635 = vadd.xlane.f32.xlu0 %v1126_v30  ;;  %v550_v30 = vadd.s32 72, %v1371_v62 }
 0x11c   : > { %699 = vadd.xlane.f32.xlu1 %v677_v47  ;;  %v568_v45 = vadd.s32 %v1377_v2, %v550_v30 }
 0x11e   : > { %631 = vadd.xlane.f32.xlu0 %v413_v33  ;;  %vm584_vm10 = vcmp.lt.s32.totalorder %v568_v45, 196 }
 0x120   : > { %695 = vadd.xlane.f32.xlu1 %v675_v48 }
 0x122   : > { %637 = vadd.xlane.f32.xlu0 %v1127_v35 }
 0x124   : > { %701 = vadd.xlane.f32.xlu1 %v678_v49 }
 0x126   : > { %633 = vadd.xlane.f32.xlu0 %v416_v38  ;;  %v564_v38 = vadd.s32 %v1377_v2, %v546_v25 }
 0x128   : > { %697 = vadd.xlane.f32.xlu1 %v676_v50  ;;  %vm580_vm8 = vcmp.lt.s32.totalorder %v564_v38, 196 }
 0x129   : > { %v1012_v9 = vsel %vm580_vm8, 1.0, %v1253_v13 }
 0x12a   : > { %645 = vadd.xlane.f32.xlu0 %v1131_v22  ;;  %v549_v22 = vadd.s32 64, %v1371_v62 }
 0x12c   : > { %709 = vadd.xlane.f32.xlu1 %v682_v51  ;;  %v567_v35 = vadd.s32 %v1377_v2, %v549_v22 }
 0x12e   : > { %647 = vadd.xlane.f32.xlu0 %v445_v34  ;;  %v548_v34 = vadd.s32 56, %v1371_v62  ;;  %vm583_vm9 = vcmp.lt.s32.totalorder %v567_v35, 196 }
 0x12f   : > { %v1015_v11 = vsel %vm583_vm9, 1.0, %v1253_v13 }
 0x130   : > { %711 = vadd.xlane.f32.xlu1 %v683_v52  ;;  %v566_v50 = vadd.s32 %v1377_v2, %v548_v34 }
 0x132   : > { %649 = vadd.xlane.f32.xlu0 %v448_v40  ;;  %vm582_vm11 = vcmp.lt.s32.totalorder %v566_v50, 196 }
 0x133   : > { %v1014_v16 = vsel %vm582_vm11, 1.0, %v1253_v13 }
 0x134   : > { %715 = vadd.xlane.f32.xlu1 %v685_v53 }
 0x136   : > { %651 = vadd.xlane.f32.xlu0 %v1134_v31 }
 0x138   : > { %713 = vadd.xlane.f32.xlu1 %v684_v54 }
 0x13a   : > { %653 = vadd.xlane.f32.xlu0 %v1135_v36  ;;  %v565_v36 = vadd.s32 %v1377_v2, %v547_v24 }
 0x13c   : > { %717 = vadd.xlane.f32.xlu1 %v686_v55  ;;  %vm581_vm7 = vcmp.lt.s32.totalorder %v565_v36, 196 }
 0x18b   : > { %v628_v56 = vpop.xlane.xlu0 %627 }
 0x18c   : > { %v657_v39 = vmul.f32 %v1009_v28, %v628_v56  ;;  %v570_v56 = vadd.s32 %v1377_v2, %v552_v42 }
 0x18d   : > { %v692_v57 = vpop.xlane.xlu1 %691 }
 0x18e   : > { %v721_v48 = vmul.f32 %v1009_v28, %v692_v57  ;;  %v739_v53 = vsel %vm735_vm3, %v657_v39, 0.0  ;;  %vm586_vm12 = vcmp.lt.s32.totalorder %v570_v56, 196  ;;  %v555_v39 = vadd.s32 112, %v1371_v62 }
 0x18f   : > { %v1367_v58 = vpop.xlane.xlu0 %643  ;;  %v1018_v28 = vsel %vm586_vm12, 1.0, %v1253_v13 }
 0x191   : > { %v1369_v60 = vpop.xlane.xlu1 %707 }
 0x193   : > { %v624_v61 = vpop.xlane.xlu0 %623 }
 0x194   : > { %v655_v26 = vmul.f32 %v1007_v17, %v624_v61 }
 0x195   : > { %v688_v63 = vpop.xlane.xlu1 %687 }
 0x196   : > { %v719_v32 = vmul.f32 %v1007_v17, %v688_v63  ;;  %v736_v40 = vsel %vm735_vm3, %v655_v26, 0.0  ;;  %v779_v63 = vsel %vm735_vm3, %v721_v48, 0.0 }
 0x197   : > { %v1375_v1 = vpop.xlane.xlu0 %639 }
 0x198   : > { %v776_v49 = vsel %vm735_vm3, %v719_v32, 0.0 }
 0x199   : > { %v1379_v3 = vpop.xlane.xlu1 %703 }
 0x19b   : > { %v630_v5 = vpop.xlane.xlu0 %629 }
 0x19c   : > { %v658_v54 = vmul.f32 %v1010_v43, %v630_v5  ;;  %v1013_v5 = vsel %vm581_vm7, 1.0, %v1253_v13 }
 0x19d   : > { %v1385_v8 = vpop.xlane.xlu1 %693 }
 0x19e   : > { %v722_v0 = vmul.f32 %v1010_v43, %v1385_v8  ;;  %v741_v12 = vsel %vm735_vm3, %v658_v54, 0.0  ;;  %v1016_v8 = vsel %vm584_vm10, 1.0, %v1253_v13  ;;  %v665_v54 = vmul.f32 %v1421_v59, %v1367_v58 }
 0x19f   : > { %v626_v10 = vpop.xlane.xlu0 %625 }
 0x1a0   : > { %v656_v20 = vmul.f32 %v1008_v14, %v626_v10  ;;  %v553_v10 = vadd.s32 96, %v1371_v62 }
 0x1a1   : > { %v690_v15 = vpop.xlane.xlu1 %689 }
 0x1a2   : > { %v720_v27 = vmul.f32 %v1008_v14, %v690_v15  ;;  %v737_v33 = vsel %vm735_vm3, %v656_v20, 0.0  ;;  %v781_v20 = vsel %vm735_vm3, %v722_v0, 0.0  ;;  %v571_v29 = vadd.s32 %v1377_v2, %v553_v10 }
 0x1a3   : > { %v1394_v19 = vpop.xlane.xlu0 %641  ;;  %v738_v44 = vadd.f32 %v737_v33, %v736_v40  ;;  %v663_v40 = vmul.f32 %v1015_v11, %v1375_v1  ;;  %v729_v0 = vmul.f32 %v1421_v59, %v1369_v60  ;;  %v755_v10 = vsel %vm735_vm3, %v665_v54, 0.0 }
 0x1a4   : > { %v777_v41 = vsel %vm735_vm3, %v720_v27, 0.0  ;;  %vm587_vm13 = vcmp.lt.s32.totalorder %v571_v29, 196  ;;  %v664_v48 = vmul.f32 %v1016_v8, %v1394_v19 }
 0x1a5   : > { %v1398_v23 = vpop.xlane.xlu1 %705  ;;  %v778_v51 = vadd.f32 %v777_v41, %v776_v49  ;;  %v740_v57 = vadd.f32 %v739_v53, %v738_v44  ;;  %v573_v53 = vadd.s32 %v1377_v2, %v555_v39 }
 0x1a6   : > { %v753_v58 = vsel %vm735_vm3, %v664_v48, 0.0 }
 0x1a7   : > { %v636_v31 = vpop.xlane.xlu0 %635  ;;  %v780_v6 = vadd.f32 %v779_v63, %v778_v51  ;;  %v742_v15 = vadd.f32 %v741_v12, %v740_v57  ;;  %v1019_v57 = vsel %vm587_vm13, 1.0, %v1253_v13  ;;  %vm589_vm15 = vcmp.lt.s32.totalorder %v573_v53, 196 }
 0x1a8   : > { %v661_v21 = vmul.f32 %v1013_v5, %v636_v31  ;;  %v572_v31 = vadd.s32 %v1377_v2, %v554_v18 }
 0x1a9   : > { %v700_v37 = vpop.xlane.xlu1 %699  ;;  %v782_v26 = vadd.f32 %v781_v20, %v780_v6 }
 0x1aa   : > { %v725_v30 = vmul.f32 %v1013_v5, %v700_v37  ;;  %v747_v41 = vsel %vm735_vm3, %v661_v21, 0.0  ;;  %vm588_vm14 = vcmp.lt.s32.totalorder %v572_v31, 196  ;;  %v1021_v21 = vsel %vm589_vm15, 1.0, %v1253_v13 }
 0x1ab   : > { %v632_v47 = vpop.xlane.xlu0 %631 }
 0x1ac   : > { %v659_v55 = vmul.f32 %v1011_v46, %v632_v47  ;;  %v727_v47 = vmul.f32 %v1015_v11, %v1379_v3  ;;  %v787_v49 = vsel %vm735_vm3, %v725_v30, 0.0 }
 0x1ad   : > { %v696_v52 = vpop.xlane.xlu1 %695 }
 0x1ae   : > { %v723_v4 = vmul.f32 %v1011_v46, %v696_v52  ;;  %v743_v14 = vsel %vm735_vm3, %v659_v55, 0.0  ;;  %v556_v46 = vadd.s32 120, %v1371_v62  ;;  %v751_v55 = vsel %vm735_vm3, %v663_v40, 0.0 }
 0x1af   : > { %v638_v61 = vpop.xlane.xlu0 %637  ;;  %v744_v25 = vadd.f32 %v743_v14, %v742_v15  ;;  %v728_v62 = vmul.f32 %v1016_v8, %v1398_v23  ;;  %v795_v8 = vsel %vm735_vm3, %v729_v0, 0.0 }
 0x1b0   : > { %v783_v22 = vsel %vm735_vm3, %v723_v4, 0.0  ;;  %v662_v32 = vmul.f32 %v1014_v16, %v638_v61  ;;  %v574_v63 = vadd.s32 %v1377_v2, %v556_v46  ;;  %v791_v4 = vsel %vm735_vm3, %v727_v47, 0.0 }
 0x1b1   : > { %v702_v7 = vpop.xlane.xlu1 %701  ;;  %v784_v35 = vadd.f32 %v783_v22, %v782_v26  ;;  %v793_v11 = vsel %vm735_vm3, %v728_v62, 0.0 }
 0x1b2   : > { %v726_v42 = vmul.f32 %v1014_v16, %v702_v7  ;;  %v749_v50 = vsel %vm735_vm3, %v662_v32, 0.0  ;;  %v1020_v7 = vsel %vm588_vm14, 1.0, %v1253_v13  ;;  %vm590_vm0 = vcmp.lt.s32.totalorder %v574_v63, 196 }
 0x1b3   : > { %v634_v17 = vpop.xlane.xlu0 %633  ;;  %v1022_v30 = vsel %vm590_vm0, 1.0, %v1253_v13 }
 0x1b4   : > { %v660_v24 = vmul.f32 %v1012_v9, %v634_v17  ;;  %v789_v3 = vsel %vm735_vm3, %v726_v42, 0.0 }
 0x1b5   : > { %v698_v27 = vpop.xlane.xlu1 %697 }
 0x1b6   : > { %v745_v33 = vsel %vm735_vm3, %v660_v24, 0.0  ;;  %v724_v34 = vmul.f32 %v1012_v9, %v698_v27 }
 0x1b7   : > { %v746_v36 = vadd.f32 %v745_v33, %v744_v25  ;;  %v646_v38 = vpop.xlane.xlu0 %645 }
 0x1b8   : > { %v785_v43 = vsel %vm735_vm3, %v724_v34, 0.0  ;;  %v666_v6 = vmul.f32 %v1018_v28, %v646_v38 }
 0x1b9   : > { %v748_v44 = vadd.f32 %v747_v41, %v746_v36  ;;  %v786_v37 = vadd.f32 %v785_v43, %v784_v35  ;;  %v710_v45 = vpop.xlane.xlu1 %709 }
 0x1ba   : > { %v730_v2 = vmul.f32 %v1018_v28, %v710_v45  ;;  %v757_v15 = vsel %vm735_vm3, %v666_v6, 0.0 }
 0x1bb   : > { %v750_v1 = vadd.f32 %v749_v50, %v748_v44  ;;  %v788_v51 = vadd.f32 %v787_v49, %v786_v37  ;;  %v648_v52 = vpop.xlane.xlu0 %647 }
 0x1bc   : > { %v667_v12 = vmul.f32 %v1019_v57, %v648_v52  ;;  %v797_v24 = vsel %vm735_vm3, %v730_v2, 0.0 }
 0x1bd   : > { %v790_v19 = vadd.f32 %v789_v3, %v788_v51  ;;  %v752_v56 = vadd.f32 %v751_v55, %v750_v1  ;;  %v712_v61 = vpop.xlane.xlu1 %711 }
 0x1be   : > { %v731_v16 = vmul.f32 %v1019_v57, %v712_v61  ;;  %v759_v25 = vsel %vm735_vm3, %v667_v12, 0.0 }
 0x1bf   : > { %v754_v5 = vadd.f32 %v753_v58, %v752_v56  ;;  %v792_v23 = vadd.f32 %v791_v4, %v790_v19  ;;  %v650_v9 = vpop.xlane.xlu0 %649 }
 0x1c0   : > { %v668_v17 = vmul.f32 %v1020_v7, %v650_v9  ;;  %v799_v32 = vsel %vm735_vm3, %v731_v16, 0.0 }
 0x1c1   : > { %v756_v14 = vadd.f32 %v755_v10, %v754_v5  ;;  %v794_v60 = vadd.f32 %v793_v11, %v792_v23  ;;  %v716_v59 = vpop.xlane.xlu1 %715 }
 0x1c2   : > { %v761_v33 = vsel %vm735_vm3, %v668_v17, 0.0  ;;  %v733_v34 = vmul.f32 %v1021_v21, %v716_v59 }
 0x1c3   : > { %v758_v18 = vadd.f32 %v757_v15, %v756_v14  ;;  %v796_v20 = vadd.f32 %v795_v8, %v794_v60  ;;  %v652_v22 = vpop.xlane.xlu0 %651 }
 0x1c4   : > { %v669_v26 = vmul.f32 %v1021_v21, %v652_v22  ;;  %v803_v37 = vsel %vm735_vm3, %v733_v34, 0.0 }
 0x1c5   : > { %v798_v27 = vadd.f32 %v797_v24, %v796_v20  ;;  %v760_v28 = vadd.f32 %v759_v25, %v758_v18  ;;  %v714_v29 = vpop.xlane.xlu1 %713 }
 0x1c6   : > { %v732_v35 = vmul.f32 %v1020_v7, %v714_v29  ;;  %v763_v39 = vsel %vm735_vm3, %v669_v26, 0.0 }
 0x1c7   : > { %v800_v36 = vadd.f32 %v799_v32, %v798_v27  ;;  %v762_v38 = vadd.f32 %v761_v33, %v760_v28  ;;  %v654_v31 = vpop.xlane.xlu0 %653 }
 0x1c8   : > { %v801_v40 = vsel %vm735_vm3, %v732_v35, 0.0  ;;  %v670_v41 = vmul.f32 %v1022_v30, %v654_v31 }
 0x1c9   : > { %v802_v42 = vadd.f32 %v801_v40, %v800_v36  ;;  %v718_v43 = vpop.xlane.xlu1 %717  ;;  %v764_v44 = vadd.f32 %v763_v39, %v762_v38 }
 0x1ca   : > { %v734_v13 = vmul.f32 %v1022_v30, %v718_v43  ;;  %v765_v45 = vsel %vm735_vm3, %v670_v41, 0.0 }
 0x1cb   : > { %v766_v46 = vadd.f32 %v765_v45, %v764_v44  ;;  %v804_v47 = vadd.f32 %v803_v37, %v802_v42 }
 0x1cc   : > { %v805_v48 = vsel %vm735_vm3, %v734_v13, 0.0 }
 0x1cd   : > { %767 = vadd.xlane.f32.xlu0 %v766_v46  ;;  %v806_v49 = vadd.f32 %v805_v48, %v804_v47 }
 0x1cf   : > { %807 = vadd.xlane.f32.xlu1 %v806_v49 }
 0x25a   : > { %v768_v50 = vpop.xlane.xlu0 %767 }
 0x25b   : > { %v769_v1 = vrot.slane %v768_v50, 4 }
 0x25c   : > { %v808_v51 = vpop.xlane.xlu1 %807 }
 0x25d   : > { %v770_v52 = vadd.f32 %v769_v1, %v768_v50  ;;  %v809_v53 = vrot.slane %v808_v51, 4 }
 0x25f   : > { %v771_v54 = vrot.slane %v770_v52, 2  ;;  %v810_v55 = vadd.f32 %v809_v53, %v808_v51 }
 0x261   : > { %v811_v62 = vrot.slane %v810_v55, 2  ;;  %v772_v3 = vadd.f32 %v771_v54, %v770_v52 }
 0x263   : > { %v812_v19 = vadd.f32 %v811_v62, %v810_v55  ;;  %v773_v56 = vrot.slane %v772_v3, 1 }
 0x265   : > { %v774_v57 = vadd.f32 %v773_v56, %v772_v3  ;;  %v813_v61 = vrot.slane %v812_v19, 1 }
 0x267   : > { %1152 = vpush %v774_v57  ;;  %v814_v63 = vadd.f32 %v813_v61, %v812_v19 }
 0x269   : > { %1154 = vpush %v814_v63 }
 0x298   : > { %s1153_s6 = spop %1152 }
 0x299   : > { %v816_v0 = vstv %s1153_s6 }
 0x29a   : > { %817 = vst [vmem:[%s232_s5] sm:$0xff] %v816_v0  ;;  %s1155_s7 = spop %1154 }
 0x29b   : > { %v818_v4 = vstv %s1155_s7 }
 0x29c   : > { %819 = vst [vmem:[%s232_s5 + $0x8] sm:$0xff] %v818_v4 }
 0x29d PF: > { %s14_s16 = sadd.s32 1, %s1251_s16   ;;  %s1505_s12 = smov %s1243_s14 }
 0x29e   : > { %p11_p8 = scmp.ge.s32.totalorder %s14_s16, 6   ;;  %s1506_s13 = smov %s1247_s15 }
 0x29f   : > { %s1507_s14 = smov %s1510_s17  ;;  %s1508_s15 = smov %s1514_s18 }
 0x2a0   :  { %13 = sbr.rel (!%p11_p8) target bundleno = 3 (0x3), region = 70 }

// kernel: spatial_ocr_forward.9
= control target key start
LH: loop header
LB: loop body
LE: loop exit
PB: predicated region body
PF: predicated region fallthrough
CT: control target
= control target key end

     0   :  { %s2276_s24 = smov 0   ;;  %s2278_s25 = smov 0   ;;  %s2730_s0 = inlined_call_operand.vmem [shape: bf16[2,256,128], index: 0, kind: input, shape index: {}]   ;;  %s2731_s1 = inlined_call_operand.vmem [shape: f32[2,1,128], index: 1, kind: input, shape index: {}]   ;;  %s2732_s2 = inlined_call_operand.vmem [shape: f32[2,1,128], index: 2, kind: input, shape index: {}]   ;;  %s2733_s3 = inlined_call_operand.vmem [shape: bf16[2,128,128], index: 3, kind: input, shape index: {}]   ;;  %s2734_s4 = inlined_call_operand.vmem [shape: bf16[2,128,128], index: 4, kind: input, shape index: {}]   ;;  %s2735_s5 = inlined_call_operand.vmem [shape: bf16[128,128], index: 5, kind: input, shape index: {}]   ;;  %s2736_s6 = inlined_call_operand.vmem [shape: bf16[2,256,128], index: 6, kind: output, shape index: {0}]   ;;  %s2737_s7 = inlined_call_operand.vmem [shape: f32[2,32,128], index: 7, kind: output, shape index: {1}]  }
   0x1   :  { %s2280_s26 = smov 0   ;;  %s2282_s27 = smov 0  }
   0x2   :  { %s2284_s28 = smov 0  }
   0x3 LB: > { %s27_s29 = sadd.s32 1, %s2225_s26  ;;  %s30_s30 = sadd.s32 1, %s2229_s27  ;;  %s2233_s28 = sphi %s2284_s28, %s18_s28   ;;  %s2229_s27 = sphi %s2282_s27, %s2741_s27   ;;  %s2225_s26 = sphi %s2280_s26, %s2740_s26   ;;  %s2221_s25 = sphi %s2278_s25, %s2739_s25   ;;  %s2217_s24 = sphi %s2276_s24, %s2738_s24  }
   0x4   : > { %p28_p0 = scmp.ge.s32.totalorder %s27_s29, 2  ;;  %p1723_p1 = scmp.ge.s32.totalorder %s2233_s28, 1 }
   0x5   : > { %p299_p2 = scmp.lt.s32.totalorder %s2233_s28, 5 }
   0x6   : > { %s2743_s29 = smov (%p28_p0, %s27_s29), 0  ;;  %s2745_s30 = smov (!%p28_p0, %s30_s30), %s2229_s27 }
   0x7   : > { %p300_p3 = pnand %p1723_p1, %p299_p2  ;;  %p32_p4 = scmp.ge.s32.totalorder %s2745_s30, 2 }
   0x8   : > { %p365_p5 = scmp.lt.s32.totalorder (!%p300_p3), %s2221_s25, 1  ;;  %s1724_s8 = sshll.u32 (!%p300_p3), %s2217_s24, 4  ;;  %vm1452_vm5 = vcmask (!%p300_p3), 7168  }
   0x9   : > { %s2747_s30 = smov (%p32_p4, %s2745_s30), 0  ;;  %303 = sbr.rel (%p300_p3) target bundleno = 1433 (0x599), region = 44 }
   0xa   : > { %p367_p6 = scmp.lt.s32.totalorder (!%p300_p3), %s1724_s8, 31 }
  0x10   : > { %s2749_s25 = smov (!%p365_p5, %s2221_s25), 1  ;;  %s2751_s8 = smov (!%p367_p6, %s1724_s8), 31 }
  0x11   : > { %s1798_s9 = sshll.u32 %s2749_s25, 6  ;;  %s1725_s10 = sshll.u32 %s2749_s25, 5 }
  0x12   : > { %s2318_s13 = scalar_lea.vmem %s2733_s3, %s1798_s9  ;;  %s2320_s14 = sadd.s32 %s1725_s10, %s2751_s8 }
  0x13   : > { %v2107_v0 = vld [vmem:[%s2318_s13] sm:$0xff]   ;;  %v2108_v1 = vld [vmem:[%s2318_s13 + $0x8] sm:$0xff]   ;;  %s1726_s15 = sshll.u32 %s2320_s14, 2  ;;  %v2109_v2 = vld [vmem:[%s2318_s13 + $0x10] sm:$0xff]   ;;  %s376_s21 = scalar_lea.vmem %s2731_s1, %s2749_s25 }
  0x14   : > { %1950 = vmatprep.subr.bf16.mxu0 %v2107_v0  ;;  %s2331_s18 = scalar_lea.vmem %s2730_s0, %s1726_s15  ;;  %s379_s8 = scalar_lea.vmem %s2732_s2, %s2749_s25  ;;  %v2110_v3 = vld [vmem:[%s2318_s13 + $0x18] sm:$0xff]   ;;  %v2343_v5 = vld [vmem:[%s376_s21] ss:$0 sm:$0xff]  ;;  %v2112_v22 = vld [vmem:[%s2318_s13 + $0x28] sm:$0xff]  }
  0x15   : > { %1951 = vmatpush3.bf16.msra.mxu0 %v2107_v0  ;;  %v1817_v4 = vld [vmem:[%s2331_s18] sm:$0xff]   ;;  %v1888_v9 = vld [vmem:[%s2331_s18 + $0x8] sm:$0xff]   ;;  %v1889_v12 = vld [vmem:[%s2331_s18 + $0x10] sm:$0xff]   ;;  %s2448_s12 = scalar_lea.vmem %s2734_s4, %s1798_s9  ;;  %s1779_s14 = sshll.u32 %s2217_s24, 7 }
  0x16   : > { %1952 = vmatprep.subr.bf16.mxu0 %v2108_v1  ;;  %v1818_v6 = vunpack.c.l.bf16 %v1817_v4  ;;  %v1819_v7 = vunpack.c.h.bf16 %v1817_v4  ;;  %v2345_v8 = vld [vmem:[%s379_s8] ss:$0 sm:$0xff]  ;;  %v1822_v16 = vunpack.c.l.bf16 %v1888_v9  ;;  %v1823_v17 = vunpack.c.h.bf16 %v1888_v9  ;;  %v1890_v28 = vld [vmem:[%s2331_s18 + $0x18] sm:$0xff]   ;;  %v2113_v29 = vld [vmem:[%s2318_s13 + $0x30] sm:$0xff]   ;;  %s1735_s19 = sshll.u32 %s2749_s25, 2 }
  0x17   : > { %v2111_v13 = vld [vmem:[%s2318_s13 + $0x20] sm:$0xff]   ;;  %v1826_v18 = vunpack.c.l.bf16 %v1889_v12  ;;  %v1827_v19 = vunpack.c.h.bf16 %v1889_v12  ;;  %v1830_v31 = vunpack.c.l.bf16 %v1890_v28  ;;  %v1831_v32 = vunpack.c.h.bf16 %v1890_v28  ;;  %v2114_v39 = vld [vmem:[%s2318_s13 + $0x38] sm:$0xff]   ;;  %v1892_v48 = vld [vmem:[%s2331_s18 + $0x28] sm:$0xff]  }
  0x18   : > { %v450_v10 = vmul.f32 %v1818_v6, %v2343_v5  ;;  %v451_v11 = vmul.f32 %v1819_v7, %v2343_v5  ;;  %v452_v24 = vmul.f32 %v1822_v16, %v2343_v5  ;;  %v453_v25 = vmul.f32 %v1823_v17, %v2343_v5  ;;  %v1891_v30 = vld [vmem:[%s2331_s18 + $0x20] sm:$0xff]   ;;  %v1893_v49 = vld [vmem:[%s2331_s18 + $0x30] sm:$0xff]   ;;  %v1894_v4 = vld [vmem:[%s2331_s18 + $0x38] sm:$0xff]   ;;  %s2605_s18 = scalar_lea.vmem %s2736_s6, %s1726_s15  ;;  %s1734_s15 = sshll.u32 %s2217_s24, 1 }
  0x19   : > { %1953 = vmatpush3.bf16.msra.mxu0 %v2108_v1  ;;  %v454_v26 = vmul.f32 %v1826_v18, %v2343_v5  ;;  %v455_v27 = vmul.f32 %v1827_v19, %v2343_v5  ;;  %v1834_v37 = vunpack.c.l.bf16 %v1891_v30  ;;  %v1835_v38 = vunpack.c.h.bf16 %v1891_v30  ;;  %p403_p7 = scmp.lt.s32.totalorder %s1734_s15, 3 }
  0x1a   : > { %1954 = vmatprep.subr.bf16.mxu0 %v2109_v2  ;;  %v473_v14 = vadd.f32 %v2345_v8, %v450_v10  ;;  %v474_v15 = vadd.f32 %v2345_v8, %v451_v11  ;;  %v475_v33 = vadd.f32 %v2345_v8, %v452_v24  ;;  %v476_v34 = vadd.f32 %v2345_v8, %v453_v25 }
  0x1b   : > { %v477_v35 = vadd.f32 %v2345_v8, %v454_v26  ;;  %v478_v36 = vadd.f32 %v2345_v8, %v455_v27  ;;  %v456_v40 = vmul.f32 %v1830_v31, %v2343_v5  ;;  %v457_v41 = vmul.f32 %v1831_v32, %v2343_v5  ;;  %s2753_s15 = smov (!%p403_p7, %s1734_s15), 3 }
  0x1c   : > { %v489_v20 = vmax.f32 %v473_v14, 0.0  ;;  %v490_v21 = vmax.f32 %v474_v15, 0.0  ;;  %v491_v42 = vmax.f32 %v475_v33, 0.0  ;;  %v492_v43 = vmax.f32 %v476_v34, 0.0  ;;  %s406_s20 = sadd.s32 %s1735_s19, %s2753_s15 }
  0x1d   : > { %1955 = vmatpush3.bf16.msra.mxu0 %v2109_v2  ;;  %v493_v44 = vmax.f32 %v477_v35, 0.0  ;;  %v494_v45 = vmax.f32 %v478_v36, 0.0  ;;  %v458_v46 = vmul.f32 %v1834_v37, %v2343_v5  ;;  %v459_v47 = vmul.f32 %v1835_v38, %v2343_v5  ;;  %s1736_s21 = sshll.u32 %s406_s20, 3 }
  0x1e   : > { %1956 = vmatprep.subr.bf16.mxu0 %v2110_v3  ;;  %v505_v23 = vpack.c.bf16 %v490_v21, %v489_v20  ;;  %v479_v50 = vadd.f32 %v2345_v8, %v456_v40  ;;  %v480_v51 = vadd.f32 %v2345_v8, %v457_v41  ;;  %v506_v52 = vpack.c.bf16 %v492_v43, %v491_v42  ;;  %s408_s8 = scalar_lea.vmem %s2737_s7, %s1736_s21 }
  0x1f   : > { %v507_v53 = vpack.c.bf16 %v494_v45, %v493_v44  ;;  %v1838_v54 = vunpack.c.l.bf16 %v1892_v48  ;;  %v1839_v55 = vunpack.c.h.bf16 %v1892_v48  ;;  %v481_v56 = vadd.f32 %v2345_v8, %v458_v46 }
  0x20   : > { %1966 = vmatprep.mubr.bf16.mxu0 %v505_v23  ;;  %v482_v57 = vadd.f32 %v2345_v8, %v459_v47  ;;  %v1842_v58 = vunpack.c.l.bf16 %v1893_v49  ;;  %v1843_v59 = vunpack.c.h.bf16 %v1893_v49  ;;  %v495_v60 = vmax.f32 %v479_v50, 0.0 }
  0x21   : > { %1957 = vmatpush3.bf16.msra.mxu0 %v2110_v3  ;;  %v496_v61 = vmax.f32 %v480_v51, 0.0  ;;  %v460_v62 = vmul.f32 %v1838_v54, %v2343_v5  ;;  %v461_v63 = vmul.f32 %v1839_v55, %v2343_v5  ;;  %v497_v0 = vmax.f32 %v481_v56, 0.0 }
  0x22   : > { %1958 = vmatprep.subr.bf16.mxu0 %v2111_v13  ;;  %v498_v1 = vmax.f32 %v482_v57, 0.0  ;;  %v462_v2 = vmul.f32 %v1842_v58, %v2343_v5  ;;  %v463_v3 = vmul.f32 %v1843_v59, %v2343_v5  ;;  %v1846_v10 = vunpack.c.l.bf16 %v1894_v4 }
  0x23   : > { %v508_v6 = vpack.c.bf16 %v496_v61, %v495_v60  ;;  %v483_v7 = vadd.f32 %v2345_v8, %v460_v62  ;;  %v484_v9 = vadd.f32 %v2345_v8, %v461_v63  ;;  %v1847_v11 = vunpack.c.h.bf16 %v1894_v4  ;;  %v2115_v60 = vld [vmem:[%s2448_s12] sm:$0xff]   ;;  %v2116_v61 = vld [vmem:[%s2448_s12 + $0x8] sm:$0xff]   ;;  %v2117_v62 = vld [vmem:[%s2448_s12 + $0x10] sm:$0xff]  }
  0x24   : > { %v509_v12 = vpack.c.bf16 %v498_v1, %v497_v0  ;;  %v486_v14 = vadd.f32 %v2345_v8, %v463_v3  ;;  %v464_v17 = vmul.f32 %v1846_v10, %v2343_v5  ;;  %v674_v28 = vlaneseq  ;;  %1982 = vmatprep.subr.bf16.mxu1 %v2115_v60 }
  0x25   : > { %1959 = vmatpush3.bf16.msra.mxu0 %v2111_v13  ;;  %v485_v13 = vadd.f32 %v2345_v8, %v462_v2  ;;  %v499_v15 = vmax.f32 %v483_v7, 0.0  ;;  %v500_v16 = vmax.f32 %v484_v9, 0.0  ;;  %v465_v18 = vmul.f32 %v1847_v11, %v2343_v5  ;;  %1983 = vmatpush3.bf16.msra.mxu1 %v2115_v60 }
  0x26   : > { %1960 = vmatprep.subr.bf16.mxu0 %v2112_v22  ;;  %v502_v20 = vmax.f32 %v486_v14, 0.0  ;;  %1984 = vmatprep.subr.bf16.mxu1 %v2116_v61 }
  0x27   : > { %v501_v19 = vmax.f32 %v485_v13, 0.0  ;;  %v510_v21 = vpack.c.bf16 %v500_v16, %v499_v15  ;;  %v488_v23 = vadd.f32 %v2345_v8, %v465_v18 }
  0x29   : > { %1961 = vmatpush3.bf16.msra.mxu0 %v2112_v22  ;;  %v487_v22 = vadd.f32 %v2345_v8, %v464_v17  ;;  %v511_v24 = vpack.c.bf16 %v502_v20, %v501_v19  ;;  %v504_v26 = vmax.f32 %v488_v23, 0.0  ;;  %1985 = vmatpush3.bf16.msra.mxu1 %v2116_v61  ;;  %v2119_v61 = vld [vmem:[%s2448_s12 + $0x20] sm:$0xff]  }
  0x2a   : > { %1962 = vmatprep.subr.bf16.mxu0 %v2113_v29  ;;  %1986 = vmatprep.subr.bf16.mxu1 %v2117_v62 }
  0x2b   : > { %v503_v25 = vmax.f32 %v487_v22, 0.0 }
  0x2d   : > { %1963 = vmatpush3.bf16.msra.mxu0 %v2113_v29  ;;  %v512_v27 = vpack.c.bf16 %v504_v26, %v503_v25  ;;  %v675_v29 = vand.u32 127, %v674_v28  ;;  %1987 = vmatpush3.bf16.msra.mxu1 %v2117_v62 }
  0x2e   : > { %1964 = vmatprep.subr.bf16.mxu0 %v2114_v39 }
  0x2f   : > { %vm676_vm0 = vcmp.lt.s32.totalorder %v675_v29, 8 }
  0x31   : > { %1965 = vmatpush3.bf16.msra.mxu0 %v2114_v39 }
  0x34   : > { %1967 = vmatmul.mubr.bf16.vlgmr.msra.gmra.mrb[0].mxu0 %v506_v52 }
  0x35   : > { %1970 = vmatprep.mubr.bf16.mxu0 %v507_v53 }
  0x3c   : > { %1971 = vmatmul.mubr.bf16.gmra.mrb[4].mxu0 %v508_v6 }
  0x3d   : > { %1974 = vmatprep.mubr.bf16.mxu0 %v509_v12 }
  0x44   : > { %1975 = vmatmul.mubr.bf16.gmra.mrb[8].mxu0 %v510_v21 }
  0x45   : > { %1978 = vmatprep.mubr.bf16.mxu0 %v511_v24 }
  0x4c   : > { %1979 = vmatmul.mubr.bf16.gmra.mrb[12].mxu0 %v512_v27 }
 0x107   : > { %v1968_v5 = vpop.f32.mrb[0].mxu0 }
 0x108   : > { %v611_v30 = vpop.f32.mrb[1].mxu0  ;;  %v681_v31 = vsel %vm676_vm0, %v1968_v5, -1e+30 }
 0x109   : > { %699 = vmax.xlane.f32.xlu1 %v681_v31  ;;  %v1969_v32 = vpop.f32.mrb[2].mxu0  ;;  %v679_v33 = vsel %vm676_vm0, %v611_v30, -1e+30 }
 0x10a   : > { %695 = vmax.xlane.f32.xlu0 %v679_v33  ;;  %v614_v8 = vpop.f32.mrb[3].mxu0  ;;  %v2394_v34 = vsel %vm676_vm0, %v1969_v32, -1e+30 }
 0x10b   : > { %v680_v35 = vsel %vm676_vm0, %v614_v8, -1e+30 }
 0x10d   : > { %701 = vmax.xlane.f32.xlu1 %v2394_v34 }
 0x10e   : > { %697 = vmax.xlane.f32.xlu0 %v680_v35 }
 0x10f   : > { %v1972_v36 = vpop.f32.mrb[4].mxu0 }
 0x110   : > { %v627_v37 = vpop.f32.mrb[5].mxu0  ;;  %v2403_v42 = vsel %vm676_vm0, %v1972_v36, -1e+30 }
 0x111   : > { %v1973_v38 = vpop.f32.mrb[6].mxu0  ;;  %v683_v39 = vsel %vm676_vm0, %v627_v37, -1e+30 }
 0x112   : > { %703 = vmax.xlane.f32.xlu0 %v683_v39  ;;  %v630_v40 = vpop.f32.mrb[7].mxu0  ;;  %v2407_v43 = vsel %vm676_vm0, %v1973_v38, -1e+30 }
 0x113   : > { %v2400_v41 = vsel %vm676_vm0, %v630_v40, -1e+30 }
 0x114   : > { %705 = vmax.xlane.f32.xlu1 %v2400_v41 }
 0x116   : > { %707 = vmax.xlane.f32.xlu0 %v2403_v42 }
 0x117   : > { %v1976_v44 = vpop.f32.mrb[8].mxu0 }
 0x118   : > { %709 = vmax.xlane.f32.xlu1 %v2407_v43  ;;  %v643_v45 = vpop.f32.mrb[9].mxu0  ;;  %v2419_v50 = vsel %vm676_vm0, %v1976_v44, -1e+30 }
 0x119   : > { %v1977_v46 = vpop.f32.mrb[10].mxu0  ;;  %v2412_v47 = vsel %vm676_vm0, %v643_v45, -1e+30 }
 0x11a   : > { %711 = vmax.xlane.f32.xlu0 %v2412_v47  ;;  %v646_v48 = vpop.f32.mrb[11].mxu0  ;;  %v2423_v51 = vsel %vm676_vm0, %v1977_v46, -1e+30 }
 0x11b   : > { %v2416_v49 = vsel %vm676_vm0, %v646_v48, -1e+30 }
 0x11c   : > { %713 = vmax.xlane.f32.xlu1 %v2416_v49 }
 0x11e   : > { %715 = vmax.xlane.f32.xlu0 %v2419_v50 }
 0x11f   : > { %v1980_v52 = vpop.f32.mrb[12].mxu0 }
 0x120   : > { %717 = vmax.xlane.f32.xlu1 %v2423_v51  ;;  %v659_v53 = vpop.f32.mrb[13].mxu0  ;;  %v2435_v58 = vsel %vm676_vm0, %v1980_v52, -1e+30 }
 0x121   : > { %v1981_v54 = vpop.f32.mrb[14].mxu0  ;;  %v2428_v55 = vsel %vm676_vm0, %v659_v53, -1e+30  ;;  %v2118_v53 = vld [vmem:[%s2448_s12 + $0x18] sm:$0xff]  }
 0x122   : > { %719 = vmax.xlane.f32.xlu0 %v2428_v55  ;;  %v662_v56 = vpop.f32.mrb[15].mxu0  ;;  %v2439_v59 = vsel %vm676_vm0, %v1981_v54, -1e+30  ;;  %1988 = vmatprep.subr.bf16.mxu1 %v2118_v53 }
 0x123   : > { %v2432_v57 = vsel %vm676_vm0, %v662_v56, -1e+30  ;;  %1989 = vmatpush3.bf16.msra.mxu1 %v2118_v53 }
 0x124   : > { %721 = vmax.xlane.f32.xlu1 %v2432_v57  ;;  %1990 = vmatprep.subr.bf16.mxu1 %v2119_v61 }
 0x126   : > { %723 = vmax.xlane.f32.xlu0 %v2435_v58 }
 0x127   : > { %1991 = vmatpush3.bf16.msra.mxu1 %v2119_v61 }
 0x128   : > { %725 = vmax.xlane.f32.xlu1 %v2439_v59 }
 0x196   : > { %v700_v63 = vpop.xlane.xlu1 %699 }
 0x197   : > { %v729_v0 = vsub.f32 %v681_v31, %v700_v63  ;;  %v696_v1 = vpop.xlane.xlu0 %695  ;;  %v2120_v63 = vld [vmem:[%s2448_s12 + $0x28] sm:$0xff]  }
 0x198   : > { %v727_v2 = vsub.f32 %v679_v33, %v696_v1  ;;  %1992 = vmatprep.subr.bf16.mxu1 %v2120_v63 }
 0x199   : > { %v747_v6 = vmul.f32 1.442695, %v729_v0  ;;  %1993 = vmatpush3.bf16.msra.mxu1 %v2120_v63 }
 0x19a   : > { %v743_v3 = vmul.f32 1.442695, %v727_v2  ;;  %v702_v4 = vpop.xlane.xlu1 %701  ;;  %v2121_v2 = vld [vmem:[%s2448_s12 + $0x30] sm:$0xff]  }
 0x19b   : > { %v730_v7 = vsub.f32 %v2394_v34, %v702_v4  ;;  %v698_v9 = vpop.xlane.xlu0 %697  ;;  %1994 = vmatprep.subr.bf16.mxu1 %v2121_v2  ;;  %v2122_v4 = vld [vmem:[%s2448_s12 + $0x38] sm:$0xff]  }
 0x19c   : > { %2131 = vpow2.f32 %v743_v3  ;;  %v728_v10 = vsub.f32 %v680_v35, %v698_v9  ;;  %v2535_v9 = vld [vmem:[%s2735_s5 + $0x10] sm:$0xff]  }
 0x19d   : > { %2133 = vpow2.f32 %v747_v6  ;;  %v749_v12 = vmul.f32 1.442695, %v730_v7  ;;  %1995 = vmatpush3.bf16.msra.mxu1 %v2121_v2  ;;  %v2521_v6 = vld [vmem:[%s2735_s5] sm:$0xff]   ;;  %v2526_v7 = vld [vmem:[%s2735_s5 + $0x8] sm:$0xff]  }
 0x19e   : > { %v745_v11 = vmul.f32 1.442695, %v728_v10  ;;  %1996 = vmatprep.subr.bf16.mxu1 %v2122_v4  ;;  %2014 = vmatprep.subr.bf16.mxu0 %v2521_v6  ;;  %v2542_v10 = vld [vmem:[%s2735_s5 + $0x18] sm:$0xff]  }
 0x19f   : > { %v704_v13 = vpop.xlane.xlu0 %703  ;;  %2015 = vmatpush3.bf16.msra.mxu0 %v2521_v6 }
 0x1a0   : > { %2135 = vpow2.f32 %v745_v11  ;;  %v731_v14 = vsub.f32 %v683_v39, %v704_v13  ;;  %2016 = vmatprep.subr.bf16.mxu0 %v2526_v7  ;;  %v2549_v11 = vld [vmem:[%s2735_s5 + $0x20] sm:$0xff]   ;;  %v2563_v13 = vld [vmem:[%s2735_s5 + $0x30] sm:$0xff]  }
 0x1a1   : > { %v706_v15 = vpop.xlane.xlu1 %705  ;;  %2137 = vpow2.f32 %v749_v12  ;;  %1997 = vmatpush3.bf16.msra.mxu1 %v2122_v4  ;;  %v2556_v12 = vld [vmem:[%s2735_s5 + $0x28] sm:$0xff]  }
 0x1a2   : > { %v751_v16 = vmul.f32 1.442695, %v731_v14  ;;  %v732_v17 = vsub.f32 %v2400_v41, %v706_v15  ;;  %2046 = vmatprep.subr.bf16.mxu1 %v2521_v6 }
 0x1a3   : > { %v708_v18 = vpop.xlane.xlu0 %707  ;;  %2017 = vmatpush3.bf16.msra.mxu0 %v2526_v7 }
 0x1a4   : > { %2139 = vpow2.f32 %v751_v16  ;;  %v753_v19 = vmul.f32 1.442695, %v732_v17  ;;  %v733_v20 = vsub.f32 %v2403_v42, %v708_v18  ;;  %2018 = vmatprep.subr.bf16.mxu0 %v2535_v9 }
 0x1a5   : > { %v710_v21 = vpop.xlane.xlu1 %709 }
 0x1a6   : > { %v2456_v22 = vpop.eup %2131  ;;  %v755_v23 = vmul.f32 1.442695, %v733_v20  ;;  %v734_v24 = vsub.f32 %v2407_v43, %v710_v21  ;;  %2141 = vpow2.f32 %v753_v19 }
 0x1a7   : > { %v712_v25 = vpop.xlane.xlu0 %711  ;;  %775 = vadd.xlane.f32.xlu0 %v2456_v22  ;;  %v2461_v29 = vpop.eup %2133  ;;  %2019 = vmatpush3.bf16.msra.mxu0 %v2535_v9 }
 0x1a8   : > { %2143 = vpow2.f32 %v755_v23  ;;  %v757_v26 = vmul.f32 1.442695, %v734_v24  ;;  %v735_v27 = vsub.f32 %v2412_v47, %v712_v25  ;;  %2020 = vmatprep.subr.bf16.mxu0 %v2542_v10 }
 0x1a9   : > { %v714_v5 = vpop.xlane.xlu1 %713 }
 0x1aa   : > { %v2463_v30 = vpop.eup %2135  ;;  %v759_v31 = vmul.f32 1.442695, %v735_v27  ;;  %v736_v32 = vsub.f32 %v2416_v49, %v714_v5  ;;  %2145 = vpow2.f32 %v757_v26 }
 0x1ab   : > { %v716_v33 = vpop.xlane.xlu0 %715  ;;  %779 = vadd.xlane.f32.xlu0 %v2461_v29  ;;  %777 = vadd.xlane.f32.xlu1 %v2463_v30  ;;  %v2469_v35 = vpop.eup %2137 }
 0x1ac   : > { %2147 = vpow2.f32 %v759_v31  ;;  %v761_v8 = vmul.f32 1.442695, %v736_v32  ;;  %v737_v34 = vsub.f32 %v2419_v50, %v716_v33  ;;  %2021 = vmatpush3.bf16.msra.mxu0 %v2542_v10 }
 0x1ad   : > { %v718_v36 = vpop.xlane.xlu1 %717  ;;  %2022 = vmatprep.subr.bf16.mxu0 %v2549_v11 }
 0x1ae   : > { %v2471_v37 = vpop.eup %2139  ;;  %v763_v38 = vmul.f32 1.442695, %v737_v34  ;;  %v738_v39 = vsub.f32 %v2423_v51, %v718_v36  ;;  %2149 = vpow2.f32 %v761_v8 }
 0x1af   : > { %783 = vadd.xlane.f32.xlu0 %v2471_v37  ;;  %v720_v40 = vpop.xlane.xlu0 %719  ;;  %781 = vadd.xlane.f32.xlu1 %v2469_v35 }
 0x1b0   : > { %2151 = vpow2.f32 %v763_v38  ;;  %v765_v41 = vmul.f32 1.442695, %v738_v39  ;;  %v739_v42 = vsub.f32 %v2428_v55, %v720_v40  ;;  %v2477_v43 = vpop.eup %2141  ;;  %2023 = vmatpush3.bf16.msra.mxu0 %v2549_v11 }
 0x1b1   : > { %v722_v44 = vpop.xlane.xlu1 %721  ;;  %2024 = vmatprep.subr.bf16.mxu0 %v2556_v12 }
 0x1b2   : > { %v2479_v45 = vpop.eup %2143  ;;  %v767_v46 = vmul.f32 1.442695, %v739_v42  ;;  %v740_v47 = vsub.f32 %v2432_v57, %v722_v44  ;;  %2153 = vpow2.f32 %v765_v41 }
 0x1b3   : > { %787 = vadd.xlane.f32.xlu0 %v2479_v45  ;;  %v724_v48 = vpop.xlane.xlu0 %723  ;;  %785 = vadd.xlane.f32.xlu1 %v2477_v43 }
 0x1b4   : > { %2155 = vpow2.f32 %v767_v46  ;;  %v769_v49 = vmul.f32 1.442695, %v740_v47  ;;  %v741_v50 = vsub.f32 %v2435_v58, %v724_v48  ;;  %v2485_v51 = vpop.eup %2145  ;;  %2025 = vmatpush3.bf16.msra.mxu0 %v2556_v12 }
 0x1b5   : > { %v726_v52 = vpop.xlane.xlu1 %725  ;;  %2026 = vmatprep.subr.bf16.mxu0 %v2563_v13 }
 0x1b6   : > { %v2488_v54 = vpop.eup %2147  ;;  %v771_v55 = vmul.f32 1.442695, %v741_v50  ;;  %v742_v56 = vsub.f32 %v2439_v59, %v726_v52  ;;  %2157 = vpow2.f32 %v769_v49 }
 0x1b7   : > { %791 = vadd.xlane.f32.xlu0 %v2488_v54  ;;  %789 = vadd.xlane.f32.xlu1 %v2485_v51 }
 0x1b8   : > { %2159 = vpow2.f32 %v771_v55  ;;  %v773_v57 = vmul.f32 1.442695, %v742_v56  ;;  %v2493_v58 = vpop.eup %2149  ;;  %2027 = vmatpush3.bf16.msra.mxu0 %v2563_v13 }
 0x1ba   : > { %v2495_v60 = vpop.eup %2151  ;;  %2161 = vpow2.f32 %v773_v57 }
 0x1bb   : > { %795 = vadd.xlane.f32.xlu0 %v2495_v60  ;;  %793 = vadd.xlane.f32.xlu1 %v2493_v58 }
 0x1bc   : > { %v2500_v59 = vpop.eup %2153 }
 0x1be   : > { %v2502_v62 = vpop.eup %2155 }
 0x1bf   : > { %799 = vadd.xlane.f32.xlu0 %v2502_v62  ;;  %797 = vadd.xlane.f32.xlu1 %v2500_v59 }
 0x1c0   : > { %v2507_v0 = vpop.eup %2157 }
 0x1c2   : > { %v2509_v1 = vpop.eup %2159 }
 0x1c3   : > { %803 = vadd.xlane.f32.xlu0 %v2509_v1  ;;  %801 = vadd.xlane.f32.xlu1 %v2507_v0 }
 0x1c4   : > { %v2514_v3 = vpop.eup %2161 }
 0x1c7   : > { %805 = vadd.xlane.f32.xlu1 %v2514_v3 }
 0x234   : > { %v776_v14 = vpop.xlane.xlu0 %775 }
 0x235   : > { %2163 = vrcp.f32 %v776_v14 }
 0x238   : > { %v780_v15 = vpop.xlane.xlu0 %779  ;;  %v778_v16 = vpop.xlane.xlu1 %777 }
 0x239   : > { %2165 = vrcp.f32 %v778_v16 }
 0x23a   : > { %2167 = vrcp.f32 %v780_v15 }
 0x23c   : > { %v784_v17 = vpop.xlane.xlu0 %783  ;;  %v782_v18 = vpop.xlane.xlu1 %781 }
 0x23d   : > { %2169 = vrcp.f32 %v782_v18 }
 0x23e   : > { %2171 = vrcp.f32 %v784_v17 }
 0x23f   : > { %v2164_v21 = vpop.eup %2163 }
 0x240   : > { %v788_v19 = vpop.xlane.xlu0 %787  ;;  %v786_v20 = vpop.xlane.xlu1 %785  ;;  %v823_v26 = vmul.f32 %v2164_v21, %v2456_v22 }
 0x241   : > { %2173 = vrcp.f32 %v786_v20 }
 0x242   : > { %2175 = vrcp.f32 %v788_v19 }
 0x243   : > { %v2166_v23 = vpop.eup %2165 }
 0x244   : > { %v792_v24 = vpop.xlane.xlu0 %791  ;;  %v790_v25 = vpop.xlane.xlu1 %789  ;;  %v824_v27 = vmul.f32 %v2166_v23, %v2463_v30 }
 0x245   : > { %v2168_v5 = vpop.eup %2167  ;;  %2177 = vrcp.f32 %v790_v25 }
 0x246   : > { %v839_v31 = vpack.c.bf16 %v824_v27, %v823_v26  ;;  %2179 = vrcp.f32 %v792_v24  ;;  %v825_v34 = vmul.f32 %v2168_v5, %v2461_v29 }
 0x247   : > { %v2170_v32 = vpop.eup %2169 }
 0x248   : > { %v796_v33 = vpop.xlane.xlu0 %795  ;;  %v794_v8 = vpop.xlane.xlu1 %793  ;;  %1998 = vmatprep.mubr.bf16.mxu1 %v839_v31  ;;  %v826_v36 = vmul.f32 %v2170_v32, %v2469_v35 }
 0x249   : > { %v2172_v38 = vpop.eup %2171  ;;  %2181 = vrcp.f32 %v794_v8 }
 0x24a   : > { %v840_v39 = vpack.c.bf16 %v826_v36, %v825_v34  ;;  %2183 = vrcp.f32 %v796_v33  ;;  %v827_v30 = vmul.f32 %v2172_v38, %v2471_v37 }
 0x24b   : > { %v2174_v40 = vpop.eup %2173 }
 0x24c   : > { %v800_v22 = vpop.xlane.xlu0 %799  ;;  %v798_v41 = vpop.xlane.xlu1 %797  ;;  %1999 = vmatmul.mubr.bf16.vlgmr.msra.gmra.mrb[0].mxu1 %v840_v39  ;;  %v828_v42 = vmul.f32 %v2174_v40, %v2477_v43 }
 0x24d   : > { %v2176_v44 = vpop.eup %2175  ;;  %2185 = vrcp.f32 %v798_v41  ;;  %2054 = vmatpush3.bf16.msra.mxu1 %v2521_v6 }
 0x24e   : > { %v841_v46 = vpack.c.bf16 %v828_v42, %v827_v30  ;;  %2047 = vmatprep.subr.bf16.mxu1 %v2526_v7  ;;  %2187 = vrcp.f32 %v800_v22  ;;  %v829_v48 = vmul.f32 %v2176_v44, %v2479_v45 }
 0x24f   : > { %v2178_v29 = vpop.eup %2177 }
 0x250   : > { %v804_v35 = vpop.xlane.xlu0 %803  ;;  %v802_v47 = vpop.xlane.xlu1 %801  ;;  %2002 = vmatprep.mubr.bf16.mxu1 %v841_v46  ;;  %v830_v49 = vmul.f32 %v2178_v29, %v2485_v51 }
 0x251   : > { %v2180_v50 = vpop.eup %2179  ;;  %2189 = vrcp.f32 %v802_v47  ;;  %2055 = vmatpush3.bf16.msra.mxu1 %v2526_v7 }
 0x252   : > { %2191 = vrcp.f32 %v804_v35  ;;  %v842_v37 = vpack.c.bf16 %v830_v49, %v829_v48  ;;  %2048 = vmatprep.subr.bf16.mxu1 %v2535_v9  ;;  %v831_v53 = vmul.f32 %v2180_v50, %v2488_v54 }
 0x253   : > { %v2182_v43 = vpop.eup %2181 }
 0x254   : > { %v806_v52 = vpop.xlane.xlu1 %805  ;;  %2003 = vmatmul.mubr.bf16.gmra.mrb[4].mxu1 %v842_v37  ;;  %v832_v55 = vmul.f32 %v2182_v43, %v2493_v58  ;;  %v2184_v56 = vpop.eup %2183 }
 0x255   : > { %2193 = vrcp.f32 %v806_v52  ;;  %2056 = vmatpush3.bf16.msra.mxu1 %v2535_v9  ;;  %v833_v57 = vmul.f32 %v2184_v56, %v2495_v60 }
 0x256   : > { %v843_v45 = vpack.c.bf16 %v832_v55, %v831_v53  ;;  %2049 = vmatprep.subr.bf16.mxu1 %v2542_v10 }
 0x257   : > { %v2186_v51 = vpop.eup %2185 }
 0x258   : > { %2006 = vmatprep.mubr.bf16.mxu1 %v843_v45  ;;  %v834_v61 = vmul.f32 %v2186_v51, %v2500_v59  ;;  %v2188_v63 = vpop.eup %2187 }
 0x259   : > { %2057 = vmatpush3.bf16.msra.mxu1 %v2542_v10  ;;  %v835_v4 = vmul.f32 %v2188_v63, %v2502_v62  ;;  %v2130_v62 = vld [vmem:[%s2735_s5 + $0x38] sm:$0xff]  }
 0x25a   : > { %v844_v2 = vpack.c.bf16 %v834_v61, %v833_v57  ;;  %2050 = vmatprep.subr.bf16.mxu1 %v2549_v11  ;;  %2028 = vmatprep.subr.bf16.mxu0 %v2130_v62 }
 0x25b   : > { %v2190_v54 = vpop.eup %2189  ;;  %2029 = vmatpush3.bf16.msra.mxu0 %v2130_v62 }
 0x25c   : > { %v2192_v58 = vpop.eup %2191  ;;  %2007 = vmatmul.mubr.bf16.gmra.mrb[8].mxu1 %v844_v2  ;;  %v836_v6 = vmul.f32 %v2190_v54, %v2507_v0 }
 0x25d   : > { %2058 = vmatpush3.bf16.msra.mxu1 %v2549_v11  ;;  %v837_v60 = vmul.f32 %v2192_v58, %v2509_v1 }
 0x25e   : > { %v845_v9 = vpack.c.bf16 %v836_v6, %v835_v4  ;;  %2051 = vmatprep.subr.bf16.mxu1 %v2556_v12 }
 0x25f   : > { %v2194_v7 = vpop.eup %2193 }
 0x260   : > { %v838_v59 = vmul.f32 %v2194_v7, %v2514_v3  ;;  %2010 = vmatprep.mubr.bf16.mxu1 %v845_v9 }
 0x261   : > { %2059 = vmatpush3.bf16.msra.mxu1 %v2556_v12 }
 0x262   : > { %v846_v10 = vpack.c.bf16 %v838_v59, %v837_v60  ;;  %2052 = vmatprep.subr.bf16.mxu1 %v2563_v13 }
 0x264   : > { %2011 = vmatmul.mubr.bf16.gmra.mrb[12].mxu1 %v846_v10 }
 0x265   : > { %2060 = vmatpush3.bf16.msra.mxu1 %v2563_v13 }
 0x266   : > { %2053 = vmatprep.subr.bf16.mxu1 %v2130_v62 }
 0x269   : > { %2061 = vmatpush3.bf16.msra.mxu1 %v2130_v62 }
 0x31f   : > { %v2000_v0 = vpop.f32.mrb[0].mxu1 }
 0x320   : > { %v945_v1 = vpop.f32.mrb[1].mxu1 }
 0x321   : > { %v2001_v3 = vpop.f32.mrb[2].mxu1 }
 0x322   : > { %v1009_v11 = vpack.c.bf16 %v2001_v3, %v2000_v0  ;;  %v948_v14 = vpop.f32.mrb[3].mxu1  ;;  %v2616_v3 = vshrl.u32 %v674_v28, 7 }
 0x323   : > { %v1008_v15 = vpack.c.bf16 %v948_v14, %v945_v1 }
 0x324   : > { %v1259_v14 = vadd.s32 8, %v2616_v3  ;;  %v1261_v28 = vadd.s32 24, %v2616_v3 }
 0x325   : > { %2030 = vmatprep.mubr.bf16.mxu0 %v1008_v15 }
 0x326   : > { %2031 = vmatmul.mubr.bf16.vlgmr.msra.gmra.mrb[16].mxu0 %v1009_v11 }
 0x327   : > { %v2004_v12 = vpop.f32.mrb[4].mxu1 }
 0x328   : > { %v961_v16 = vpop.f32.mrb[5].mxu1 }
 0x329   : > { %v2005_v17 = vpop.f32.mrb[6].mxu1 }
 0x32a   : > { %v1011_v13 = vpack.c.bf16 %v2005_v17, %v2004_v12  ;;  %v964_v18 = vpop.f32.mrb[7].mxu1  ;;  %v2620_v12 = vstv %s1779_s14 }
 0x32b   : > { %v1010_v19 = vpack.c.bf16 %v964_v18, %v961_v16  ;;  %v1277_v17 = vadd.s32 %v2620_v12, %v1259_v14  ;;  %v1260_v18 = vadd.s32 16, %v2616_v3 }
 0x32d   : > { %2034 = vmatprep.mubr.bf16.mxu0 %v1010_v19  ;;  %v1276_v19 = vadd.s32 %v2620_v12, %v2616_v3  ;;  %vm1293_vm1 = vcmp.lt.s32.totalorder %v1277_v17, 196 }
 0x32e   : > { %2035 = vmatmul.mubr.bf16.gmra.mrb[20].mxu0 %v1011_v13 }
 0x32f   : > { %v2008_v20 = vpop.f32.mrb[8].mxu1  ;;  %vm1292_vm2 = vcmp.lt.s32.totalorder %v1276_v19, 196 }
 0x330   : > { %v977_v21 = vpop.f32.mrb[9].mxu1 }
 0x331   : > { %v2009_v23 = vpop.f32.mrb[10].mxu1 }
 0x332   : > { %v1013_v24 = vpack.c.bf16 %v2009_v23, %v2008_v20  ;;  %v980_v25 = vpop.f32.mrb[11].mxu1  ;;  %v1278_v23 = vadd.s32 %v2620_v12, %v1260_v18 }
 0x333   : > { %v1012_v26 = vpack.c.bf16 %v980_v25, %v977_v21  ;;  %v2235_v25 = vmov 0.0  }
 0x334   : > { %vm1294_vm3 = vcmp.lt.s32.totalorder %v1278_v23, 196 }
 0x335   : > { %2038 = vmatprep.mubr.bf16.mxu1 %v1012_v26  ;;  %v1781_v26 = vsel %vm1293_vm1, 1.0, %v2235_v25 }
 0x336   : > { %2039 = vmatmul.mubr.bf16.vlgmr.msra.gmra.mrb[16].mxu1 %v1013_v24  ;;  %v1262_v24 = vadd.s32 32, %v2616_v3 }
 0x337   : > { %v2012_v27 = vpop.f32.mrb[12].mxu1 }
 0x338   : > { %v993_v5 = vpop.f32.mrb[13].mxu1 }
 0x339   : > { %v2013_v31 = vpop.f32.mrb[14].mxu1 }
 0x33a   : > { %v1015_v32 = vpack.c.bf16 %v2013_v31, %v2012_v27  ;;  %v996_v33 = vpop.f32.mrb[15].mxu1  ;;  %v1263_v31 = vadd.s32 40, %v2616_v3 }
 0x33b   : > { %v1014_v8 = vpack.c.bf16 %v996_v33, %v993_v5  ;;  %v1279_v5 = vadd.s32 %v2620_v12, %v1261_v28 }
 0x33d   : > { %2042 = vmatprep.mubr.bf16.mxu1 %v1014_v8  ;;  %vm1295_vm4 = vcmp.lt.s32.totalorder %v1279_v5, 196 }
 0x33e   : > { %2043 = vmatmul.mubr.bf16.gmra.mrb[20].mxu1 %v1015_v32  ;;  %v1780_v32 = vsel %vm1292_vm2, 1.0, %v2235_v25 }
 0x3f9   : > { %v2032_v34 = vpop.f32.mrb[16].mxu0 }
 0x3fa   : > { %1344 = vadd.xlane.f32.xlu0 %v2032_v34  ;;  %v1114_v36 = vpop.f32.mrb[17].mxu0  ;;  %v1390_v38 = vmul.f32 %v2032_v34, %v2032_v34 }
 0x3fb   : > { %v2033_v39 = vpop.f32.mrb[18].mxu0  ;;  %v1388_v47 = vmul.f32 %v1114_v36, %v1114_v36 }
 0x3fc   : > { %v1856_v40 = vpack.c.bf16 %v2033_v39, %v2032_v34  ;;  %1408 = vadd.xlane.f32.xlu1 %v1390_v38  ;;  %v1117_v22 = vpop.f32.mrb[19].mxu0  ;;  %v1391_v44 = vmul.f32 %v2033_v39, %v2033_v39  ;;  %v1280_v34 = vadd.s32 %v2620_v12, %v1262_v24 }
 0x3fd   : > { %v1851_v41 = vpack.c.bf16 %v1117_v22, %v1114_v36  ;;  %v1389_v49 = vmul.f32 %v1117_v22, %v1117_v22 }
 0x3fe   : > { %1895 = vst [vmem:[%s2605_s18 + $0x8] sm:$0xff] %v1856_v40   ;;  %1340 = vadd.xlane.f32.xlu0 %v1114_v36  ;;  %v1281_v40 = vadd.s32 %v2620_v12, %v1263_v31  ;;  %vm1296_vm6 = vcmp.lt.s32.totalorder %v1280_v34, 196 }
 0x3ff   : > { %1852 = vst [vmem:[%s2605_s18] sm:$0xff] %v1851_v41   ;;  %v1264_v41 = vadd.s32 48, %v2616_v3 }
 0x400   : > { %1342 = vadd.xlane.f32.xlu1 %v1117_v22  ;;  %v1782_v22 = vsel %vm1294_vm3, 1.0, %v2235_v25  ;;  %vm1297_vm7 = vcmp.lt.s32.totalorder %v1281_v40, 196 }
 0x401   : > { %v2036_v30 = vpop.f32.mrb[20].mxu0 }
 0x402   : > { %1346 = vadd.xlane.f32.xlu0 %v2033_v39  ;;  %v1130_v42 = vpop.f32.mrb[21].mxu0  ;;  %v1394_v43 = vmul.f32 %v2036_v30, %v2036_v30 }
 0x403   : > { %v2037_v46 = vpop.f32.mrb[22].mxu0  ;;  %v1392_v45 = vmul.f32 %v1130_v42, %v1130_v42 }
 0x404   : > { %v1866_v29 = vpack.c.bf16 %v2037_v46, %v2036_v30  ;;  %1410 = vadd.xlane.f32.xlu1 %v1391_v44  ;;  %v1133_v35 = vpop.f32.mrb[23].mxu0  ;;  %v1395_v61 = vmul.f32 %v2037_v46, %v2037_v46 }
 0x405   : > { %v1861_v48 = vpack.c.bf16 %v1133_v35, %v1130_v42  ;;  %v1393_v4 = vmul.f32 %v1133_v35, %v1133_v35 }
 0x406   : > { %1897 = vst [vmem:[%s2605_s18 + $0x18] sm:$0xff] %v1866_v29   ;;  %1404 = vadd.xlane.f32.xlu0 %v1388_v47 }
 0x407   : > { %1896 = vst [vmem:[%s2605_s18 + $0x10] sm:$0xff] %v1861_v48  }
 0x408   : > { %1406 = vadd.xlane.f32.xlu1 %v1389_v49 }
 0x409   : > { %v2040_v50 = vpop.f32.mrb[16].mxu1 }
 0x40a   : > { %1352 = vadd.xlane.f32.xlu0 %v2036_v30  ;;  %v1146_v37 = vpop.f32.mrb[17].mxu1  ;;  %v1398_v6 = vmul.f32 %v2040_v50, %v2040_v50 }
 0x40b   : > { %v2041_v52 = vpop.f32.mrb[18].mxu1  ;;  %v1396_v7 = vmul.f32 %v1146_v37, %v1146_v37 }
 0x40c   : > { %v1876_v53 = vpack.c.bf16 %v2041_v52, %v2040_v50  ;;  %1416 = vadd.xlane.f32.xlu1 %v1394_v43  ;;  %v1149_v55 = vpop.f32.mrb[19].mxu1  ;;  %v1399_v9 = vmul.f32 %v2041_v52, %v2041_v52  ;;  %v1784_v43 = vsel %vm1296_vm6, 1.0, %v2235_v25 }
 0x40d   : > { %v1871_v56 = vpack.c.bf16 %v1149_v55, %v1146_v37  ;;  %v1397_v60 = vmul.f32 %v1149_v55, %v1149_v55 }
 0x40e   : > { %1899 = vst [vmem:[%s2605_s18 + $0x28] sm:$0xff] %v1876_v53   ;;  %1348 = vadd.xlane.f32.xlu0 %v1130_v42  ;;  %v1266_v53 = vadd.s32 64, %v2616_v3 }
 0x40f   : > { %1898 = vst [vmem:[%s2605_s18 + $0x20] sm:$0xff] %v1871_v56  }
 0x410   : > { %1412 = vadd.xlane.f32.xlu1 %v1392_v45 }
 0x411   : > { %v2044_v51 = vpop.f32.mrb[20].mxu1 }
 0x412   : > { %1354 = vadd.xlane.f32.xlu0 %v2037_v46  ;;  %v1162_v57 = vpop.f32.mrb[21].mxu1  ;;  %v1402_v59 = vmul.f32 %v2044_v51, %v2044_v51  ;;  %v1783_v46 = vsel %vm1295_vm4, 1.0, %v2235_v25 }
 0x413   : > { %v2045_v63 = vpop.f32.mrb[22].mxu1  ;;  %v1400_v10 = vmul.f32 %v1162_v57, %v1162_v57 }
 0x414   : > { %v1886_v2 = vpack.c.bf16 %v2045_v63, %v2044_v51  ;;  %1418 = vadd.xlane.f32.xlu1 %v1395_v61  ;;  %v1165_v54 = vpop.f32.mrb[23].mxu1  ;;  %v1403_v0 = vmul.f32 %v2045_v63, %v2045_v63  ;;  %v1785_v61 = vsel %vm1297_vm7, 1.0, %v2235_v25 }
 0x415   : > { %v1881_v58 = vpack.c.bf16 %v1165_v54, %v1162_v57  ;;  %v1401_v62 = vmul.f32 %v1165_v54, %v1165_v54 }
 0x416   : > { %1901 = vst [vmem:[%s2605_s18 + $0x38] sm:$0xff] %v1886_v2   ;;  %1350 = vadd.xlane.f32.xlu0 %v1133_v35  ;;  %v1265_v35 = vadd.s32 56, %v2616_v3 }
 0x417   : > { %1900 = vst [vmem:[%s2605_s18 + $0x30] sm:$0xff] %v1881_v58  }
 0x418   : > { %1414 = vadd.xlane.f32.xlu1 %v1393_v4 }
 0x41a   : > { %1360 = vadd.xlane.f32.xlu0 %v2040_v50 }
 0x41c   : > { %1424 = vadd.xlane.f32.xlu1 %v1398_v6  ;;  %v1284_v6 = vadd.s32 %v2620_v12, %v1266_v53 }
 0x41e   : > { %1356 = vadd.xlane.f32.xlu0 %v1146_v37  ;;  %v1282_v37 = vadd.s32 %v2620_v12, %v1264_v41  ;;  %vm1300_vm10 = vcmp.lt.s32.totalorder %v1284_v6, 196 }
 0x41f   : > { %v1788_v34 = vsel %vm1300_vm10, 1.0, %v2235_v25 }
 0x420   : > { %1420 = vadd.xlane.f32.xlu1 %v1396_v7  ;;  %vm1298_vm8 = vcmp.lt.s32.totalorder %v1282_v37, 196 }
 0x421   : > { %v1786_v17 = vsel %vm1298_vm8, 1.0, %v2235_v25 }
 0x422   : > { %1362 = vadd.xlane.f32.xlu0 %v2041_v52 }
 0x424   : > { %1426 = vadd.xlane.f32.xlu1 %v1399_v9 }
 0x426   : > { %1358 = vadd.xlane.f32.xlu0 %v1149_v55 }
 0x428   : > { %1422 = vadd.xlane.f32.xlu1 %v1397_v60 }
 0x42a   : > { %1368 = vadd.xlane.f32.xlu0 %v2044_v51  ;;  %v1283_v51 = vadd.s32 %v2620_v12, %v1265_v35 }
 0x42c   : > { %1432 = vadd.xlane.f32.xlu1 %v1402_v59  ;;  %vm1299_vm9 = vcmp.lt.s32.totalorder %v1283_v51, 196 }
 0x42d   : > { %v1787_v23 = vsel %vm1299_vm9, 1.0, %v2235_v25 }
 0x42e   : > { %1364 = vadd.xlane.f32.xlu0 %v1162_v57 }
 0x430   : > { %1428 = vadd.xlane.f32.xlu1 %v1400_v10 }
 0x432   : > { %1366 = vadd.xlane.f32.xlu0 %v1165_v54 }
 0x434   : > { %1430 = vadd.xlane.f32.xlu1 %v1401_v62 }
 0x436   : > { %1370 = vadd.xlane.f32.xlu0 %v2045_v63 }
 0x438   : > { %1434 = vadd.xlane.f32.xlu1 %v1403_v0  ;;  %v1268_v0 = vadd.s32 80, %v2616_v3 }
 0x43a   : > { %v1286_v5 = vadd.s32 %v2620_v12, %v1268_v0 }
 0x43c   : > { %vm1302_vm12 = vcmp.lt.s32.totalorder %v1286_v5, 196 }
 0x487   : > { %v1345_v1 = vpop.xlane.xlu0 %1344 }
 0x488   : > { %v1374_v47 = vmul.f32 %v1782_v22, %v1345_v1 }
 0x489   : > { %v1409_v11 = vpop.xlane.xlu1 %1408 }
 0x48a   : > { %v1438_v55 = vmul.f32 %v1782_v22, %v1409_v11  ;;  %v1456_v63 = vsel %vm1452_vm5, %v1374_v47, 0.0 }
 0x48b   : > { %v1341_v15 = vpop.xlane.xlu0 %1340 }
 0x48c   : > { %v1372_v38 = vmul.f32 %v1780_v32, %v1341_v15  ;;  %v1496_v7 = vsel %vm1452_vm5, %v1438_v55, 0.0  ;;  %v1267_v15 = vadd.s32 72, %v2616_v3 }
 0x48d   : > { %v1343_v16 = vpop.xlane.xlu1 %1342 }
 0x48e   : > { %v1373_v8 = vmul.f32 %v1781_v26, %v1343_v16  ;;  %v1453_v48 = vsel %vm1452_vm5, %v1372_v38, 0.0  ;;  %v1285_v31 = vadd.s32 %v2620_v12, %v1267_v15 }
 0x48f   : > { %v1347_v13 = vpop.xlane.xlu0 %1346 }
 0x490   : > { %v1454_v42 = vsel %vm1452_vm5, %v1373_v8, 0.0  ;;  %v1375_v2 = vmul.f32 %v1783_v46, %v1347_v13  ;;  %vm1301_vm11 = vcmp.lt.s32.totalorder %v1285_v31, 196 }
 0x491   : > { %v1411_v20 = vpop.xlane.xlu1 %1410  ;;  %v1455_v50 = vadd.f32 %v1454_v42, %v1453_v48 }
 0x492   : > { %v1439_v9 = vmul.f32 %v1783_v46, %v1411_v20  ;;  %v1458_v1 = vsel %vm1452_vm5, %v1375_v2, 0.0 }
 0x493   : > { %v1405_v21 = vpop.xlane.xlu0 %1404  ;;  %v1457_v58 = vadd.f32 %v1456_v63, %v1455_v50 }
 0x494   : > { %v1436_v44 = vmul.f32 %v1780_v32, %v1405_v21  ;;  %v1498_v18 = vsel %vm1452_vm5, %v1439_v9, 0.0 }
 0x495   : > { %v1407_v27 = vpop.xlane.xlu1 %1406  ;;  %v1459_v16 = vadd.f32 %v1458_v1, %v1457_v58 }
 0x496   : > { %v1437_v39 = vmul.f32 %v1781_v26, %v1407_v27  ;;  %v1493_v56 = vsel %vm1452_vm5, %v1436_v44, 0.0 }
 0x497   : > { %v2633_v33 = vpop.xlane.xlu0 %1352 }
 0x498   : > { %v1494_v49 = vsel %vm1452_vm5, %v1437_v39, 0.0  ;;  %v1378_v26 = vmul.f32 %v1786_v17, %v2633_v33  ;;  %v1269_v39 = vadd.s32 88, %v2616_v3 }
 0x499   : > { %v2636_v36 = vpop.xlane.xlu1 %1416  ;;  %v1495_v45 = vadd.f32 %v1494_v49, %v1493_v56 }
 0x49a   : > { %v1442_v40 = vmul.f32 %v1786_v17, %v2636_v36  ;;  %v1464_v33 = vsel %vm1452_vm5, %v1378_v26, 0.0  ;;  %v1272_v36 = vadd.s32 112, %v2616_v3 }
 0x49b   : > { %v1349_v30 = vpop.xlane.xlu0 %1348  ;;  %v1497_v10 = vadd.f32 %v1496_v7, %v1495_v45  ;;  %v1790_v45 = vsel %vm1302_vm12, 1.0, %v2235_v25 }
 0x49c   : > { %v1376_v54 = vmul.f32 %v1784_v43, %v1349_v30  ;;  %v1270_v30 = vadd.s32 96, %v2616_v3  ;;  %v1504_v47 = vsel %vm1452_vm5, %v1442_v40, 0.0 }
 0x49d   : > { %v1413_v29 = vpop.xlane.xlu1 %1412  ;;  %v1499_v21 = vadd.f32 %v1498_v18, %v1497_v10  ;;  %v1273_v10 = vadd.s32 120, %v2616_v3 }
 0x49e   : > { %v1440_v60 = vmul.f32 %v1784_v43, %v1413_v29  ;;  %v1460_v11 = vsel %vm1452_vm5, %v1376_v54, 0.0  ;;  %v1287_v29 = vadd.s32 %v2620_v12, %v1269_v39  ;;  %v1789_v43 = vsel %vm1301_vm11, 1.0, %v2235_v25 }
 0x49f   : > { %v1355_v52 = vpop.xlane.xlu0 %1354  ;;  %v1461_v28 = vadd.f32 %v1460_v11, %v1459_v16  ;;  %v1288_v53 = vadd.s32 %v2620_v12, %v1270_v30  ;;  %v1290_v54 = vadd.s32 %v2620_v12, %v1272_v36 }
 0x4a0   : > { %v1500_v19 = vsel %vm1452_vm5, %v1440_v60, 0.0  ;;  %v1379_v42 = vmul.f32 %v1787_v23, %v1355_v52  ;;  %v1271_v52 = vadd.s32 104, %v2616_v3  ;;  %vm1303_vm13 = vcmp.lt.s32.totalorder %v1287_v29, 196 }
 0x4a1   : > { %v1419_v57 = vpop.xlane.xlu1 %1418  ;;  %v1501_v32 = vadd.f32 %v1500_v19, %v1499_v21  ;;  %vm1304_vm14 = vcmp.lt.s32.totalorder %v1288_v53, 196  ;;  %v1791_v0 = vsel %vm1303_vm13, 1.0, %v2235_v25  ;;  %vm1306_vm15 = vcmp.lt.s32.totalorder %v1290_v54, 196 }
 0x4a2   : > { %v1443_v48 = vmul.f32 %v1787_v23, %v1419_v57  ;;  %v1466_v55 = vsel %vm1452_vm5, %v1379_v42, 0.0  ;;  %v1289_v7 = vadd.s32 %v2620_v12, %v1271_v52  ;;  %v1792_v18 = vsel %vm1304_vm14, 1.0, %v2235_v25 }
 0x4a3   : > { %v1351_v4 = vpop.xlane.xlu0 %1350  ;;  %v1291_v3 = vadd.s32 %v2620_v12, %v1273_v10 }
 0x4a4   : > { %v1377_v59 = vmul.f32 %v1785_v61, %v1351_v4  ;;  %vm1305_vm0 = vcmp.lt.s32.totalorder %v1289_v7, 196 }
 0x4a5   : > { %v1415_v62 = vpop.xlane.xlu1 %1414  ;;  %v1793_v31 = vsel %vm1305_vm0, 1.0, %v2235_v25  ;;  %vm1307_vm1 = vcmp.lt.s32.totalorder %v1291_v3, 196 }
 0x4a6   : > { %v1441_v14 = vmul.f32 %v1785_v61, %v1415_v62  ;;  %v1462_v20 = vsel %vm1452_vm5, %v1377_v59, 0.0  ;;  %v1506_v61 = vsel %vm1452_vm5, %v1443_v48, 0.0 }
 0x4a7   : > { %v1361_v13 = vpop.xlane.xlu0 %1360  ;;  %v1463_v8 = vadd.f32 %v1462_v20, %v1461_v28 }
 0x4a8   : > { %v1502_v27 = vsel %vm1452_vm5, %v1441_v14, 0.0  ;;  %v1382_v9 = vmul.f32 %v1790_v45, %v1361_v13 }
 0x4a9   : > { %v1425_v24 = vpop.xlane.xlu1 %1424  ;;  %v1503_v22 = vadd.f32 %v1502_v27, %v1501_v32  ;;  %v1465_v46 = vadd.f32 %v1464_v33, %v1463_v8  ;;  %v1794_v27 = vsel %vm1306_vm15, 1.0, %v2235_v25 }
 0x4aa   : > { %v1446_v14 = vmul.f32 %v1790_v45, %v1425_v24  ;;  %v1472_v13 = vsel %vm1452_vm5, %v1382_v9, 0.0 }
 0x4ab   : > { %v1357_v38 = vpop.xlane.xlu0 %1356  ;;  %v1505_v50 = vadd.f32 %v1504_v47, %v1503_v22  ;;  %v1467_v51 = vadd.f32 %v1466_v55, %v1465_v46 }
 0x4ac   : > { %v1380_v44 = vmul.f32 %v1788_v34, %v1357_v38  ;;  %v1512_v21 = vsel %vm1452_vm5, %v1446_v14, 0.0 }
 0x4ad   : > { %v1421_v41 = vpop.xlane.xlu1 %1420  ;;  %v1507_v4 = vadd.f32 %v1506_v61, %v1505_v50 }
 0x4ae   : > { %v1444_v49 = vmul.f32 %v1788_v34, %v1421_v41  ;;  %v1468_v56 = vsel %vm1452_vm5, %v1380_v44, 0.0  ;;  %v1795_v44 = vsel %vm1307_vm1, 1.0, %v2235_v25 }
 0x4af   : > { %v1363_v35 = vpop.xlane.xlu0 %1362  ;;  %v1469_v58 = vadd.f32 %v1468_v56, %v1467_v51 }
 0x4b0   : > { %v1508_v63 = vsel %vm1452_vm5, %v1444_v49, 0.0  ;;  %v1383_v19 = vmul.f32 %v1791_v0, %v1363_v35 }
 0x4b1   : > { %v1427_v37 = vpop.xlane.xlu1 %1426  ;;  %v1509_v62 = vadd.f32 %v1508_v63, %v1507_v4 }
 0x4b2   : > { %v1447_v23 = vmul.f32 %v1791_v0, %v1427_v37  ;;  %v1474_v32 = vsel %vm1452_vm5, %v1383_v19, 0.0 }
 0x4b3   : > { %v1359_v57 = vpop.xlane.xlu0 %1358 }
 0x4b4   : > { %v1381_v2 = vmul.f32 %v1789_v43, %v1359_v57  ;;  %v1514_v39 = vsel %vm1452_vm5, %v1447_v23, 0.0 }
 0x4b5   : > { %v1423_v6 = vpop.xlane.xlu1 %1422 }
 0x4b6   : > { %v1470_v60 = vsel %vm1452_vm5, %v1381_v2, 0.0  ;;  %v1445_v59 = vmul.f32 %v1789_v43, %v1423_v6 }
 0x4b7   : > { %v1471_v1 = vadd.f32 %v1470_v60, %v1469_v58  ;;  %v1369_v11 = vpop.xlane.xlu0 %1368 }
 0x4b8   : > { %v1510_v15 = vsel %vm1452_vm5, %v1445_v59, 0.0  ;;  %v1386_v40 = vmul.f32 %v1794_v27, %v1369_v11 }
 0x4b9   : > { %v1511_v16 = vadd.f32 %v1510_v15, %v1509_v62  ;;  %v1433_v17 = vpop.xlane.xlu1 %1432  ;;  %v1473_v20 = vadd.f32 %v1472_v13, %v1471_v1 }
 0x4ba   : > { %v1450_v46 = vmul.f32 %v1794_v27, %v1433_v17  ;;  %v1480_v36 = vsel %vm1452_vm5, %v1386_v40, 0.0 }
 0x4bb   : > { %v1365_v28 = vpop.xlane.xlu0 %1364  ;;  %v1513_v24 = vadd.f32 %v1512_v21, %v1511_v16  ;;  %v1475_v38 = vadd.f32 %v1474_v32, %v1473_v20 }
 0x4bc   : > { %v1384_v26 = vmul.f32 %v1792_v18, %v1365_v28  ;;  %v1520_v55 = vsel %vm1452_vm5, %v1450_v46, 0.0 }
 0x4bd   : > { %v1429_v5 = vpop.xlane.xlu1 %1428  ;;  %v1515_v33 = vadd.f32 %v1514_v39, %v1513_v24 }
 0x4be   : > { %v1476_v8 = vsel %vm1452_vm5, %v1384_v26, 0.0  ;;  %v1448_v34 = vmul.f32 %v1792_v18, %v1429_v5 }
 0x4bf   : > { %v1367_v12 = vpop.xlane.xlu0 %1366  ;;  %v1477_v30 = vadd.f32 %v1476_v8, %v1475_v38 }
 0x4c0   : > { %v1516_v22 = vsel %vm1452_vm5, %v1448_v34, 0.0  ;;  %v1385_v41 = vmul.f32 %v1793_v31, %v1367_v12 }
 0x4c1   : > { %v1431_v42 = vpop.xlane.xlu1 %1430  ;;  %v1517_v47 = vadd.f32 %v1516_v22, %v1515_v33 }
 0x4c2   : > { %v1478_v29 = vsel %vm1452_vm5, %v1385_v41, 0.0  ;;  %v1449_v35 = vmul.f32 %v1793_v31, %v1431_v42 }
 0x4c3   : > { %v1479_v48 = vadd.f32 %v1478_v29, %v1477_v30  ;;  %v1371_v49 = vpop.xlane.xlu0 %1370 }
 0x4c4   : > { %v1518_v50 = vsel %vm1452_vm5, %v1449_v35, 0.0  ;;  %v1387_v37 = vmul.f32 %v1795_v44, %v1371_v49 }
 0x4c5   : > { %v1519_v43 = vadd.f32 %v1518_v50, %v1517_v47  ;;  %v1435_v53 = vpop.xlane.xlu1 %1434  ;;  %v1481_v52 = vadd.f32 %v1480_v36, %v1479_v48 }
 0x4c6   : > { %v1451_v56 = vmul.f32 %v1795_v44, %v1435_v53  ;;  %v1482_v25 = vsel %vm1452_vm5, %v1387_v37, 0.0 }
 0x4c7   : > { %v1483_v45 = vadd.f32 %v1482_v25, %v1481_v52  ;;  %v1521_v51 = vadd.f32 %v1520_v55, %v1519_v43 }
 0x4c8   : > { %v1522_v57 = vsel %vm1452_vm5, %v1451_v56, 0.0 }
 0x4c9   : > { %1484 = vadd.xlane.f32.xlu0 %v1483_v45  ;;  %v1523_v61 = vadd.f32 %v1522_v57, %v1521_v51 }
 0x4cb   : > { %1524 = vadd.xlane.f32.xlu1 %v1523_v61 }
 0x556   : > { %v1485_v63 = vpop.xlane.xlu0 %1484 }
 0x557   : > { %v1486_v2 = vrot.slane %v1485_v63, 4 }
 0x558   : > { %v1525_v54 = vpop.xlane.xlu1 %1524 }
 0x559   : > { %v1487_v58 = vadd.f32 %v1486_v2, %v1485_v63  ;;  %v1526_v4 = vrot.slane %v1525_v54, 4 }
 0x55b   : > { %v1488_v6 = vrot.slane %v1487_v58, 2  ;;  %v1527_v7 = vadd.f32 %v1526_v4, %v1525_v54 }
 0x55d   : > { %v1528_v9 = vrot.slane %v1527_v7, 2  ;;  %v1489_v60 = vadd.f32 %v1488_v6, %v1487_v58 }
 0x55f   : > { %v1529_v59 = vadd.f32 %v1528_v9, %v1527_v7  ;;  %v1490_v10 = vrot.slane %v1489_v60, 1 }
 0x561   : > { %v1491_v62 = vadd.f32 %v1490_v10, %v1489_v60  ;;  %v1530_v0 = vrot.slane %v1529_v59, 1 }
 0x563   : > { %2062 = vpush %v1491_v62  ;;  %v1531_v1 = vadd.f32 %v1530_v0, %v1529_v59 }
 0x565   : > { %2064 = vpush %v1531_v1 }
 0x594   : > { %s2063_s10 = spop %2062 }
 0x595   : > { %v1533_v11 = vstv %s2063_s10 }
 0x596   : > { %1534 = vst [vmem:[%s408_s8] sm:$0xff] %v1533_v11  ;;  %s2065_s11 = spop %2064 }
 0x597   : > { %v1535_v14 = vstv %s2065_s11 }
 0x598   : > { %1536 = vst [vmem:[%s408_s8 + $0x8] sm:$0xff] %v1535_v14 }
 0x599 PF: > { %s18_s28 = sadd.s32 1, %s2233_s28   ;;  %s2738_s24 = smov %s2225_s26 }
 0x59a   : > { %p15_p8 = scmp.ge.s32.totalorder %s18_s28, 6   ;;  %s2739_s25 = smov %s2229_s27 }
 0x59b   : > { %s2740_s26 = smov %s2743_s29  ;;  %s2741_s27 = smov %s2747_s30 }
 0x59c   :  { %17 = sbr.rel (!%p15_p8) target bundleno = 3 (0x3), region = 98 }

// kernel: spatial_ocr_forward.6
= control target key start
LH: loop header
LB: loop body
LE: loop exit
PB: predicated region body
PF: predicated region fallthrough
CT: control target
= control target key end

     0   :  { %s2242_s13 = smov 0   ;;  %s2746_s0 = inlined_call_operand.vmem [shape: bf16[2,128,128], index: 0, kind: input, shape index: {}]   ;;  %s2747_s1 = inlined_call_operand.vmem [shape: bf16[128,256], index: 1, kind: input, shape index: {}]   ;;  %s2748_s2 = inlined_call_operand.vmem [shape: f32[1,128], index: 2, kind: input, shape index: {}]   ;;  %s2749_s3 = inlined_call_operand.vmem [shape: f32[1,128], index: 3, kind: input, shape index: {}]   ;;  %s2750_s4 = inlined_call_operand.vmem [shape: f32[1,128], index: 4, kind: input, shape index: {}]   ;;  %s2751_s5 = inlined_call_operand.vmem [shape: f32[1,128], index: 5, kind: input, shape index: {}]   ;;  %s2752_s6 = inlined_call_operand.vmem [shape: bf16[128,128], index: 6, kind: input, shape index: {}]   ;;  %s2753_s7 = inlined_call_operand.vmem [shape: f32[1,128], index: 7, kind: input, shape index: {}]   ;;  %s2754_s8 = inlined_call_operand.vmem [shape: f32[1,128], index: 8, kind: input, shape index: {}]   ;;  %s2755_s9 = inlined_call_operand.vmem [shape: bf16[2,128,128], index: 9, kind: output, shape index: {0}]   ;;  %s2756_s10 = inlined_call_operand.vmem [shape: bf16[2,128,128], index: 10, kind: output, shape index: {1}]  }
   0x1 LB: > { %s1902_s14 = sadd.s32 4294967295, %s2181_s13   ;;  %p1906_p0 = scmp.ge.s32.totalorder %s2181_s13, 1  ;;  %s2181_s13 = sphi %s2242_s13, %s21_s13  }
   0x2   : > { %p315_p1 = scmp.lt.s32.totalorder %s2181_s13, 3 }
   0x4   : > { %p316_p2 = pnand %p1906_p0, %p315_p1 }
   0x5   : > { %v2129_v0 = vld [vmem:[%s2747_s1 + $0x4] ss:$8 sps:$4 sm:$0xff] (!%p316_p2)   ;;  %p358_p3 = scmp.lt.s32.totalorder (!%p316_p2), %s1902_s14, 1  ;;  %v2131_v1 = vld [vmem:[%s2747_s1] ss:$8 sps:$4 sm:$0xff] (!%p316_p2)   ;;  %v2183_v2 = vmov (!%p316_p2), 0  }
   0x6   : > { %319 = sbr.rel (%p316_p2) target bundleno = 1645 (0x66d), region = 56  ;;  %566 = vmatprep.mubr.bf16.mxu0 (!%p316_p2), %v2183_v2  ;;  %534 = vmatprep.subr.bf16.mxu0 (!%p316_p2), %v2129_v0  ;;  %v2132_v3 = vld [vmem:[%s2747_s1 + $0x14] ss:$8 sps:$4 sm:$0xff] (!%p316_p2)   ;;  %v2134_v4 = vld [vmem:[%s2747_s1 + $0x10] ss:$8 sps:$4 sm:$0xff] (!%p316_p2)   ;;  %vm729_vm0 = vcmask (!%p316_p2), 7168  }
   0x7   : > { %535 = vmatpush1.bf16.msra.mxu0 (!%p316_p2), %v2131_v1  ;;  %v2135_v5 = vld [vmem:[%s2747_s1 + $0x24] ss:$8 sps:$4 sm:$0xff] (!%p316_p2)   ;;  %v2137_v6 = vld [vmem:[%s2747_s1 + $0x20] ss:$8 sps:$4 sm:$0xff] (!%p316_p2)   ;;  %v2138_v7 = vld [vmem:[%s2747_s1 + $0x34] ss:$8 sps:$4 sm:$0xff] (!%p316_p2)  }
   0x8   : > { %536 = vmatprep.subr.bf16.mxu0 (!%p316_p2), %v2132_v3  ;;  %v2140_v8 = vld [vmem:[%s2747_s1 + $0x30] ss:$8 sps:$4 sm:$0xff] (!%p316_p2)   ;;  %v2141_v9 = vld [vmem:[%s2747_s1 + $0x44] ss:$8 sps:$4 sm:$0xff] (!%p316_p2)   ;;  %v2143_v10 = vld [vmem:[%s2747_s1 + $0x40] ss:$8 sps:$4 sm:$0xff] (!%p316_p2)  }
   0x9   : > { %v2144_v11 = vld [vmem:[%s2747_s1 + $0x54] ss:$8 sps:$4 sm:$0xff] (!%p316_p2)   ;;  %v2146_v12 = vld [vmem:[%s2747_s1 + $0x50] ss:$8 sps:$4 sm:$0xff] (!%p316_p2)   ;;  %v2147_v13 = vld [vmem:[%s2747_s1 + $0x64] ss:$8 sps:$4 sm:$0xff] (!%p316_p2)  }
   0xa   : > { %v2149_v14 = vld [vmem:[%s2747_s1 + $0x60] ss:$8 sps:$4 sm:$0xff] (!%p316_p2)   ;;  %v2150_v15 = vld [vmem:[%s2747_s1 + $0x74] ss:$8 sps:$4 sm:$0xff] (!%p316_p2)   ;;  %v2152_v16 = vld [vmem:[%s2747_s1 + $0x70] ss:$8 sps:$4 sm:$0xff] (!%p316_p2)  }
   0xb   : > { %537 = vmatpush1.bf16.msra.mxu0 (!%p316_p2), %v2134_v4  ;;  %s2185_s21 = smov (!%p316_p2), 0.0  }
   0xc   : > { %538 = vmatprep.subr.bf16.mxu0 (!%p316_p2), %v2135_v5 }
   0xd   : > { %s2758_s14 = smov (!%p358_p3, %s1902_s14), 1 }
   0xe   : > { %s2265_s25 = sshll.u32 %s2758_s14, 6 }
   0xf   : > { %s2277_s12 = scalar_lea.vmem %s2746_s0, %s2265_s25  ;;  %539 = vmatpush1.bf16.msra.mxu0 %v2137_v6 }
  0x10   : > { %540 = vmatprep.subr.bf16.mxu0 %v2138_v7  ;;  %v2153_v17 = vld [vmem:[%s2277_s12] sm:$0xff]   ;;  %v2154_v18 = vld [vmem:[%s2277_s12 + $0x8] sm:$0xff]   ;;  %v2155_v19 = vld [vmem:[%s2277_s12 + $0x10] sm:$0xff]  }
  0x11   : > { %v2156_v20 = vld [vmem:[%s2277_s12 + $0x18] sm:$0xff]   ;;  %v2157_v21 = vld [vmem:[%s2277_s12 + $0x20] sm:$0xff]   ;;  %v2158_v22 = vld [vmem:[%s2277_s12 + $0x28] sm:$0xff]  }
  0x12   : > { %v2159_v23 = vld [vmem:[%s2277_s12 + $0x30] sm:$0xff]   ;;  %v2160_v24 = vld [vmem:[%s2277_s12 + $0x38] sm:$0xff]   ;;  %s2459_s12 = scalar_lea.vmem %s2756_s10, %s2265_s25 }
  0x13   : > { %541 = vmatpush1.bf16.msra.mxu0 %v2140_v8 }
  0x14   : > { %542 = vmatprep.subr.bf16.mxu0 %v2141_v9 }
  0x17   : > { %543 = vmatpush1.bf16.msra.mxu0 %v2143_v10 }
  0x18   : > { %544 = vmatprep.subr.bf16.mxu0 %v2144_v11 }
  0x1b   : > { %545 = vmatpush1.bf16.msra.mxu0 %v2146_v12 }
  0x1c   : > { %546 = vmatprep.subr.bf16.mxu0 %v2147_v13 }
  0x1f   : > { %547 = vmatpush1.bf16.msra.mxu0 %v2149_v14 }
  0x20   : > { %548 = vmatprep.subr.bf16.mxu0 %v2150_v15 }
  0x23   : > { %549 = vmatpush1.bf16.msra.mxu0 %v2152_v16 }
  0x26   : > { %567 = vmatmul.mubr.bf16.vlgmr.msra.gmra.mrb[0].mxu0 %v2153_v17 }
  0x27   : > { %576 = vmatprep.mubr.bf16.mxu0 %v2183_v2 }
  0x2e   : > { %577 = vmatmul.mubr.bf16.gmra.mrb[4].mxu0 %v2154_v18 }
  0x2f   : > { %586 = vmatprep.mubr.bf16.mxu0 %v2183_v2 }
  0x36   : > { %587 = vmatmul.mubr.bf16.gmra.mrb[8].mxu0 %v2155_v19 }
  0x37   : > { %596 = vmatprep.mubr.bf16.mxu0 %v2183_v2 }
  0x3e   : > { %597 = vmatmul.mubr.bf16.gmra.mrb[12].mxu0 %v2156_v20 }
  0x3f   : > { %606 = vmatprep.mubr.bf16.mxu0 %v2183_v2 }
  0x46   : > { %607 = vmatmul.mubr.bf16.gmra.mrb[16].mxu0 %v2157_v21 }
  0x47   : > { %616 = vmatprep.mubr.bf16.mxu0 %v2183_v2 }
  0x4e   : > { %617 = vmatmul.mubr.bf16.gmra.mrb[20].mxu0 %v2158_v22 }
  0x4f   : > { %626 = vmatprep.mubr.bf16.mxu0 %v2183_v2 }
  0x56   : > { %627 = vmatmul.mubr.bf16.gmra.mrb[24].mxu0 %v2159_v23 }
  0x57   : > { %636 = vmatprep.mubr.bf16.mxu0 %v2183_v2 }
  0x5e   : > { %637 = vmatmul.mubr.bf16.gmra.mrb[28].mxu0 %v2160_v24 }
  0xf9   : > { %v2314_v25 = vpop.f32.mrb[0].mxu0 }
  0xfa   : > { %649 = vadd.xlane.f32.xlu0 %v2314_v25  ;;  %v2317_v26 = vpop.f32.mrb[1].mxu0  ;;  %v681_v27 = vmul.f32 %v2314_v25, %v2314_v25 }
  0xfb   : > { %v572_v28 = vpop.f32.mrb[2].mxu0 }
  0xfc   : > { %697 = vadd.xlane.f32.xlu1 %v681_v27  ;;  %v2321_v29 = vpop.f32.mrb[3].mxu0  ;;  %v682_v30 = vmul.f32 %v572_v28, %v572_v28 }
  0xfe   : > { %651 = vadd.xlane.f32.xlu0 %v572_v28 }
 0x101   : > { %v578_v31 = vpop.f32.mrb[4].mxu0 }
 0x102   : > { %699 = vadd.xlane.f32.xlu0 %v682_v30  ;;  %653 = vadd.xlane.f32.xlu1 %v578_v31  ;;  %v2323_v32 = vpop.f32.mrb[5].mxu0  ;;  %v683_v35 = vmul.f32 %v578_v31, %v578_v31 }
 0x103   : > { %v582_v33 = vpop.f32.mrb[6].mxu0 }
 0x104   : > { %v2325_v34 = vpop.f32.mrb[7].mxu0  ;;  %v684_v36 = vmul.f32 %v582_v33, %v582_v33 }
 0x106   : > { %701 = vadd.xlane.f32.xlu0 %v683_v35  ;;  %655 = vadd.xlane.f32.xlu1 %v582_v33 }
 0x109   : > { %v588_v37 = vpop.f32.mrb[8].mxu0 }
 0x10a   : > { %703 = vadd.xlane.f32.xlu0 %v684_v36  ;;  %657 = vadd.xlane.f32.xlu1 %v588_v37  ;;  %v2327_v38 = vpop.f32.mrb[9].mxu0  ;;  %v685_v41 = vmul.f32 %v588_v37, %v588_v37 }
 0x10b   : > { %v592_v39 = vpop.f32.mrb[10].mxu0 }
 0x10c   : > { %v2329_v40 = vpop.f32.mrb[11].mxu0  ;;  %v686_v42 = vmul.f32 %v592_v39, %v592_v39 }
 0x10e   : > { %705 = vadd.xlane.f32.xlu0 %v685_v41  ;;  %659 = vadd.xlane.f32.xlu1 %v592_v39 }
 0x111   : > { %v598_v43 = vpop.f32.mrb[12].mxu0 }
 0x112   : > { %707 = vadd.xlane.f32.xlu0 %v686_v42  ;;  %661 = vadd.xlane.f32.xlu1 %v598_v43  ;;  %v2331_v44 = vpop.f32.mrb[13].mxu0  ;;  %v687_v47 = vmul.f32 %v598_v43, %v598_v43 }
 0x113   : > { %v602_v45 = vpop.f32.mrb[14].mxu0 }
 0x114   : > { %v2333_v46 = vpop.f32.mrb[15].mxu0  ;;  %v688_v48 = vmul.f32 %v602_v45, %v602_v45 }
 0x116   : > { %709 = vadd.xlane.f32.xlu0 %v687_v47  ;;  %663 = vadd.xlane.f32.xlu1 %v602_v45 }
 0x119   : > { %v608_v49 = vpop.f32.mrb[16].mxu0 }
 0x11a   : > { %711 = vadd.xlane.f32.xlu0 %v688_v48  ;;  %665 = vadd.xlane.f32.xlu1 %v608_v49  ;;  %v2335_v50 = vpop.f32.mrb[17].mxu0  ;;  %v689_v53 = vmul.f32 %v608_v49, %v608_v49 }
 0x11b   : > { %v612_v51 = vpop.f32.mrb[18].mxu0 }
 0x11c   : > { %v2337_v52 = vpop.f32.mrb[19].mxu0  ;;  %v690_v54 = vmul.f32 %v612_v51, %v612_v51 }
 0x11e   : > { %713 = vadd.xlane.f32.xlu0 %v689_v53  ;;  %667 = vadd.xlane.f32.xlu1 %v612_v51 }
 0x121   : > { %v618_v55 = vpop.f32.mrb[20].mxu0 }
 0x122   : > { %715 = vadd.xlane.f32.xlu0 %v690_v54  ;;  %669 = vadd.xlane.f32.xlu1 %v618_v55  ;;  %v2339_v56 = vpop.f32.mrb[21].mxu0  ;;  %v691_v59 = vmul.f32 %v618_v55, %v618_v55 }
 0x123   : > { %v622_v57 = vpop.f32.mrb[22].mxu0 }
 0x124   : > { %v2341_v58 = vpop.f32.mrb[23].mxu0  ;;  %v692_v60 = vmul.f32 %v622_v57, %v622_v57 }
 0x126   : > { %717 = vadd.xlane.f32.xlu0 %v691_v59  ;;  %671 = vadd.xlane.f32.xlu1 %v622_v57 }
 0x129   : > { %v628_v61 = vpop.f32.mrb[24].mxu0 }
 0x12a   : > { %719 = vadd.xlane.f32.xlu0 %v692_v60  ;;  %673 = vadd.xlane.f32.xlu1 %v628_v61  ;;  %v2343_v62 = vpop.f32.mrb[25].mxu0  ;;  %v693_v1 = vmul.f32 %v628_v61, %v628_v61 }
 0x12b   : > { %v632_v63 = vpop.f32.mrb[26].mxu0 }
 0x12c   : > { %v2345_v0 = vpop.f32.mrb[27].mxu0  ;;  %v694_v2 = vmul.f32 %v632_v63, %v632_v63 }
 0x12e   : > { %721 = vadd.xlane.f32.xlu0 %v693_v1  ;;  %675 = vadd.xlane.f32.xlu1 %v632_v63 }
 0x131   : > { %v638_v3 = vpop.f32.mrb[28].mxu0 }
 0x132   : > { %723 = vadd.xlane.f32.xlu0 %v694_v2  ;;  %677 = vadd.xlane.f32.xlu1 %v638_v3  ;;  %v2347_v4 = vpop.f32.mrb[29].mxu0  ;;  %v695_v7 = vmul.f32 %v638_v3, %v638_v3 }
 0x133   : > { %v642_v5 = vpop.f32.mrb[30].mxu0 }
 0x134   : > { %v2349_v6 = vpop.f32.mrb[31].mxu0  ;;  %v696_v8 = vmul.f32 %v642_v5, %v642_v5 }
 0x136   : > { %725 = vadd.xlane.f32.xlu0 %v695_v7  ;;  %679 = vadd.xlane.f32.xlu1 %v642_v5 }
 0x13a   : > { %727 = vadd.xlane.f32.xlu1 %v696_v8 }
 0x187   : > { %v650_v9 = vpop.xlane.xlu0 %649 }
 0x188   : > { %v730_v30 = vsel %vm729_vm0, %v650_v9, 0.0 }
 0x189   : > { %v698_v10 = vpop.xlane.xlu1 %697 }
 0x18a   : > { %v771_v42 = vsel %vm729_vm0, %v698_v10, 0.0 }
 0x18b   : > { %v652_v11 = vpop.xlane.xlu0 %651 }
 0x18c   : > { %v731_v24 = vsel %vm729_vm0, %v652_v11, 0.0 }
 0x18d   : > { %v732_v33 = vadd.f32 %v731_v24, %v730_v30 }
 0x18f   : > { %v700_v12 = vpop.xlane.xlu0 %699  ;;  %v654_v13 = vpop.xlane.xlu1 %653 }
 0x190   : > { %v733_v31 = vsel %vm729_vm0, %v654_v13, 0.0  ;;  %v772_v35 = vsel %vm729_vm0, %v700_v12, 0.0 }
 0x191   : > { %v734_v37 = vadd.f32 %v733_v31, %v732_v33  ;;  %v773_v47 = vadd.f32 %v772_v35, %v771_v42 }
 0x193   : > { %v702_v14 = vpop.xlane.xlu0 %701  ;;  %v656_v15 = vpop.xlane.xlu1 %655 }
 0x194   : > { %v735_v36 = vsel %vm729_vm0, %v656_v15, 0.0  ;;  %v774_v43 = vsel %vm729_vm0, %v702_v14, 0.0 }
 0x195   : > { %v736_v48 = vadd.f32 %v735_v36, %v734_v37  ;;  %v775_v53 = vadd.f32 %v774_v43, %v773_v47 }
 0x197   : > { %v704_v16 = vpop.xlane.xlu0 %703  ;;  %v658_v17 = vpop.xlane.xlu1 %657 }
 0x198   : > { %v737_v45 = vsel %vm729_vm0, %v658_v17, 0.0  ;;  %v776_v49 = vsel %vm729_vm0, %v704_v16, 0.0 }
 0x199   : > { %v738_v54 = vadd.f32 %v737_v45, %v736_v48  ;;  %v777_v61 = vadd.f32 %v776_v49, %v775_v53 }
 0x19b   : > { %v706_v18 = vpop.xlane.xlu0 %705  ;;  %v660_v19 = vpop.xlane.xlu1 %659 }
 0x19c   : > { %v739_v51 = vsel %vm729_vm0, %v660_v19, 0.0  ;;  %v778_v59 = vsel %vm729_vm0, %v706_v18, 0.0 }
 0x19d   : > { %v740_v63 = vadd.f32 %v739_v51, %v738_v54  ;;  %v779_v3 = vadd.f32 %v778_v59, %v777_v61 }
 0x19f   : > { %v708_v20 = vpop.xlane.xlu0 %707  ;;  %v662_v21 = vpop.xlane.xlu1 %661 }
 0x1a0   : > { %v741_v60 = vsel %vm729_vm0, %v662_v21, 0.0  ;;  %v780_v1 = vsel %vm729_vm0, %v708_v20, 0.0 }
 0x1a1   : > { %v742_v5 = vadd.f32 %v741_v60, %v740_v63  ;;  %v781_v11 = vadd.f32 %v780_v1, %v779_v3 }
 0x1a3   : > { %v710_v22 = vpop.xlane.xlu0 %709  ;;  %v664_v23 = vpop.xlane.xlu1 %663 }
 0x1a4   : > { %v743_v2 = vsel %vm729_vm0, %v664_v23, 0.0  ;;  %v782_v9 = vsel %vm729_vm0, %v710_v22, 0.0 }
 0x1a5   : > { %v744_v12 = vadd.f32 %v743_v2, %v742_v5  ;;  %v783_v15 = vadd.f32 %v782_v9, %v781_v11  ;;  %v919_v9 = vmul.f32 %v2321_v29, %v2321_v29  ;;  %v920_v11 = vmul.f32 %v2323_v32, %v2323_v32 }
 0x1a7   : > { %v712_v27 = vpop.xlane.xlu0 %711  ;;  %v666_v28 = vpop.xlane.xlu1 %665 }
 0x1a8   : > { %v745_v10 = vsel %vm729_vm0, %v666_v28, 0.0  ;;  %v784_v13 = vsel %vm729_vm0, %v712_v27, 0.0 }
 0x1a9   : > { %v746_v16 = vadd.f32 %v745_v10, %v744_v12  ;;  %v785_v21 = vadd.f32 %v784_v13, %v783_v15  ;;  %v918_v10 = vmul.f32 %v2317_v26, %v2317_v26  ;;  %v921_v12 = vmul.f32 %v2325_v34, %v2325_v34 }
 0x1aa   : > { %v923_v13 = vmul.f32 %v2329_v40, %v2329_v40 }
 0x1ab   : > { %v714_v39 = vpop.xlane.xlu0 %713  ;;  %v668_v41 = vpop.xlane.xlu1 %667 }
 0x1ac   : > { %v747_v14 = vsel %vm729_vm0, %v668_v41, 0.0  ;;  %v786_v19 = vsel %vm729_vm0, %v714_v39, 0.0 }
 0x1ad   : > { %v748_v23 = vadd.f32 %v747_v14, %v746_v16  ;;  %v787_v28 = vadd.f32 %v786_v19, %v785_v21 }
 0x1af   : > { %v716_v55 = vpop.xlane.xlu0 %715  ;;  %v670_v57 = vpop.xlane.xlu1 %669 }
 0x1b0   : > { %v749_v20 = vsel %vm729_vm0, %v670_v57, 0.0  ;;  %v788_v22 = vsel %vm729_vm0, %v716_v55, 0.0 }
 0x1b1   : > { %v750_v30 = vadd.f32 %v749_v20, %v748_v23  ;;  %v789_v36 = vadd.f32 %v788_v22, %v787_v28  ;;  %v2165_v20 = vld [vmem:[%s2752_s6 + $0x20] sm:$0xff]   ;;  %v2166_v28 = vld [vmem:[%s2752_s6 + $0x28] sm:$0xff]  }
 0x1b3   : > { %v718_v7 = vpop.xlane.xlu0 %717  ;;  %v672_v8 = vpop.xlane.xlu1 %671 }
 0x1b4   : > { %v751_v24 = vsel %vm729_vm0, %v672_v8, 0.0  ;;  %v790_v33 = vsel %vm729_vm0, %v718_v7, 0.0 }
 0x1b5   : > { %v752_v37 = vadd.f32 %v751_v24, %v750_v30  ;;  %v791_v42 = vadd.f32 %v790_v33, %v789_v36  ;;  %v2167_v33 = vld [vmem:[%s2752_s6 + $0x30] sm:$0xff]  }
 0x1b7   : > { %v720_v17 = vpop.xlane.xlu0 %719  ;;  %v674_v18 = vpop.xlane.xlu1 %673 }
 0x1b8   : > { %v753_v35 = vsel %vm729_vm0, %v674_v18, 0.0  ;;  %v792_v39 = vsel %vm729_vm0, %v720_v17, 0.0 }
 0x1b9   : > { %v754_v43 = vadd.f32 %v753_v35, %v752_v37  ;;  %v793_v51 = vadd.f32 %v792_v39, %v791_v42  ;;  %v2168_v35 = vld [vmem:[%s2752_s6 + $0x38] sm:$0xff]   ;;  %v2184_v37 = vmov 0.0|0.0  }
 0x1ba   : > { %v1963_v39 = vcombine.low %v2184_v37, %v2184_v37 }
 0x1bb   : > { %v722_v31 = vpop.xlane.xlu0 %721  ;;  %v676_v27 = vpop.xlane.xlu1 %675 }
 0x1bc   : > { %v755_v41 = vsel %vm729_vm0, %v676_v27, 0.0  ;;  %v794_v48 = vsel %vm729_vm0, %v722_v31, 0.0  ;;  %1800 = vst [vmem:[%s2459_s12 + $0x8] sm:$0xf] %v1963_v39  ;;  %1802 = vst [vmem:[%s2459_s12 + $0x10] sm:$0xf] %v1963_v39 }
 0x1bd   : > { %v756_v53 = vadd.f32 %v755_v41, %v754_v43  ;;  %v795_v55 = vadd.f32 %v794_v48, %v793_v51  ;;  %v1964_v41 = vcombine.high %v2184_v37, %v2184_v37  ;;  %1804 = vst [vmem:[%s2459_s12 + $0x18] sm:$0xf] %v1963_v39  ;;  %1806 = vst [vmem:[%s2459_s12 + $0x20] sm:$0xf] %v1963_v39  ;;  %v647_v48 = vld [vmem:[%s2748_s2] sm:$0x1] }
 0x1be   : > { %1808 = vst [vmem:[%s2459_s12 + $0x28] sm:$0xf] %v1963_v39  ;;  %1810 = vst [vmem:[%s2459_s12 + $0x30] sm:$0xf] %v1963_v39 }
 0x1bf   : > { %v724_v45 = vpop.xlane.xlu0 %723  ;;  %v678_v47 = vpop.xlane.xlu1 %677  ;;  %1801 = vst [vmem:[%s2459_s12 + $0xc] sm:$0xf] %v1964_v41  ;;  %1803 = vst [vmem:[%s2459_s12 + $0x14] sm:$0xf] %v1964_v41 }
 0x1c0   : > { %v757_v49 = vsel %vm729_vm0, %v678_v47, 0.0  ;;  %v796_v54 = vsel %vm729_vm0, %v724_v45, 0.0  ;;  %1805 = vst [vmem:[%s2459_s12 + $0x1c] sm:$0xf] %v1964_v41  ;;  %1807 = vst [vmem:[%s2459_s12 + $0x24] sm:$0xf] %v1964_v41  ;;  %v825_v45 = vlaneseq }
 0x1c1   : > { %v758_v57 = vadd.f32 %v757_v49, %v756_v53  ;;  %v797_v1 = vadd.f32 %v796_v54, %v795_v55  ;;  %1809 = vst [vmem:[%s2459_s12 + $0x2c] sm:$0xf] %v1964_v41  ;;  %1811 = vst [vmem:[%s2459_s12 + $0x34] sm:$0xf] %v1964_v41  ;;  %v648_v55 = vld [vmem:[%s2749_s3] sm:$0x1] }
 0x1c2   : > { %1812 = vst [vmem:[%s2459_s12 + $0x38] sm:$0xf] %v1963_v39  ;;  %1813 = vst [vmem:[%s2459_s12 + $0x3c] sm:$0xf] %v1964_v41  ;;  %v826_v47 = vshrl.u32 %v825_v45, 7 }
 0x1c3   : > { %v726_v59 = vpop.xlane.xlu0 %725  ;;  %v680_v60 = vpop.xlane.xlu1 %679 }
 0x1c4   : > { %v798_v61 = vsel %vm729_vm0, %v726_v59, 0.0  ;;  %v759_v63 = vsel %vm729_vm0, %v680_v60, 0.0  ;;  %v2479_v49 = vsub.s32 0, %v826_v47 }
 0x1c5   : > { %v760_v2 = vadd.f32 %v759_v63, %v758_v57  ;;  %v799_v3 = vadd.f32 %v798_v61, %v797_v1 }
 0x1c7   : > { %761 = vadd.xlane.f32.xlu0 %v760_v2  ;;  %v728_v5 = vpop.xlane.xlu1 %727 }
 0x1c8   : > { %v800_v7 = vsel %vm729_vm0, %v728_v5, 0.0 }
 0x1c9   : > { %v801_v8 = vadd.f32 %v800_v7, %v799_v3  ;;  %v2186_v3 = vmov 0.0  }
 0x1cb   : > { %886 = vadd.xlane.f32.xlu0 %v2317_v26  ;;  %802 = vadd.xlane.f32.xlu1 %v801_v8 }
 0x1cf   : > { %890 = vadd.xlane.f32.xlu0 %v2323_v32  ;;  %888 = vadd.xlane.f32.xlu1 %v2321_v29  ;;  %v922_v29 = vmul.f32 %v2327_v38, %v2327_v38  ;;  %v924_v32 = vmul.f32 %v2331_v44, %v2331_v44 }
 0x1d3   : > { %936 = vadd.xlane.f32.xlu0 %v919_v9  ;;  %934 = vadd.xlane.f32.xlu1 %v918_v10 }
 0x1d7   : > { %938 = vadd.xlane.f32.xlu0 %v920_v11  ;;  %892 = vadd.xlane.f32.xlu1 %v2325_v34  ;;  %v925_v34 = vmul.f32 %v2333_v46, %v2333_v46 }
 0x1db   : > { %940 = vadd.xlane.f32.xlu0 %v921_v12  ;;  %894 = vadd.xlane.f32.xlu1 %v2327_v38  ;;  %v926_v38 = vmul.f32 %v2335_v50, %v2335_v50 }
 0x1df   : > { %942 = vadd.xlane.f32.xlu0 %v922_v29  ;;  %896 = vadd.xlane.f32.xlu1 %v2329_v40  ;;  %v927_v40 = vmul.f32 %v2337_v52, %v2337_v52 }
 0x1e3   : > { %944 = vadd.xlane.f32.xlu0 %v923_v13  ;;  %898 = vadd.xlane.f32.xlu1 %v2331_v44  ;;  %v928_v44 = vmul.f32 %v2339_v56, %v2339_v56 }
 0x1e7   : > { %946 = vadd.xlane.f32.xlu0 %v924_v32  ;;  %900 = vadd.xlane.f32.xlu1 %v2333_v46  ;;  %v929_v46 = vmul.f32 %v2341_v58, %v2341_v58 }
 0x1eb   : > { %948 = vadd.xlane.f32.xlu0 %v925_v34  ;;  %902 = vadd.xlane.f32.xlu1 %v2335_v50  ;;  %v930_v50 = vmul.f32 %v2343_v62, %v2343_v62 }
 0x1ef   : > { %950 = vadd.xlane.f32.xlu0 %v926_v38  ;;  %904 = vadd.xlane.f32.xlu1 %v2337_v52  ;;  %v931_v52 = vmul.f32 %v2345_v0, %v2345_v0 }
 0x1f3   : > { %952 = vadd.xlane.f32.xlu0 %v927_v40  ;;  %906 = vadd.xlane.f32.xlu1 %v2339_v56  ;;  %v932_v56 = vmul.f32 %v2347_v4, %v2347_v4 }
 0x1f7   : > { %954 = vadd.xlane.f32.xlu0 %v928_v44  ;;  %908 = vadd.xlane.f32.xlu1 %v2341_v58  ;;  %v933_v58 = vmul.f32 %v2349_v6, %v2349_v6 }
 0x1fb   : > { %956 = vadd.xlane.f32.xlu0 %v929_v46  ;;  %910 = vadd.xlane.f32.xlu1 %v2343_v62  ;;  %v2161_v62 = vld [vmem:[%s2752_s6] sm:$0xff]  }
 0x1fc   : > { %2067 = vmatprep.subr.bf16.mxu1 %v2161_v62 }
 0x1fd   : > { %2068 = vmatpush3.bf16.msra.mxu1 %v2161_v62 }
 0x1ff   : > { %958 = vadd.xlane.f32.xlu0 %v930_v50  ;;  %912 = vadd.xlane.f32.xlu1 %v2345_v0  ;;  %v2162_v0 = vld [vmem:[%s2752_s6 + $0x8] sm:$0xff]  }
 0x200   : > { %2069 = vmatprep.subr.bf16.mxu1 %v2162_v0 }
 0x201   : > { %2070 = vmatpush3.bf16.msra.mxu1 %v2162_v0 }
 0x203   : > { %960 = vadd.xlane.f32.xlu0 %v931_v52  ;;  %914 = vadd.xlane.f32.xlu1 %v2347_v4  ;;  %v2163_v4 = vld [vmem:[%s2752_s6 + $0x10] sm:$0xff]  }
 0x204   : > { %2071 = vmatprep.subr.bf16.mxu1 %v2163_v4 }
 0x205   : > { %2072 = vmatpush3.bf16.msra.mxu1 %v2163_v4 }
 0x207   : > { %962 = vadd.xlane.f32.xlu0 %v932_v56  ;;  %916 = vadd.xlane.f32.xlu1 %v2349_v6  ;;  %v2164_v6 = vld [vmem:[%s2752_s6 + $0x18] sm:$0xff]  }
 0x208   : > { %2073 = vmatprep.subr.bf16.mxu1 %v2164_v6 }
 0x209   : > { %2074 = vmatpush3.bf16.msra.mxu1 %v2164_v6 }
 0x20a   : > { %2075 = vmatprep.subr.bf16.mxu1 %v2165_v20 }
 0x20b   : > { %964 = vadd.xlane.f32.xlu1 %v933_v58 }
 0x20d   : > { %2076 = vmatpush3.bf16.msra.mxu1 %v2165_v20 }
 0x20e   : > { %2077 = vmatprep.subr.bf16.mxu1 %v2166_v28 }
 0x211   : > { %2078 = vmatpush3.bf16.msra.mxu1 %v2166_v28 }
 0x212   : > { %2079 = vmatprep.subr.bf16.mxu1 %v2167_v33 }
 0x215   : > { %2080 = vmatpush3.bf16.msra.mxu1 %v2167_v33 }
 0x216   : > { %2081 = vmatprep.subr.bf16.mxu1 %v2168_v35 }
 0x219   : > { %2082 = vmatpush3.bf16.msra.mxu1 %v2168_v35 }
 0x254   : > { %v762_v14 = vpop.xlane.xlu0 %761 }
 0x255   : > { %v763_v15 = vrot.slane %v762_v14, 4 }
 0x257   : > { %v764_v16 = vadd.f32 %v763_v15, %v762_v14 }
 0x258   : > { %v803_v17 = vpop.xlane.xlu1 %802  ;;  %v2488_v7 = vpop.xlane.xlu0 %886 }
 0x259   : > { %v765_v18 = vrot.slane %v764_v16, 2  ;;  %v804_v19 = vrot.slane %v803_v17, 4  ;;  %v966_v47 = vsel %vm729_vm0, %v2488_v7, 0.0 }
 0x25b   : > { %v805_v21 = vadd.f32 %v804_v19, %v803_v17  ;;  %v766_v23 = vadd.f32 %v765_v18, %v764_v16 }
 0x25c   : > { %v889_v8 = vpop.xlane.xlu1 %888  ;;  %v2490_v9 = vpop.xlane.xlu0 %890 }
 0x25d   : > { %v806_v22 = vrot.slane %v805_v21, 2  ;;  %v767_v24 = vrot.slane %v766_v23, 1 }
 0x25f   : > { %v768_v30 = vadd.f32 %v767_v24, %v766_v23  ;;  %v807_v31 = vadd.f32 %v806_v22, %v805_v21 }
 0x260   : > { %v2494_v10 = vpop.xlane.xlu0 %936 }
 0x261   : > { %2099 = vpush %v768_v30  ;;  %v808_v27 = vrot.slane %v807_v31, 1 }
 0x263   : > { %v809_v36 = vadd.f32 %v808_v27, %v807_v31 }
 0x264   : > { %v2498_v12 = vpop.xlane.xlu0 %938 }
 0x265   : > { %2101 = vpush %v809_v36 }
 0x268   : > { %v2502_v13 = vpop.xlane.xlu0 %940 }
 0x26c   : > { %v2506_v34 = vpop.xlane.xlu0 %942 }
 0x270   : > { %v2517_v50 = vpop.xlane.xlu0 %944 }
 0x274   : > { %v2530_v0 = vpop.xlane.xlu0 %946 }
 0x278   : > { %v2544_v18 = vpop.xlane.xlu0 %948 }
 0x27c   : > { %v2562_v30 = vpop.xlane.xlu0 %950 }
 0x292   : > { %s2100_s14 = spop %2099 }
 0x293   : > { %s770_s16 = smul.f32 0.0078125, %s2100_s14 }
 0x295   : > { %s812_s17 = smul.f32 %s770_s16, %s770_s16  ;;  %v821_v54 = vstv %s770_s16 }
 0x296   : > { %s2102_s18 = spop %2101 }
 0x297   : > { %s811_s19 = smul.f32 0.0078125, %s2102_s18 }
 0x299   : > { %s813_s20 = ssub.f32 %s811_s19, %s812_s17 }
 0x29b   : > { %s814_s22 = smax.f32 %s2185_s21, %s813_s20 }
 0x29c   : > { %s815_s23 = sadd.f32 1e-05, %s814_s22 }
 0x29e   : > { %v816_v42 = vstv %s815_s23 }
 0x29f   : > { %2169 = vrsqrt.f32 %v816_v42 }
 0x2a9   : > { %v2170_v43 = vpop.eup %2169 }
 0x2aa   : > { %2103 = vpush %v2170_v43  ;;  %v967_v43 = vsel %vm729_vm0, %v889_v8, 0.0 }
 0x2db   : > { %s2104_s27 = spop %2103 }
 0x2dc   : > { %v819_v51 = vstv %s2104_s27 }
 0x2dd   : > { %v820_v53 = vmul.f32 %v819_v51, %v647_v48  ;;  %v968_v48 = vadd.f32 %v967_v43, %v966_v47 }
 0x2df   : > { %v822_v57 = vmul.f32 %v821_v54, %v820_v53  ;;  %v828_v59 = vrot.slane %v820_v53, %v2479_v49  ;;  %v1008_v53 = vsel %vm729_vm0, %v2494_v10, 0.0  ;;  %v1014_v10 = vsel %vm729_vm0, %v2506_v34, 0.0 }
 0x2e1   : > { %v823_v60 = vsub.f32 %v648_v55, %v822_v57  ;;  %v830_v61 = vmul.f32 %v828_v59, %v2314_v25  ;;  %v2492_v25 = vpop.xlane.xlu1 %934  ;;  %v969_v59 = vsel %vm729_vm0, %v2490_v9, 0.0 }
 0x2e2   : > { %v1007_v54 = vsel %vm729_vm0, %v2492_v25, 0.0 }
 0x2e3   : > { %v850_v63 = vrot.slane %v823_v60, %v2479_v49  ;;  %v1010_v60 = vsel %vm729_vm0, %v2498_v12, 0.0 }
 0x2e5   : > { %v852_v1 = vadd.f32 %v850_v63, %v830_v61  ;;  %v2496_v11 = vpop.xlane.xlu1 %892  ;;  %v1009_v63 = vadd.f32 %v1008_v53, %v1007_v54 }
 0x2e6   : > { %v971_v61 = vsel %vm729_vm0, %v2496_v11, 0.0 }
 0x2e7   : > { %v868_v2 = vmax.f32 %v852_v1, 0.0  ;;  %v970_v1 = vadd.f32 %v969_v59, %v968_v48  ;;  %v1011_v7 = vadd.f32 %v1010_v60, %v1009_v63 }
 0x2e9   : > { %v1217_v5 = vpack.c.bf16 %v2186_v3, %v868_v2  ;;  %v2500_v29 = vpop.xlane.xlu1 %894  ;;  %v1012_v2 = vsel %vm729_vm0, %v2502_v13, 0.0  ;;  %v972_v8 = vadd.f32 %v971_v61, %v970_v1 }
 0x2ea   : > { %v1013_v12 = vadd.f32 %v1012_v2, %v1011_v7 }
 0x2eb   : > { %2083 = vmatprep.mubr.bf16.mxu1 %v1217_v5  ;;  %v973_v5 = vsel %vm729_vm0, %v2500_v29, 0.0  ;;  %v1016_v29 = vsel %vm729_vm0, %v2517_v50, 0.0 }
 0x2ec   : > { %2084 = vmatmul.mubr.bf16.vlgmr.msra.gmra.mrb[0].mxu1 %v2184_v37 }
 0x2ed   : > { %2087 = vmatprep.mubr.bf16.mxu1 %v2184_v37  ;;  %v2504_v32 = vpop.xlane.xlu1 %896 }
 0x2ee   : > { %v975_v11 = vsel %vm729_vm0, %v2504_v32, 0.0  ;;  %v1018_v32 = vsel %vm729_vm0, %v2530_v0, 0.0 }
 0x2f1   : > { %v2508_v38 = vpop.xlane.xlu1 %898 }
 0x2f4   : > { %2088 = vmatmul.mubr.bf16.gmra.mrb[4].mxu1 %v2184_v37 }
 0x2f5   : > { %2091 = vmatprep.mubr.bf16.mxu1 %v2184_v37  ;;  %v2522_v56 = vpop.xlane.xlu1 %900 }
 0x2f9   : > { %v2538_v15 = vpop.xlane.xlu1 %902 }
 0x2fa   : > { %v981_v50 = vsel %vm729_vm0, %v2538_v15, 0.0 }
 0x2fc   : > { %2092 = vmatmul.mubr.bf16.gmra.mrb[8].mxu1 %v2184_v37 }
 0x2fd   : > { %2095 = vmatprep.mubr.bf16.mxu1 %v2184_v37  ;;  %v2551_v21 = vpop.xlane.xlu1 %904 }
 0x2fe   : > { %v983_v53 = vsel %vm729_vm0, %v2551_v21, 0.0 }
 0x301   : > { %v2564_v31 = vpop.xlane.xlu1 %906 }
 0x302   : > { %v985_v15 = vsel %vm729_vm0, %v2564_v31, 0.0 }
 0x304   : > { %2096 = vmatmul.mubr.bf16.gmra.mrb[12].mxu1 %v2184_v37  ;;  %v953_v37 = vpop.xlane.xlu0 %952 }
 0x305   : > { %v2580_v42 = vpop.xlane.xlu1 %908 }
 0x306   : > { %v987_v21 = vsel %vm729_vm0, %v2580_v42, 0.0 }
 0x308   : > { %v955_v51 = vpop.xlane.xlu0 %954 }
 0x309   : > { %v911_v55 = vpop.xlane.xlu1 %910 }
 0x30a   : > { %v989_v31 = vsel %vm729_vm0, %v911_v55, 0.0 }
 0x30c   : > { %v957_v25 = vpop.xlane.xlu0 %956 }
 0x30d   : > { %v913_v13 = vpop.xlane.xlu1 %912 }
 0x310   : > { %v959_v43 = vpop.xlane.xlu0 %958 }
 0x311   : > { %v915_v48 = vpop.xlane.xlu1 %914 }
 0x314   : > { %v961_v61 = vpop.xlane.xlu0 %960 }
 0x3bf   : > { %v2510_v40 = vpop.f32.mrb[0].mxu1 }
 0x3c0   : > { %1392 = vadd.xlane.f32.xlu0 %v2510_v40  ;;  %v2513_v44 = vpop.f32.mrb[1].mxu1  ;;  %v1422_v58 = vmul.f32 %v2510_v40, %v2510_v40 }
 0x3c1   : > { %v2515_v46 = vpop.f32.mrb[2].mxu1  ;;  %v1420_v4 = vmul.f32 %v2513_v44, %v2513_v44 }
 0x3c2   : > { %v2519_v52 = vpop.f32.mrb[3].mxu1  ;;  %1394 = vadd.xlane.f32.xlu1 %v2515_v46  ;;  %v1423_v16 = vmul.f32 %v2515_v46, %v2515_v46 }
 0x3c3   : > { %v1421_v19 = vmul.f32 %v2519_v52, %v2519_v52 }
 0x3c4   : > { %1388 = vadd.xlane.f32.xlu0 %v2513_v44 }
 0x3c6   : > { %1390 = vadd.xlane.f32.xlu1 %v2519_v52 }
 0x3c7   : > { %v2528_v62 = vpop.f32.mrb[4].mxu1 }
 0x3c8   : > { %1440 = vadd.xlane.f32.xlu0 %v1422_v58  ;;  %v2534_v6 = vpop.f32.mrb[5].mxu1  ;;  %v1426_v24 = vmul.f32 %v2528_v62, %v2528_v62  ;;  %v974_v58 = vadd.f32 %v973_v5, %v972_v8  ;;  %v917_v5 = vpop.xlane.xlu1 %916 }
 0x3c9   : > { %v2536_v14 = vpop.f32.mrb[6].mxu1  ;;  %v1424_v27 = vmul.f32 %v2534_v6, %v2534_v6 }
 0x3ca   : > { %1436 = vadd.xlane.f32.xlu1 %v1420_v4  ;;  %v2542_v17 = vpop.f32.mrb[7].mxu1  ;;  %v1427_v39 = vmul.f32 %v2536_v14, %v2536_v14  ;;  %v977_v4 = vsel %vm729_vm0, %v2508_v38, 0.0  ;;  %v1020_v38 = vsel %vm729_vm0, %v2544_v18, 0.0  ;;  %v1024_v18 = vsel %vm729_vm0, %v953_v37, 0.0 }
 0x3cb   : > { %v1425_v45 = vmul.f32 %v2542_v17, %v2542_v17  ;;  %v1028_v37 = vsel %vm729_vm0, %v957_v25, 0.0  ;;  %v993_v25 = vsel %vm729_vm0, %v915_v48, 0.0 }
 0x3cc   : > { %1442 = vadd.xlane.f32.xlu0 %v1423_v16  ;;  %v1015_v16 = vadd.f32 %v1014_v10, %v1013_v12  ;;  %v991_v10 = vsel %vm729_vm0, %v913_v13, 0.0  ;;  %v963_v12 = vpop.xlane.xlu0 %962  ;;  %v995_v13 = vsel %vm729_vm0, %v917_v5, 0.0 }
 0x3ce   : > { %1400 = vadd.xlane.f32.xlu1 %v2528_v62 }
 0x3cf   : > { %v2549_v20 = vpop.f32.mrb[8].mxu1 }
 0x3d0   : > { %1438 = vadd.xlane.f32.xlu0 %v1421_v19  ;;  %v2553_v23 = vpop.f32.mrb[9].mxu1  ;;  %v1430_v57 = vmul.f32 %v2549_v20, %v2549_v20  ;;  %v976_v19 = vadd.f32 %v975_v11, %v974_v58  ;;  %v1032_v58 = vsel %vm729_vm0, %v961_v61, 0.0 }
 0x3d1   : > { %v2555_v22 = vpop.f32.mrb[10].mxu1  ;;  %v1428_v9 = vmul.f32 %v2553_v23, %v2553_v23 }
 0x3d2   : > { %1396 = vadd.xlane.f32.xlu1 %v2534_v6  ;;  %v2560_v28 = vpop.f32.mrb[11].mxu1  ;;  %v1431_v34 = vmul.f32 %v2555_v22, %v2555_v22 }
 0x3d3   : > { %v1429_v0 = vmul.f32 %v2560_v28, %v2560_v28 }
 0x3d4   : > { %1448 = vadd.xlane.f32.xlu0 %v1426_v24  ;;  %v979_v24 = vsel %vm729_vm0, %v2522_v56, 0.0  ;;  %v1022_v56 = vsel %vm729_vm0, %v2562_v30, 0.0  ;;  %v1026_v30 = vsel %vm729_vm0, %v955_v51, 0.0  ;;  %v1030_v51 = vsel %vm729_vm0, %v959_v43, 0.0 }
 0x3d6   : > { %1402 = vadd.xlane.f32.xlu1 %v2536_v14 }
 0x3d7   : > { %v2569_v33 = vpop.f32.mrb[12].mxu1 }
 0x3d8   : > { %1444 = vadd.xlane.f32.xlu0 %v1424_v27  ;;  %v2571_v35 = vpop.f32.mrb[13].mxu1  ;;  %v1017_v27 = vadd.f32 %v1016_v29, %v1015_v16  ;;  %v1434_v16 = vmul.f32 %v2569_v33, %v2569_v33 }
 0x3d9   : > { %v2573_v36 = vpop.f32.mrb[14].mxu1  ;;  %v1432_v63 = vmul.f32 %v2571_v35, %v2571_v35 }
 0x3da   : > { %1398 = vadd.xlane.f32.xlu1 %v2542_v17  ;;  %v2578_v41 = vpop.f32.mrb[15].mxu1 }
 0x3dc   : > { %1450 = vadd.xlane.f32.xlu0 %v1427_v39  ;;  %v978_v39 = vadd.f32 %v977_v4, %v976_v19  ;;  %v965_v4 = vpop.xlane.xlu1 %964  ;;  %v1034_v19 = vsel %vm729_vm0, %v963_v12, 0.0 }
 0x3de   : > { %1408 = vadd.xlane.f32.xlu1 %v2549_v20  ;;  %v980_v47 = vadd.f32 %v979_v24, %v978_v39  ;;  %v1435_v24 = vmul.f32 %v2573_v36, %v2573_v36 }
 0x3e0   : > { %1446 = vadd.xlane.f32.xlu0 %v1425_v45  ;;  %v1019_v45 = vadd.f32 %v1018_v32, %v1017_v27  ;;  %v1036_v27 = vsel %vm729_vm0, %v965_v4, 0.0 }
 0x3e2   : > { %1404 = vadd.xlane.f32.xlu1 %v2553_v23  ;;  %v1021_v54 = vadd.f32 %v1020_v38, %v1019_v45 }
 0x3e4   : > { %1456 = vadd.xlane.f32.xlu0 %v1430_v57  ;;  %v982_v57 = vadd.f32 %v981_v50, %v980_v47  ;;  %v1023_v59 = vadd.f32 %v1022_v56, %v1021_v54 }
 0x3e6   : > { %1410 = vadd.xlane.f32.xlu1 %v2555_v22  ;;  %v984_v60 = vadd.f32 %v983_v53, %v982_v57  ;;  %v1025_v1 = vadd.f32 %v1024_v18, %v1023_v59 }
 0x3e8   : > { %1452 = vadd.xlane.f32.xlu0 %v1428_v9  ;;  %v986_v2 = vadd.f32 %v985_v15, %v984_v60  ;;  %v1027_v7 = vadd.f32 %v1026_v30, %v1025_v1  ;;  %v1433_v9 = vmul.f32 %v2578_v41, %v2578_v41 }
 0x3ea   : > { %1406 = vadd.xlane.f32.xlu1 %v2560_v28  ;;  %v988_v8 = vadd.f32 %v987_v21, %v986_v2  ;;  %v1029_v42 = vadd.f32 %v1028_v37, %v1027_v7 }
 0x3ec   : > { %1458 = vadd.xlane.f32.xlu0 %v1431_v34  ;;  %v990_v11 = vadd.f32 %v989_v31, %v988_v8  ;;  %v1031_v55 = vadd.f32 %v1030_v51, %v1029_v42 }
 0x3ee   : > { %1416 = vadd.xlane.f32.xlu1 %v2569_v33  ;;  %v992_v29 = vadd.f32 %v991_v10, %v990_v11  ;;  %v1033_v34 = vadd.f32 %v1032_v58, %v1031_v55 }
 0x3f0   : > { %1454 = vadd.xlane.f32.xlu0 %v1429_v0  ;;  %v994_v32 = vadd.f32 %v993_v25, %v992_v29  ;;  %v1035_v39 = vadd.f32 %v1034_v19, %v1033_v34 }
 0x3f2   : > { %1412 = vadd.xlane.f32.xlu1 %v2571_v35  ;;  %v996_v43 = vadd.f32 %v995_v13, %v994_v32  ;;  %v1037_v38 = vadd.f32 %v1036_v27, %v1035_v39 }
 0x3f4   : > { %1460 = vadd.xlane.f32.xlu0 %v1432_v63 }
 0x3f6   : > { %1414 = vadd.xlane.f32.xlu1 %v2578_v41 }
 0x3f8   : > { %1462 = vadd.xlane.f32.xlu0 %v1433_v9 }
 0x3fa   : > { %1418 = vadd.xlane.f32.xlu1 %v2573_v36 }
 0x3fc   : > { %1464 = vadd.xlane.f32.xlu0 %v1434_v16 }
 0x3fe   : > { %1466 = vadd.xlane.f32.xlu1 %v1435_v24 }
 0x400   : > { %997 = vadd.xlane.f32.xlu0 %v996_v43 }
 0x402   : > { %1038 = vadd.xlane.f32.xlu1 %v1037_v38 }
 0x44d   : > { %v1393_v50 = vpop.xlane.xlu0 %1392 }
 0x44e   : > { %v1471_v30 = vsel %vm729_vm0, %v1393_v50, 0.0 }
 0x44f   : > { %v1395_v45 = vpop.xlane.xlu1 %1394 }
 0x450   : > { %v1473_v7 = vsel %vm729_vm0, %v1395_v45, 0.0 }
 0x451   : > { %v1389_v47 = vpop.xlane.xlu0 %1388 }
 0x452   : > { %v1468_v59 = vsel %vm729_vm0, %v1389_v47, 0.0 }
 0x453   : > { %v1391_v48 = vpop.xlane.xlu1 %1390 }
 0x454   : > { %v1469_v18 = vsel %vm729_vm0, %v1391_v48, 0.0 }
 0x455   : > { %v1441_v0 = vpop.xlane.xlu0 %1440  ;;  %v1470_v60 = vadd.f32 %v1469_v18, %v1468_v59 }
 0x456   : > { %v1512_v10 = vsel %vm729_vm0, %v1441_v0, 0.0 }
 0x457   : > { %v1437_v56 = vpop.xlane.xlu1 %1436  ;;  %v1472_v1 = vadd.f32 %v1471_v30, %v1470_v60 }
 0x458   : > { %v1509_v5 = vsel %vm729_vm0, %v1437_v56, 0.0 }
 0x459   : > { %v1443_v53 = vpop.xlane.xlu0 %1442  ;;  %v1474_v9 = vadd.f32 %v1473_v7, %v1472_v1 }
 0x45a   : > { %v1514_v29 = vsel %vm729_vm0, %v1443_v53, 0.0 }
 0x45b   : > { %v1401_v54 = vpop.xlane.xlu1 %1400 }
 0x45c   : > { %v1479_v13 = vsel %vm729_vm0, %v1401_v54, 0.0 }
 0x45d   : > { %v1439_v57 = vpop.xlane.xlu0 %1438 }
 0x45e   : > { %v1510_v21 = vsel %vm729_vm0, %v1439_v57, 0.0 }
 0x45f   : > { %v1397_v15 = vpop.xlane.xlu1 %1396  ;;  %v1511_v37 = vadd.f32 %v1510_v21, %v1509_v5 }
 0x460   : > { %v1475_v8 = vsel %vm729_vm0, %v1397_v15, 0.0 }
 0x461   : > { %v1449_v61 = vpop.xlane.xlu0 %1448  ;;  %v1513_v11 = vadd.f32 %v1512_v10, %v1511_v37  ;;  %v1476_v12 = vadd.f32 %v1475_v8, %v1474_v9 }
 0x462   : > { %v1520_v48 = vsel %vm729_vm0, %v1449_v61, 0.0 }
 0x463   : > { %v1403_v63 = vpop.xlane.xlu1 %1402  ;;  %v1515_v16 = vadd.f32 %v1514_v29, %v1513_v11 }
 0x464   : > { %v1481_v38 = vsel %vm729_vm0, %v1403_v63, 0.0 }
 0x465   : > { %v1445_v2 = vpop.xlane.xlu0 %1444 }
 0x466   : > { %v1516_v4 = vsel %vm729_vm0, %v1445_v2, 0.0 }
 0x467   : > { %v1399_v31 = vpop.xlane.xlu1 %1398  ;;  %v1517_v32 = vadd.f32 %v1516_v4, %v1515_v16 }
 0x468   : > { %v1477_v42 = vsel %vm729_vm0, %v1399_v31, 0.0 }
 0x469   : > { %v1451_v51 = vpop.xlane.xlu0 %1450  ;;  %v1478_v25 = vadd.f32 %v1477_v42, %v1476_v12 }
 0x46a   : > { %v1522_v15 = vsel %vm729_vm0, %v1451_v51, 0.0 }
 0x46b   : > { %v1409_v58 = vpop.xlane.xlu1 %1408  ;;  %v1480_v24 = vadd.f32 %v1479_v13, %v1478_v25 }
 0x46c   : > { %v1487_v63 = vsel %vm729_vm0, %v1409_v58, 0.0 }
 0x46d   : > { %v1447_v55 = vpop.xlane.xlu0 %1446  ;;  %v1482_v45 = vadd.f32 %v1481_v38, %v1480_v24 }
 0x46e   : > { %v1518_v34 = vsel %vm729_vm0, %v1447_v55, 0.0 }
 0x46f   : > { %v1405_v19 = vpop.xlane.xlu1 %1404  ;;  %v1519_v39 = vadd.f32 %v1518_v34, %v1517_v32 }
 0x470   : > { %v1483_v50 = vsel %vm729_vm0, %v1405_v19, 0.0 }
 0x471   : > { %v1457_v27 = vpop.xlane.xlu0 %1456  ;;  %v1521_v0 = vadd.f32 %v1520_v48, %v1519_v39  ;;  %v1484_v56 = vadd.f32 %v1483_v50, %v1482_v45 }
 0x472   : > { %v1528_v31 = vsel %vm729_vm0, %v1457_v27, 0.0 }
 0x473   : > { %v1411_v43 = vpop.xlane.xlu1 %1410  ;;  %v1523_v60 = vadd.f32 %v1522_v15, %v1521_v0 }
 0x474   : > { %v1489_v7 = vsel %vm729_vm0, %v1411_v43, 0.0 }
 0x475   : > { %v1453_v47 = vpop.xlane.xlu0 %1452 }
 0x476   : > { %v1524_v59 = vsel %vm729_vm0, %v1453_v47, 0.0 }
 0x477   : > { %v1407_v53 = vpop.xlane.xlu1 %1406  ;;  %v1525_v21 = vadd.f32 %v1524_v59, %v1523_v60 }
 0x478   : > { %v1485_v54 = vsel %vm729_vm0, %v1407_v53, 0.0 }
 0x479   : > { %v1486_v57 = vadd.f32 %v1485_v54, %v1484_v56  ;;  %v1459_v18 = vpop.xlane.xlu0 %1458 }
 0x47a   : > { %v1530_v42 = vsel %vm729_vm0, %v1459_v18, 0.0 }
 0x47b   : > { %v1417_v30 = vpop.xlane.xlu1 %1416  ;;  %v1488_v1 = vadd.f32 %v1487_v63, %v1486_v57 }
 0x47c   : > { %v1495_v19 = vsel %vm729_vm0, %v1417_v30, 0.0 }
 0x47d   : > { %v1455_v2 = vpop.xlane.xlu0 %1454  ;;  %v1490_v51 = vadd.f32 %v1489_v7, %v1488_v1 }
 0x47e   : > { %v1526_v61 = vsel %vm729_vm0, %v1455_v2, 0.0 }
 0x47f   : > { %v1527_v5 = vadd.f32 %v1526_v61, %v1525_v21  ;;  %v1413_v37 = vpop.xlane.xlu1 %1412 }
 0x480   : > { %v1491_v8 = vsel %vm729_vm0, %v1413_v37, 0.0  ;;  %v884_v37 = vld [vmem:[%s2750_s4] sm:$0x1] }
 0x481   : > { %v1529_v9 = vadd.f32 %v1528_v31, %v1527_v5  ;;  %v1461_v10 = vpop.xlane.xlu0 %1460  ;;  %v1492_v11 = vadd.f32 %v1491_v8, %v1490_v51 }
 0x482   : > { %v1532_v25 = vsel %vm729_vm0, %v1461_v10, 0.0 }
 0x483   : > { %v1531_v12 = vadd.f32 %v1530_v42, %v1529_v9  ;;  %v1415_v58 = vpop.xlane.xlu1 %1414  ;;  %v885_v9 = vld [vmem:[%s2751_s5] sm:$0x1] }
 0x484   : > { %v1493_v55 = vsel %vm729_vm0, %v1415_v58, 0.0 }
 0x485   : > { %v1533_v29 = vadd.f32 %v1532_v25, %v1531_v12  ;;  %v1494_v4 = vadd.f32 %v1493_v55, %v1492_v11  ;;  %v1463_v16 = vpop.xlane.xlu0 %1462 }
 0x486   : > { %v1534_v13 = vsel %vm729_vm0, %v1463_v16, 0.0 }
 0x487   : > { %v1496_v34 = vadd.f32 %v1495_v19, %v1494_v4  ;;  %v1419_v32 = vpop.xlane.xlu1 %1418  ;;  %v1535_v27 = vadd.f32 %v1534_v13, %v1533_v29 }
 0x488   : > { %v1497_v24 = vsel %vm729_vm0, %v1419_v32, 0.0 }
 0x489   : > { %v1498_v39 = vadd.f32 %v1497_v24, %v1496_v34  ;;  %v1465_v43 = vpop.xlane.xlu0 %1464 }
 0x48a   : > { %v1536_v38 = vsel %vm729_vm0, %v1465_v43, 0.0 }
 0x48b   : > { %v1537_v50 = vadd.f32 %v1536_v38, %v1535_v27  ;;  %1499 = vadd.xlane.f32.xlu0 %v1498_v39  ;;  %v1467_v45 = vpop.xlane.xlu1 %1466 }
 0x48c   : > { %v1538_v47 = vsel %vm729_vm0, %v1467_v45, 0.0 }
 0x48d   : > { %v1539_v48 = vadd.f32 %v1538_v47, %v1537_v50  ;;  %v998_v0 = vpop.xlane.xlu0 %997  ;;  %v1386_v47 = vld [vmem:[%s2753_s7] sm:$0x1] }
 0x48e   : > { %v999_v56 = vrot.slane %v998_v0, 4 }
 0x48f   : > { %1540 = vadd.xlane.f32.xlu1 %v1539_v48  ;;  %v1039_v53 = vpop.xlane.xlu1 %1038 }
 0x490   : > { %v1000_v54 = vadd.f32 %v999_v56, %v998_v0  ;;  %v1040_v57 = vrot.slane %v1039_v53, 4 }
 0x492   : > { %v1001_v18 = vrot.slane %v1000_v54, 2  ;;  %v1041_v15 = vadd.f32 %v1040_v57, %v1039_v53  ;;  %v1387_v53 = vld [vmem:[%s2754_s8] sm:$0x1] }
 0x494   : > { %v1042_v59 = vrot.slane %v1041_v15, 2  ;;  %v1002_v60 = vadd.f32 %v1001_v18, %v1000_v54 }
 0x496   : > { %v1003_v30 = vrot.slane %v1002_v60, 1  ;;  %v1043_v63 = vadd.f32 %v1042_v59, %v1041_v15 }
 0x498   : > { %v1004_v21 = vadd.f32 %v1003_v30, %v1002_v60  ;;  %v1044_v1 = vrot.slane %v1043_v63, 1 }
 0x49a   : > { %2105 = vpush %v1004_v21  ;;  %v1045_v2 = vadd.f32 %v1044_v1, %v1043_v63 }
 0x49c   : > { %2107 = vpush %v1045_v2 }
 0x4cb   : > { %s2106_s30 = spop %2105 }
 0x4cc   : > { %s1006_s11 = smul.f32 0.0078125, %s2106_s30 }
 0x4cd   : > { %s2108_s15 = spop %2107 }
 0x4ce   : > { %s1048_s14 = smul.f32 %s1006_s11, %s1006_s11  ;;  %v1057_v8 = vstv %s1006_s11 }
 0x4cf   : > { %s1047_s16 = smul.f32 0.0078125, %s2108_s15 }
 0x4d1   : > { %s1049_s17 = ssub.f32 %s1047_s16, %s1048_s14 }
 0x4d3   : > { %s1050_s18 = smax.f32 %s2185_s21, %s1049_s17 }
 0x4d4   : > { %s1051_s19 = sadd.f32 1e-05, %s1050_s18 }
 0x4d6   : > { %v1052_v61 = vstv %s1051_s19 }
 0x4d7   : > { %2171 = vrsqrt.f32 %v1052_v61 }
 0x4e1   : > { %v2172_v5 = vpop.eup %2171 }
 0x4e2   : > { %2109 = vpush %v2172_v5 }
 0x513   : > { %s2110_s23 = spop %2109 }
 0x514   : > { %v1055_v31 = vstv %s2110_s23  ;;  %s2733_s23 = scalar_lea.vmem %s2755_s9, %s2265_s25 }
 0x515   : > { %v1056_v7 = vmul.f32 %v1055_v31, %v884_v37 }
 0x517   : > { %v1058_v51 = vmul.f32 %v1057_v8, %v1056_v7  ;;  %v1064_v10 = vrot.slane %v1056_v7, %v2479_v49 }
 0x518   : > { %v1500_v42 = vpop.xlane.xlu0 %1499 }
 0x519   : > { %v1059_v11 = vsub.f32 %v885_v9, %v1058_v51  ;;  %v1501_v12 = vrot.slane %v1500_v42, 4  ;;  %v1066_v58 = vmul.f32 %v1064_v10, %v2317_v26 }
 0x51b   : > { %v1086_v25 = vrot.slane %v1059_v11, %v2479_v49  ;;  %v1502_v55 = vadd.f32 %v1501_v12, %v1500_v42 }
 0x51c   : > { %v1541_v29 = vpop.xlane.xlu1 %1540 }
 0x51d   : > { %v1088_v4 = vadd.f32 %v1086_v25, %v1066_v58  ;;  %v1503_v16 = vrot.slane %v1502_v55, 2  ;;  %v1542_v19 = vrot.slane %v1541_v29, 4 }
 0x51f   : > { %v1104_v13 = vmax.f32 %v1088_v4, 0.0  ;;  %v1543_v34 = vadd.f32 %v1542_v19, %v1541_v29  ;;  %v1504_v32 = vadd.f32 %v1503_v16, %v1502_v55 }
 0x521   : > { %v2042_v24 = vpack.c.bf16 %v2186_v3, %v1104_v13  ;;  %v1544_v27 = vrot.slane %v1543_v34, 2  ;;  %v1505_v39 = vrot.slane %v1504_v32, 1 }
 0x523   : > { %2043 = vst [vmem:[%s2459_s12] sm:$0xff] %v2042_v24   ;;  %v1545_v43 = vadd.f32 %v1544_v27, %v1543_v34  ;;  %v1506_v38 = vadd.f32 %v1505_v39, %v1504_v32 }
 0x525   : > { %2111 = vpush %v1506_v38  ;;  %v1546_v50 = vrot.slane %v1545_v43, 1 }
 0x527   : > { %v1547_v26 = vadd.f32 %v1546_v50, %v1545_v43 }
 0x529   : > { %2113 = vpush %v1547_v26 }
 0x556   : > { %s2112_s27 = spop %2111 }
 0x557   : > { %s1508_s28 = smul.f32 0.0078125, %s2112_s27 }
 0x559   : > { %s1550_s29 = smul.f32 %s1508_s28, %s1508_s28  ;;  %v1559_v56 = vstv %s1508_s28 }
 0x55a   : > { %s2114_s30 = spop %2113 }
 0x55b   : > { %s1549_s11 = smul.f32 0.0078125, %s2114_s30 }
 0x55d   : > { %s1551_s15 = ssub.f32 %s1549_s11, %s1550_s29 }
 0x55f   : > { %s1552_s14 = smax.f32 %s2185_s21, %s1551_s15 }
 0x560   : > { %s1553_s16 = sadd.f32 1e-05, %s1552_s14 }
 0x562   : > { %v1554_v45 = vstv %s1553_s16 }
 0x563   : > { %2173 = vrsqrt.f32 %v1554_v45 }
 0x56d   : > { %v2174_v3 = vpop.eup %2173 }
 0x56e   : > { %2115 = vpush %v2174_v3 }
 0x59f   : > { %s2116_s18 = spop %2115 }
 0x5a0   : > { %v1557_v48 = vstv %s2116_s18 }
 0x5a1   : > { %v1558_v0 = vmul.f32 %v1557_v48, %v1386_v47 }
 0x5a3   : > { %v1560_v54 = vmul.f32 %v1559_v56, %v1558_v0  ;;  %v1566_v57 = vrot.slane %v1558_v0, %v2479_v49 }
 0x5a5   : > { %v1561_v18 = vsub.f32 %v1387_v53, %v1560_v54  ;;  %v1568_v15 = vmul.f32 %v1566_v57, %v2513_v44  ;;  %v1569_v59 = vmul.f32 %v1566_v57, %v2519_v52  ;;  %v1570_v30 = vmul.f32 %v2510_v40, %v1566_v57 }
 0x5a6   : > { %v1571_v63 = vmul.f32 %v2515_v46, %v1566_v57  ;;  %v1572_v21 = vmul.f32 %v1566_v57, %v2534_v6  ;;  %v1573_v1 = vmul.f32 %v1566_v57, %v2542_v17  ;;  %v1574_v2 = vmul.f32 %v2528_v62, %v1566_v57 }
 0x5a7   : > { %v1588_v60 = vrot.slane %v1561_v18, %v2479_v49  ;;  %v1575_v61 = vmul.f32 %v2536_v14, %v1566_v57  ;;  %v1576_v5 = vmul.f32 %v1566_v57, %v2553_v23  ;;  %v1577_v46 = vmul.f32 %v1566_v57, %v2560_v28 }
 0x5a8   : > { %v1578_v6 = vmul.f32 %v2549_v20, %v1566_v57  ;;  %v1579_v17 = vmul.f32 %v2555_v22, %v1566_v57  ;;  %v1580_v62 = vmul.f32 %v1566_v57, %v2571_v35  ;;  %v1581_v14 = vmul.f32 %v1566_v57, %v2578_v41 }
 0x5a9   : > { %v1590_v37 = vadd.f32 %v1588_v60, %v1568_v15  ;;  %v1591_v44 = vadd.f32 %v1588_v60, %v1569_v59  ;;  %v1592_v31 = vadd.f32 %v1588_v60, %v1570_v30  ;;  %v1593_v52 = vadd.f32 %v1588_v60, %v1571_v63 }
 0x5aa   : > { %v1594_v7 = vadd.f32 %v1588_v60, %v1572_v21  ;;  %v1595_v49 = vadd.f32 %v1588_v60, %v1573_v1  ;;  %v1596_v8 = vadd.f32 %v1588_v60, %v1574_v2  ;;  %v1597_v40 = vadd.f32 %v1588_v60, %v1575_v61 }
 0x5ab   : > { %v1606_v9 = vmax.f32 %v1590_v37, 0.0  ;;  %v1598_v23 = vadd.f32 %v1588_v60, %v1576_v5  ;;  %v1599_v51 = vadd.f32 %v1588_v60, %v1577_v46  ;;  %v1600_v10 = vadd.f32 %v1588_v60, %v1578_v6 }
 0x5ac   : > { %v1601_v42 = vadd.f32 %v1588_v60, %v1579_v17  ;;  %v1602_v11 = vadd.f32 %v1588_v60, %v1580_v62  ;;  %v1603_v12 = vadd.f32 %v1588_v60, %v1581_v14  ;;  %v1582_v58 = vmul.f32 %v2569_v33, %v1566_v57 }
 0x5ad   : > { %1622 = vxpose.xlu0.b32.start [1/16] %v1606_v9, 128  ;;  %v1583_v25 = vmul.f32 %v2573_v36, %v1566_v57  ;;  %v1607_v28 = vmax.f32 %v1591_v44, 0.0  ;;  %v1608_v22 = vmax.f32 %v1592_v31, 0.0  ;;  %v1609_v35 = vmax.f32 %v1593_v52, 0.0 }
 0x5ae   : > { %v1604_v55 = vadd.f32 %v1588_v60, %v1582_v58  ;;  %v1610_v41 = vmax.f32 %v1594_v7, 0.0  ;;  %v1611_v29 = vmax.f32 %v1595_v49, 0.0  ;;  %v1612_v4 = vmax.f32 %v1596_v8, 0.0 }
 0x5af   : > { %v1605_v20 = vadd.f32 %v1588_v60, %v1583_v25  ;;  %v1613_v16 = vmax.f32 %v1597_v40, 0.0  ;;  %v1614_v19 = vmax.f32 %v1598_v23, 0.0  ;;  %v1615_v33 = vmax.f32 %v1599_v51, 0.0 }
 0x5b0   : > { %v1616_v36 = vmax.f32 %v1600_v10, 0.0  ;;  %v1617_v13 = vmax.f32 %v1601_v42, 0.0  ;;  %v1618_v34 = vmax.f32 %v1602_v11, 0.0  ;;  %v1619_v32 = vmax.f32 %v1603_v12, 0.0 }
 0x5b1   : > { %1623 = vxpose.xlu0.b32.cont [2/16] %v1607_v28, 128  ;;  %v1620_v24 = vmax.f32 %v1604_v55, 0.0  ;;  %v1621_v27 = vmax.f32 %v1605_v20, 0.0 }
 0x5b5   : > { %1624 = vxpose.xlu0.b32.cont [3/16] %v1608_v22, 128 }
 0x5b9   : > { %1625 = vxpose.xlu0.b32.cont [4/16] %v1609_v35, 128 }
 0x5bd   : > { %1626 = vxpose.xlu0.b32.cont [5/16] %v1610_v41, 128 }
 0x5c1   : > { %1627 = vxpose.xlu0.b32.cont [6/16] %v1611_v29, 128 }
 0x5c5   : > { %1628 = vxpose.xlu0.b32.cont [7/16] %v1612_v4, 128 }
 0x5c9   : > { %1629 = vxpose.xlu0.b32.cont [8/16] %v1613_v16, 128 }
 0x5cd   : > { %1630 = vxpose.xlu0.b32.cont [9/16] %v1614_v19, 128 }
 0x5d1   : > { %1631 = vxpose.xlu0.b32.cont [10/16] %v1615_v33, 128 }
 0x5d5   : > { %1632 = vxpose.xlu0.b32.cont [11/16] %v1616_v36, 128 }
 0x5d9   : > { %1633 = vxpose.xlu0.b32.cont [12/16] %v1617_v13, 128 }
 0x5dd   : > { %1634 = vxpose.xlu0.b32.cont [13/16] %v1618_v34, 128 }
 0x5e1   : > { %1635 = vxpose.xlu0.b32.cont [14/16] %v1619_v32, 128 }
 0x5e5   : > { %1636 = vxpose.xlu0.b32.cont [15/16] %v1620_v24, 128 }
 0x5e9   : > { %1637 = vxpose.xlu0.b32.end [16/16] %v1621_v27, 128 }
 0x62d   : > { %v1638_v39 = vpop.trf.xlu0 }
 0x631   : > { %v1639_v43 = vpop.trf.xlu0 }
 0x632   : > { %v2003_v38 = vpack.c.bf16 %v1639_v43, %v1638_v39 }
 0x634   : > { %2004 = vst [vmem:[%s2733_s23] sm:$0xff] %v2003_v38  }
 0x635   : > { %v1640_v50 = vpop.trf.xlu0 }
 0x639   : > { %v1641_v26 = vpop.trf.xlu0 }
 0x63a   : > { %v2008_v45 = vpack.c.bf16 %v1641_v26, %v1640_v50 }
 0x63c   : > { %2044 = vst [vmem:[%s2733_s23 + $0x8] sm:$0xff] %v2008_v45  }
 0x63d   : > { %v1642_v3 = vpop.trf.xlu0 }
 0x641   : > { %v1643_v47 = vpop.trf.xlu0 }
 0x642   : > { %v2013_v48 = vpack.c.bf16 %v1643_v47, %v1642_v3 }
 0x644   : > { %2045 = vst [vmem:[%s2733_s23 + $0x10] sm:$0xff] %v2013_v48  }
 0x645   : > { %v1644_v0 = vpop.trf.xlu0 }
 0x649   : > { %v1645_v56 = vpop.trf.xlu0 }
 0x64a   : > { %v2018_v53 = vpack.c.bf16 %v1645_v56, %v1644_v0 }
 0x64c   : > { %2046 = vst [vmem:[%s2733_s23 + $0x18] sm:$0xff] %v2018_v53  }
 0x64d   : > { %v1646_v54 = vpop.trf.xlu0 }
 0x651   : > { %v1647_v57 = vpop.trf.xlu0 }
 0x652   : > { %v2023_v18 = vpack.c.bf16 %v1647_v57, %v1646_v54 }
 0x654   : > { %2047 = vst [vmem:[%s2733_s23 + $0x20] sm:$0xff] %v2023_v18  }
 0x655   : > { %v1648_v15 = vpop.trf.xlu0 }
 0x659   : > { %v1649_v59 = vpop.trf.xlu0 }
 0x65a   : > { %v2028_v60 = vpack.c.bf16 %v1649_v59, %v1648_v15 }
 0x65c   : > { %2048 = vst [vmem:[%s2733_s23 + $0x28] sm:$0xff] %v2028_v60  }
 0x65d   : > { %v1650_v30 = vpop.trf.xlu0 }
 0x661   : > { %v1651_v63 = vpop.trf.xlu0 }
 0x662   : > { %v2033_v21 = vpack.c.bf16 %v1651_v63, %v1650_v30 }
 0x664   : > { %2049 = vst [vmem:[%s2733_s23 + $0x30] sm:$0xff] %v2033_v21  }
 0x665   : > { %v1652_v1 = vpop.trf.xlu0 }
 0x669   : > { %v1653_v2 = vpop.trf.xlu0 }
 0x66a   : > { %v2038_v61 = vpack.c.bf16 %v1653_v2, %v1652_v1 }
 0x66c   : > { %2050 = vst [vmem:[%s2733_s23 + $0x38] sm:$0xff] %v2038_v61  }
 0x66d PF: > { %s21_s13 = sadd.s32 1, %s2181_s13  }
 0x66e   : > { %p18_p4 = scmp.ge.s32.totalorder %s21_s13, 4  }
 0x670   :  { %20 = sbr.rel (!%p18_p4) target bundleno = 1 (0x1), region = 98 }

// kernel: spatial_ocr_forward.11
= control target key start
LH: loop header
LB: loop body
LE: loop exit
PB: predicated region body
PF: predicated region fallthrough
CT: control target
= control target key end

     0   :  { %s753_s12 = smov 0   ;;  %s755_s13 = smov 0   ;;  %s873_s0 = inlined_call_operand.vmem [shape: bf16[2,256,128], index: 0, kind: input, shape index: {}]   ;;  %s874_s1 = inlined_call_operand.vmem [shape: f32[2,1,128], index: 1, kind: input, shape index: {}]   ;;  %s875_s2 = inlined_call_operand.vmem [shape: f32[2,1,128], index: 2, kind: input, shape index: {}]   ;;  %s876_s3 = inlined_call_operand.vmem [shape: bf16[2,256,128], index: 3, kind: output, shape index: {}]  }
   0x1   :  { %s757_s14 = smov 0   ;;  %s759_s15 = smov 0  }
   0x2   :  { %s761_s16 = smov 0  }
   0x3 LB: > { %s22_s17 = sadd.s32 1, %s723_s14  ;;  %s25_s18 = sadd.s32 1, %s727_s15  ;;  %s731_s16 = sphi %s761_s16, %s13_s16   ;;  %s727_s15 = sphi %s759_s15, %s880_s15   ;;  %s723_s14 = sphi %s757_s14, %s879_s14   ;;  %s719_s13 = sphi %s755_s13, %s878_s13   ;;  %s715_s12 = sphi %s753_s12, %s877_s12  }
   0x4   : > { %p23_p0 = scmp.ge.s32.totalorder %s22_s17, 2  ;;  %p524_p1 = scmp.ge.s32.totalorder %s731_s16, 1 }
   0x5   : > { %p174_p2 = scmp.lt.s32.totalorder %s731_s16, 5 }
   0x6   : > { %s882_s17 = smov (%p23_p0, %s22_s17), 0  ;;  %s884_s18 = smov (!%p23_p0, %s25_s18), %s727_s15 }
   0x7   : > { %p175_p3 = pnand %p524_p1, %p174_p2  ;;  %p27_p4 = scmp.ge.s32.totalorder %s884_s18, 2 }
   0x8   : > { %s525_s19 = sshll.u32 (!%p175_p3), %s715_s12, 4  ;;  %p213_p5 = scmp.lt.s32.totalorder (!%p175_p3), %s719_s13, 1 }
   0x9   : > { %s886_s18 = smov (%p27_p4, %s884_s18), 0  ;;  %178 = sbr.rel (%p175_p3) target bundleno = 44 (0x2c), region = 32 }
   0xa   : > { %p215_p6 = scmp.lt.s32.totalorder (!%p175_p3), %s525_s19, 31 }
  0x10   : > { %s888_s13 = smov (!%p213_p5, %s719_s13), 1  ;;  %s890_s19 = smov (!%p215_p6, %s525_s19), 31 }
  0x11   : > { %s526_s20 = sshll.u32 %s888_s13, 5  ;;  %s224_s23 = scalar_lea.vmem %s874_s1, %s888_s13 }
  0x12   : > { %s786_s24 = sadd.s32 %s526_s20, %s890_s19  ;;  %s227_s4 = scalar_lea.vmem %s875_s2, %s888_s13  ;;  %v799_v0 = vld [vmem:[%s224_s23] ss:$0 sm:$0xff] }
  0x13   : > { %s527_s25 = sshll.u32 %s786_s24, 2  ;;  %v805_v9 = vld [vmem:[%s227_s4] ss:$0 sm:$0xff] }
  0x14   : > { %s794_s28 = scalar_lea.vmem %s873_s0, %s527_s25  ;;  %s830_s7 = scalar_lea.vmem %s876_s3, %s527_s25 }
  0x15   : > { %v568_v1 = vld [vmem:[%s794_s28] sm:$0xff]   ;;  %v639_v2 = vld [vmem:[%s794_s28 + $0x8] sm:$0xff]   ;;  %v640_v3 = vld [vmem:[%s794_s28 + $0x10] sm:$0xff]  }
  0x16   : > { %v569_v4 = vunpack.c.l.bf16 %v568_v1  ;;  %v570_v5 = vunpack.c.h.bf16 %v568_v1  ;;  %v573_v6 = vunpack.c.l.bf16 %v639_v2  ;;  %v574_v7 = vunpack.c.h.bf16 %v639_v2  ;;  %v641_v8 = vld [vmem:[%s794_s28 + $0x18] sm:$0xff]   ;;  %v642_v30 = vld [vmem:[%s794_s28 + $0x20] sm:$0xff]   ;;  %v643_v35 = vld [vmem:[%s794_s28 + $0x28] sm:$0xff]  }
  0x17   : > { %v577_v10 = vunpack.c.l.bf16 %v640_v3  ;;  %v578_v11 = vunpack.c.h.bf16 %v640_v3  ;;  %v581_v12 = vunpack.c.l.bf16 %v641_v8  ;;  %v582_v13 = vunpack.c.h.bf16 %v641_v8  ;;  %v644_v40 = vld [vmem:[%s794_s28 + $0x30] sm:$0xff]   ;;  %v645_v45 = vld [vmem:[%s794_s28 + $0x38] sm:$0xff]  }
  0x18   : > { %v277_v14 = vmul.f32 %v569_v4, %v799_v0  ;;  %v278_v15 = vmul.f32 %v570_v5, %v799_v0  ;;  %v279_v16 = vmul.f32 %v573_v6, %v799_v0  ;;  %v280_v17 = vmul.f32 %v574_v7, %v799_v0 }
  0x19   : > { %v281_v18 = vmul.f32 %v577_v10, %v799_v0  ;;  %v282_v19 = vmul.f32 %v578_v11, %v799_v0  ;;  %v283_v20 = vmul.f32 %v581_v12, %v799_v0  ;;  %v284_v21 = vmul.f32 %v582_v13, %v799_v0 }
  0x1a   : > { %v300_v22 = vadd.f32 %v805_v9, %v277_v14  ;;  %v301_v23 = vadd.f32 %v805_v9, %v278_v15  ;;  %v302_v24 = vadd.f32 %v805_v9, %v279_v16  ;;  %v303_v25 = vadd.f32 %v805_v9, %v280_v17 }
  0x1b   : > { %v304_v26 = vadd.f32 %v805_v9, %v281_v18  ;;  %v305_v27 = vadd.f32 %v805_v9, %v282_v19  ;;  %v306_v28 = vadd.f32 %v805_v9, %v283_v20  ;;  %v307_v29 = vadd.f32 %v805_v9, %v284_v21 }
  0x1c   : > { %v316_v31 = vmax.f32 %v300_v22, 0.0  ;;  %v317_v32 = vmax.f32 %v301_v23, 0.0  ;;  %v318_v33 = vmax.f32 %v302_v24, 0.0  ;;  %v319_v34 = vmax.f32 %v303_v25, 0.0 }
  0x1d   : > { %v320_v36 = vmax.f32 %v304_v26, 0.0  ;;  %v321_v37 = vmax.f32 %v305_v27, 0.0  ;;  %v322_v38 = vmax.f32 %v306_v28, 0.0  ;;  %v323_v39 = vmax.f32 %v307_v29, 0.0 }
  0x1e   : > { %v602_v41 = vpack.c.bf16 %v317_v32, %v316_v31  ;;  %v607_v42 = vpack.c.bf16 %v319_v34, %v318_v33  ;;  %v585_v43 = vunpack.c.l.bf16 %v642_v30  ;;  %v586_v44 = vunpack.c.h.bf16 %v642_v30 }
  0x1f   : > { %v612_v46 = vpack.c.bf16 %v321_v37, %v320_v36  ;;  %v617_v47 = vpack.c.bf16 %v323_v39, %v322_v38  ;;  %v589_v48 = vunpack.c.l.bf16 %v643_v35  ;;  %v590_v49 = vunpack.c.h.bf16 %v643_v35 }
  0x20   : > { %603 = vst [vmem:[%s830_s7] sm:$0xff] %v602_v41   ;;  %646 = vst [vmem:[%s830_s7 + $0x8] sm:$0xff] %v607_v42   ;;  %v285_v50 = vmul.f32 %v585_v43, %v799_v0  ;;  %v286_v51 = vmul.f32 %v586_v44, %v799_v0  ;;  %v593_v52 = vunpack.c.l.bf16 %v644_v40  ;;  %v594_v53 = vunpack.c.h.bf16 %v644_v40 }
  0x21   : > { %647 = vst [vmem:[%s830_s7 + $0x10] sm:$0xff] %v612_v46   ;;  %648 = vst [vmem:[%s830_s7 + $0x18] sm:$0xff] %v617_v47   ;;  %v287_v54 = vmul.f32 %v589_v48, %v799_v0  ;;  %v288_v55 = vmul.f32 %v590_v49, %v799_v0  ;;  %v597_v56 = vunpack.c.l.bf16 %v645_v45  ;;  %v598_v57 = vunpack.c.h.bf16 %v645_v45 }
  0x22   : > { %v308_v58 = vadd.f32 %v805_v9, %v285_v50  ;;  %v309_v59 = vadd.f32 %v805_v9, %v286_v51  ;;  %v289_v60 = vmul.f32 %v593_v52, %v799_v0  ;;  %v290_v61 = vmul.f32 %v594_v53, %v799_v0 }
  0x23   : > { %v310_v62 = vadd.f32 %v805_v9, %v287_v54  ;;  %v311_v63 = vadd.f32 %v805_v9, %v288_v55  ;;  %v291_v1 = vmul.f32 %v597_v56, %v799_v0  ;;  %v292_v2 = vmul.f32 %v598_v57, %v799_v0 }
  0x24   : > { %v324_v3 = vmax.f32 %v308_v58, 0.0  ;;  %v325_v4 = vmax.f32 %v309_v59, 0.0  ;;  %v312_v5 = vadd.f32 %v805_v9, %v289_v60  ;;  %v313_v6 = vadd.f32 %v805_v9, %v290_v61 }
  0x25   : > { %v326_v7 = vmax.f32 %v310_v62, 0.0  ;;  %v327_v8 = vmax.f32 %v311_v63, 0.0  ;;  %v314_v10 = vadd.f32 %v805_v9, %v291_v1  ;;  %v315_v11 = vadd.f32 %v805_v9, %v292_v2 }
  0x26   : > { %v622_v12 = vpack.c.bf16 %v325_v4, %v324_v3  ;;  %v328_v13 = vmax.f32 %v312_v5, 0.0  ;;  %v329_v14 = vmax.f32 %v313_v6, 0.0 }
  0x27   : > { %v627_v15 = vpack.c.bf16 %v327_v8, %v326_v7  ;;  %v330_v0 = vmax.f32 %v314_v10, 0.0  ;;  %v331_v16 = vmax.f32 %v315_v11, 0.0 }
  0x28   : > { %649 = vst [vmem:[%s830_s7 + $0x20] sm:$0xff] %v622_v12   ;;  %v632_v17 = vpack.c.bf16 %v329_v14, %v328_v13 }
  0x29   : > { %650 = vst [vmem:[%s830_s7 + $0x28] sm:$0xff] %v627_v15   ;;  %v637_v18 = vpack.c.bf16 %v331_v16, %v330_v0 }
  0x2a   : > { %651 = vst [vmem:[%s830_s7 + $0x30] sm:$0xff] %v632_v17  }
  0x2b   : > { %652 = vst [vmem:[%s830_s7 + $0x38] sm:$0xff] %v637_v18  }
  0x2c PF: > { %s13_s16 = sadd.s32 1, %s731_s16   ;;  %s877_s12 = smov %s723_s14 }
  0x2d   : > { %p10_p7 = scmp.ge.s32.totalorder %s13_s16, 6   ;;  %s878_s13 = smov %s727_s15 }
  0x2e   : > { %s879_s14 = smov %s882_s17  ;;  %s880_s15 = smov %s886_s18 }
  0x2f   :  { %12 = sbr.rel (!%p10_p7) target bundleno = 3 (0x3), region = 68 }

// kernel: spatial_ocr_forward.10
= control target key start
LH: loop header
LB: loop body
LE: loop exit
PB: predicated region body
PF: predicated region fallthrough
CT: control target
= control target key end

     0   :  { %s1873_s24 = smov 0   ;;  %s1875_s25 = smov 0   ;;  %s2158_s0 = inlined_call_operand.vmem [shape: bf16[2,256,128], index: 0, kind: input, shape index: {}]   ;;  %s2159_s1 = inlined_call_operand.vmem [shape: f32[2,1,128], index: 1, kind: input, shape index: {}]   ;;  %s2160_s2 = inlined_call_operand.vmem [shape: f32[2,1,128], index: 2, kind: input, shape index: {}]   ;;  %s2161_s3 = inlined_call_operand.vmem [shape: bf16[2,256,128], index: 3, kind: input, shape index: {}]   ;;  %s2162_s4 = inlined_call_operand.vmem [shape: bf16[128,128], index: 4, kind: input, shape index: {}]   ;;  %s2163_s5 = inlined_call_operand.vmem [shape: bf16[128,128], index: 5, kind: input, shape index: {}]   ;;  %s2164_s6 = inlined_call_operand.vmem [shape: bf16[2,256,128], index: 6, kind: output, shape index: {0}]   ;;  %s2165_s7 = inlined_call_operand.vmem [shape: f32[2,32,128], index: 7, kind: output, shape index: {1}]  }
   0x1   :  { %s1877_s26 = smov 0   ;;  %s1879_s27 = smov 0  }
   0x2   :  { %s1881_s28 = smov 0  }
   0x3 LB: > { %s27_s29 = sadd.s32 1, %s1822_s26  ;;  %s30_s30 = sadd.s32 1, %s1826_s27  ;;  %s1830_s28 = sphi %s1881_s28, %s18_s28   ;;  %s1826_s27 = sphi %s1879_s27, %s2169_s27   ;;  %s1822_s26 = sphi %s1877_s26, %s2168_s26   ;;  %s1818_s25 = sphi %s1875_s25, %s2167_s25   ;;  %s1814_s24 = sphi %s1873_s24, %s2166_s24  }
   0x4   : > { %p28_p0 = scmp.ge.s32.totalorder %s27_s29, 2  ;;  %p1435_p1 = scmp.ge.s32.totalorder %s1830_s28, 1 }
   0x5   : > { %p296_p2 = scmp.lt.s32.totalorder %s1830_s28, 5 }
   0x6   : > { %s2171_s29 = smov (%p28_p0, %s27_s29), 0  ;;  %s2173_s30 = smov (!%p28_p0, %s30_s30), %s1826_s27 }
   0x7   : > { %p297_p3 = pnand %p1435_p1, %p296_p2  ;;  %p32_p4 = scmp.ge.s32.totalorder %s2173_s30, 2 }
   0x8   : > { %v1768_v0 = vld [vmem:[%s2163_s5] sm:$0xff] (!%p297_p3)   ;;  %s1436_s10 = sshll.u32 (!%p297_p3), %s1814_s24, 4  ;;  %p361_p5 = scmp.lt.s32.totalorder (!%p297_p3), %s1818_s25, 1  ;;  %v1770_v2 = vld [vmem:[%s2163_s5 + $0x8] sm:$0xff] (!%p297_p3)   ;;  %v1772_v4 = vld [vmem:[%s2163_s5 + $0x10] sm:$0xff] (!%p297_p3)   ;;  %vm1170_vm4 = vcmask (!%p297_p3), 7168  }
   0x9   : > { %s2175_s30 = smov (%p32_p4, %s2173_s30), 0  ;;  %300 = sbr.rel (%p297_p3) target bundleno = 672 (0x2a0), region = 44 }
   0xa   : > { %v1769_v1 = vld [vmem:[%s2162_s4] sm:$0xff] (!%p297_p3)   ;;  %1643 = vmatprep.subr.bf16.mxu1 (!%p297_p3), %v1768_v0  ;;  %p363_p6 = scmp.lt.s32.totalorder (!%p297_p3), %s1436_s10, 31  ;;  %v1771_v3 = vld [vmem:[%s2162_s4 + $0x8] sm:$0xff] (!%p297_p3)   ;;  %v1773_v5 = vld [vmem:[%s2162_s4 + $0x10] sm:$0xff] (!%p297_p3)   ;;  %s1445_s14 = sshll.u32 (!%p297_p3), %s1814_s24, 1 }
   0xb   : > { %1675 = vmatprep.subr.bf16.mxu0 (!%p297_p3), %v1769_v1  ;;  %1644 = vmatpush3.bf16.msra.mxu1 (!%p297_p3), %v1768_v0  ;;  %v1774_v6 = vld [vmem:[%s2163_s5 + $0x18] sm:$0xff] (!%p297_p3)   ;;  %v1776_v8 = vld [vmem:[%s2163_s5 + $0x20] sm:$0xff] (!%p297_p3)   ;;  %v1778_v10 = vld [vmem:[%s2163_s5 + $0x28] sm:$0xff] (!%p297_p3)   ;;  %p399_p7 = scmp.lt.s32.totalorder (!%p297_p3), %s1445_s14, 3 }
   0xc   : > { %1676 = vmatpush3.bf16.msra.mxu0 (!%p297_p3), %v1769_v1  ;;  %1645 = vmatprep.subr.bf16.mxu1 (!%p297_p3), %v1770_v2  ;;  %v1775_v7 = vld [vmem:[%s2162_s4 + $0x18] sm:$0xff] (!%p297_p3)   ;;  %v1777_v9 = vld [vmem:[%s2162_s4 + $0x20] sm:$0xff] (!%p297_p3)   ;;  %v1779_v12 = vld [vmem:[%s2162_s4 + $0x28] sm:$0xff] (!%p297_p3)  }
   0xd   : > { %1677 = vmatprep.subr.bf16.mxu0 (!%p297_p3), %v1771_v3  ;;  %v1780_v19 = vld [vmem:[%s2163_s5 + $0x30] sm:$0xff] (!%p297_p3)   ;;  %v1782_v38 = vld [vmem:[%s2163_s5 + $0x38] sm:$0xff] (!%p297_p3)  }
   0xe   : > { %v1781_v25 = vld [vmem:[%s2162_s4 + $0x30] sm:$0xff] (!%p297_p3)   ;;  %v1783_v43 = vld [vmem:[%s2162_s4 + $0x38] sm:$0xff] (!%p297_p3)  }
   0xf   : > { %1646 = vmatpush3.bf16.msra.mxu1 (!%p297_p3), %v1770_v2 }
  0x10   : > { %s2177_s25 = smov (!%p361_p5, %s1818_s25), 1  ;;  %s2179_s10 = smov (!%p363_p6, %s1436_s10), 31  ;;  %1678 = vmatpush3.bf16.msra.mxu0 %v1771_v3  ;;  %1647 = vmatprep.subr.bf16.mxu1 %v1772_v4 }
  0x11   : > { %s1437_s21 = sshll.u32 %s2177_s25, 5  ;;  %1679 = vmatprep.subr.bf16.mxu0 %v1773_v5  ;;  %s375_s15 = scalar_lea.vmem %s2160_s2, %s2177_s25 }
  0x12   : > { %s366_s8 = sadd.s32 %s1437_s21, %s2179_s10  ;;  %v1971_v17 = vld [vmem:[%s375_s15] ss:$0 sm:$0xff]  ;;  %s2181_s14 = smov (!%p399_p7, %s1445_s14), 3 }
  0x13   : > { %1648 = vmatpush3.bf16.msra.mxu1 %v1772_v4  ;;  %s1933_s12 = sshll.u32 %s366_s8, 2  ;;  %s372_s8 = scalar_lea.vmem %s2159_s1, %s2177_s25 }
  0x14   : > { %1680 = vmatpush3.bf16.msra.mxu0 %v1773_v5  ;;  %1649 = vmatprep.subr.bf16.mxu1 %v1774_v6  ;;  %s1945_s18 = scalar_lea.vmem %s2161_s3, %s1933_s12  ;;  %s1951_s21 = scalar_lea.vmem %s2158_s0, %s1933_s12  ;;  %v1969_v14 = vld [vmem:[%s372_s8] ss:$0 sm:$0xff] }
  0x15   : > { %1681 = vmatprep.subr.bf16.mxu0 %v1775_v7  ;;  %v1784_v11 = vld [vmem:[%s1945_s18] sm:$0xff]   ;;  %v1597_v18 = vld [vmem:[%s1951_s21 + $0x8] sm:$0xff]   ;;  %v1598_v24 = vld [vmem:[%s1951_s21 + $0x10] sm:$0xff]   ;;  %s1446_s15 = sshll.u32 %s2177_s25, 2 }
  0x16   : > { %v1526_v13 = vld [vmem:[%s1951_s21] sm:$0xff]   ;;  %1659 = vmatprep.mubr.bf16.mxu1 %v1784_v11  ;;  %v1531_v22 = vunpack.c.l.bf16 %v1597_v18  ;;  %v1532_v23 = vunpack.c.h.bf16 %v1597_v18  ;;  %v1535_v26 = vunpack.c.l.bf16 %v1598_v24  ;;  %v1536_v27 = vunpack.c.h.bf16 %v1598_v24  ;;  %v1599_v28 = vld [vmem:[%s1951_s21 + $0x18] sm:$0xff]   ;;  %v1601_v56 = vld [vmem:[%s1951_s21 + $0x28] sm:$0xff]   ;;  %s402_s16 = sadd.s32 %s1446_s15, %s2181_s14 }
  0x17   : > { %1650 = vmatpush3.bf16.msra.mxu1 %v1774_v6  ;;  %v1527_v15 = vunpack.c.l.bf16 %v1526_v13  ;;  %v1528_v16 = vunpack.c.h.bf16 %v1526_v13  ;;  %v1539_v35 = vunpack.c.l.bf16 %v1599_v28  ;;  %v1540_v36 = vunpack.c.h.bf16 %v1599_v28  ;;  %v1600_v37 = vld [vmem:[%s1951_s21 + $0x20] sm:$0xff]   ;;  %v1602_v57 = vld [vmem:[%s1951_s21 + $0x30] sm:$0xff]   ;;  %v1785_v58 = vld [vmem:[%s1945_s18 + $0x8] sm:$0xff]   ;;  %s1447_s10 = sshll.u32 %s402_s16, 3 }
  0x18   : > { %1682 = vmatpush3.bf16.msra.mxu0 %v1775_v7  ;;  %1651 = vmatprep.subr.bf16.mxu1 %v1776_v8  ;;  %v448_v31 = vmul.f32 %v1531_v22, %v1969_v14  ;;  %v449_v32 = vmul.f32 %v1532_v23, %v1969_v14  ;;  %v450_v33 = vmul.f32 %v1535_v26, %v1969_v14  ;;  %v1543_v49 = vunpack.c.l.bf16 %v1600_v37  ;;  %v1786_v63 = vld [vmem:[%s1945_s18 + $0x10] sm:$0xff]   ;;  %v1787_v18 = vld [vmem:[%s1945_s18 + $0x18] sm:$0xff]   ;;  %s404_s20 = scalar_lea.vmem %s2165_s7, %s1447_s10 }
  0x19   : > { %1683 = vmatprep.subr.bf16.mxu0 %v1777_v9  ;;  %v446_v20 = vmul.f32 %v1527_v15, %v1969_v14  ;;  %v447_v21 = vmul.f32 %v1528_v16, %v1969_v14  ;;  %v451_v34 = vmul.f32 %v1536_v27, %v1969_v14  ;;  %v452_v47 = vmul.f32 %v1539_v35, %v1969_v14  ;;  %v1603_v16 = vld [vmem:[%s1951_s21 + $0x38] sm:$0xff]  }
  0x1a   : > { %v471_v41 = vadd.f32 %v1971_v17, %v448_v31  ;;  %v472_v42 = vadd.f32 %v1971_v17, %v449_v32  ;;  %v473_v44 = vadd.f32 %v1971_v17, %v450_v33  ;;  %v453_v48 = vmul.f32 %v1540_v36, %v1969_v14  ;;  %v1790_v36 = vld [vmem:[%s1945_s18 + $0x30] sm:$0xff]  }
  0x1b   : > { %1652 = vmatpush3.bf16.msra.mxu1 %v1776_v8  ;;  %v469_v29 = vadd.f32 %v1971_v17, %v446_v20  ;;  %v470_v30 = vadd.f32 %v1971_v17, %v447_v21  ;;  %v474_v45 = vadd.f32 %v1971_v17, %v451_v34  ;;  %v1544_v54 = vunpack.c.h.bf16 %v1600_v37  ;;  %v1788_v20 = vld [vmem:[%s1945_s18 + $0x20] sm:$0xff]   ;;  %v1789_v34 = vld [vmem:[%s1945_s18 + $0x28] sm:$0xff]  }
  0x1c   : > { %1684 = vmatpush3.bf16.msra.mxu0 %v1777_v9  ;;  %1653 = vmatprep.subr.bf16.mxu1 %v1778_v10  ;;  %v487_v50 = vmax.f32 %v471_v41, 0.0  ;;  %v488_v51 = vmax.f32 %v472_v42, 0.0  ;;  %v489_v52 = vmax.f32 %v473_v44, 0.0  ;;  %v454_v55 = vmul.f32 %v1543_v49, %v1969_v14  ;;  %v1791_v42 = vld [vmem:[%s1945_s18 + $0x38] sm:$0xff]   ;;  %s2035_s18 = scalar_lea.vmem %s2164_s6, %s1933_s12  ;;  %s1490_s12 = sshll.u32 %s1814_s24, 7 }
  0x1d   : > { %1685 = vmatprep.subr.bf16.mxu0 %v1779_v12  ;;  %v485_v39 = vmax.f32 %v469_v29, 0.0  ;;  %v486_v40 = vmax.f32 %v470_v30, 0.0  ;;  %v490_v53 = vmax.f32 %v474_v45, 0.0  ;;  %v475_v59 = vadd.f32 %v1971_v17, %v452_v47 }
  0x1e   : > { %v476_v60 = vadd.f32 %v1971_v17, %v453_v48  ;;  %v455_v61 = vmul.f32 %v1544_v54, %v1969_v14  ;;  %v502_v62 = vpack.c.bf16 %v488_v51, %v487_v50  ;;  %v1547_v1 = vunpack.c.l.bf16 %v1601_v56 }
  0x1f   : > { %1654 = vmatpush3.bf16.msra.mxu1 %v1778_v10  ;;  %v501_v46 = vpack.c.bf16 %v486_v40, %v485_v39  ;;  %v503_v0 = vpack.c.bf16 %v490_v53, %v489_v52  ;;  %v1548_v2 = vunpack.c.h.bf16 %v1601_v56  ;;  %v477_v3 = vadd.f32 %v1971_v17, %v454_v55 }
  0x20   : > { %1686 = vmatpush3.bf16.msra.mxu0 %v1779_v12  ;;  %1655 = vmatprep.subr.bf16.mxu1 %v1780_v19  ;;  %v478_v4 = vadd.f32 %v1971_v17, %v455_v61  ;;  %v1551_v5 = vunpack.c.l.bf16 %v1602_v57  ;;  %v1552_v6 = vunpack.c.h.bf16 %v1602_v57  ;;  %v491_v7 = vmax.f32 %v475_v59, 0.0 }
  0x21   : > { %1687 = vmatprep.subr.bf16.mxu0 %v1781_v25  ;;  %1691 = vmatprep.mubr.bf16.mxu0 %v501_v46  ;;  %v492_v8 = vmax.f32 %v476_v60, 0.0  ;;  %v456_v9 = vmul.f32 %v1547_v1, %v1969_v14  ;;  %v457_v10 = vmul.f32 %v1548_v2, %v1969_v14  ;;  %v493_v11 = vmax.f32 %v477_v3, 0.0 }
  0x22   : > { %v494_v12 = vmax.f32 %v478_v4, 0.0  ;;  %v458_v13 = vmul.f32 %v1551_v5, %v1969_v14  ;;  %v459_v15 = vmul.f32 %v1552_v6, %v1969_v14  ;;  %v1555_v23 = vunpack.c.l.bf16 %v1603_v16 }
  0x23   : > { %1656 = vmatpush3.bf16.msra.mxu1 %v1780_v19  ;;  %v504_v19 = vpack.c.bf16 %v492_v8, %v491_v7  ;;  %v479_v21 = vadd.f32 %v1971_v17, %v456_v9  ;;  %v480_v22 = vadd.f32 %v1971_v17, %v457_v10  ;;  %v1556_v24 = vunpack.c.h.bf16 %v1603_v16 }
  0x24   : > { %1688 = vmatpush3.bf16.msra.mxu0 %v1781_v25  ;;  %1657 = vmatprep.subr.bf16.mxu1 %v1782_v38  ;;  %v505_v25 = vpack.c.bf16 %v494_v12, %v493_v11  ;;  %v481_v26 = vadd.f32 %v1971_v17, %v458_v13  ;;  %v482_v27 = vadd.f32 %v1971_v17, %v459_v15 }
  0x25   : > { %1689 = vmatprep.subr.bf16.mxu0 %v1783_v43  ;;  %v495_v28 = vmax.f32 %v479_v21, 0.0  ;;  %v496_v29 = vmax.f32 %v480_v22, 0.0  ;;  %v460_v30 = vmul.f32 %v1555_v23, %v1969_v14  ;;  %v461_v31 = vmul.f32 %v1556_v24, %v1969_v14 }
  0x26   : > { %v497_v32 = vmax.f32 %v481_v26, 0.0  ;;  %v498_v33 = vmax.f32 %v482_v27, 0.0 }
  0x27   : > { %1658 = vmatpush3.bf16.msra.mxu1 %v1782_v38  ;;  %v506_v35 = vpack.c.bf16 %v496_v29, %v495_v28  ;;  %v483_v37 = vadd.f32 %v1971_v17, %v460_v30  ;;  %v484_v38 = vadd.f32 %v1971_v17, %v461_v31 }
  0x28   : > { %1690 = vmatpush3.bf16.msra.mxu0 %v1783_v43  ;;  %v507_v39 = vpack.c.bf16 %v498_v33, %v497_v32 }
  0x29   : > { %v499_v40 = vmax.f32 %v483_v37, 0.0  ;;  %v500_v41 = vmax.f32 %v484_v38, 0.0 }
  0x2a   : > { %1660 = vmatmul.mubr.bf16.vlgmr.msra.gmra.mrb[0].mxu1 %v1785_v58 }
  0x2b   : > { %1692 = vmatmul.mubr.bf16.vlgmr.msra.gmra.mrb[0].mxu0 %v502_v62  ;;  %1663 = vmatprep.mubr.bf16.mxu1 %v1786_v63  ;;  %v508_v14 = vpack.c.bf16 %v500_v41, %v499_v40 }
  0x2c   : > { %1695 = vmatprep.mubr.bf16.mxu0 %v503_v0 }
  0x32   : > { %1664 = vmatmul.mubr.bf16.gmra.mrb[4].mxu1 %v1787_v18 }
  0x33   : > { %1696 = vmatmul.mubr.bf16.gmra.mrb[4].mxu0 %v504_v19  ;;  %1667 = vmatprep.mubr.bf16.mxu1 %v1788_v20 }
  0x34   : > { %1699 = vmatprep.mubr.bf16.mxu0 %v505_v25 }
  0x3a   : > { %1668 = vmatmul.mubr.bf16.gmra.mrb[8].mxu1 %v1789_v34 }
  0x3b   : > { %1700 = vmatmul.mubr.bf16.gmra.mrb[8].mxu0 %v506_v35  ;;  %1671 = vmatprep.mubr.bf16.mxu1 %v1790_v36 }
  0x3c   : > { %1703 = vmatprep.mubr.bf16.mxu0 %v507_v39 }
  0x42   : > { %1672 = vmatmul.mubr.bf16.gmra.mrb[12].mxu1 %v1791_v42 }
  0x43   : > { %1704 = vmatmul.mubr.bf16.gmra.mrb[12].mxu0 %v508_v14 }
  0xfd   : > { %v1661_v43 = vpop.f32.mrb[0].mxu1 }
  0xfe   : > { %v1693_v44 = vpop.f32.mrb[0].mxu0  ;;  %v687_v45 = vpop.f32.mrb[1].mxu1 }
  0xff   : > { %v841_v46 = vadd.f32 %v1693_v44, %v1661_v43  ;;  %v832_v47 = vpop.f32.mrb[1].mxu0  ;;  %v1662_v48 = vpop.f32.mrb[2].mxu1 }
 0x100   : > { %v833_v49 = vadd.f32 %v832_v47, %v687_v45  ;;  %v1694_v17 = vpop.f32.mrb[2].mxu0  ;;  %v690_v50 = vpop.f32.mrb[3].mxu1 }
 0x101   : > { %v844_v51 = vadd.f32 %v1694_v17, %v1662_v48  ;;  %1062 = vadd.xlane.f32.xlu0 %v841_v46  ;;  %v835_v52 = vpop.f32.mrb[3].mxu0  ;;  %v1108_v53 = vmul.f32 %v841_v46, %v841_v46 }
 0x102   : > { %v836_v54 = vadd.f32 %v835_v52, %v690_v50  ;;  %v1106_v57 = vmul.f32 %v833_v49, %v833_v49  ;;  %v975_v50 = vlaneseq }
 0x103   : > { %v1565_v55 = vpack.c.bf16 %v844_v51, %v841_v46  ;;  %1126 = vadd.xlane.f32.xlu1 %v1108_v53  ;;  %v1109_v3 = vmul.f32 %v844_v51, %v844_v51 }
 0x104   : > { %v1560_v56 = vpack.c.bf16 %v836_v54, %v833_v49  ;;  %v1107_v9 = vmul.f32 %v836_v54, %v836_v54  ;;  %v2045_v52 = vshrl.u32 %v975_v50, 7 }
 0x105   : > { %1604 = vst [vmem:[%s2035_s18 + $0x8] sm:$0xff] %v1565_v55   ;;  %1058 = vadd.xlane.f32.xlu0 %v833_v49  ;;  %v1665_v58 = vpop.f32.mrb[4].mxu1 }
 0x106   : > { %1561 = vst [vmem:[%s2035_s18] sm:$0xff] %v1560_v56   ;;  %v1697_v59 = vpop.f32.mrb[4].mxu0  ;;  %v703_v60 = vpop.f32.mrb[5].mxu1  ;;  %v2049_v56 = vstv %s1490_s12  ;;  %v986_v50 = vadd.s32 80, %v2045_v52 }
 0x107   : > { %1122 = vadd.xlane.f32.xlu1 %v1106_v57  ;;  %v857_v61 = vadd.f32 %v1697_v59, %v1665_v58  ;;  %v848_v62 = vpop.f32.mrb[5].mxu0  ;;  %v1666_v63 = vpop.f32.mrb[6].mxu1 }
 0x108   : > { %v849_v0 = vadd.f32 %v848_v62, %v703_v60  ;;  %v1698_v1 = vpop.f32.mrb[6].mxu0  ;;  %v706_v2 = vpop.f32.mrb[7].mxu1  ;;  %v978_v60 = vadd.s32 16, %v2045_v52 }
 0x109   : > { %1064 = vadd.xlane.f32.xlu0 %v844_v51  ;;  %v860_v4 = vadd.f32 %v1698_v1, %v1666_v63  ;;  %v851_v5 = vpop.f32.mrb[7].mxu0  ;;  %v1112_v13 = vmul.f32 %v857_v61, %v857_v61  ;;  %v979_v63 = vadd.s32 24, %v2045_v52 }
 0x10a   : > { %v852_v6 = vadd.f32 %v851_v5, %v706_v2  ;;  %v1110_v27 = vmul.f32 %v849_v0, %v849_v0  ;;  %v996_v1 = vadd.s32 %v2049_v56, %v978_v60  ;;  %v980_v2 = vadd.s32 32, %v2045_v52 }
 0x10b   : > { %1128 = vadd.xlane.f32.xlu1 %v1109_v3  ;;  %v1575_v7 = vpack.c.bf16 %v860_v4, %v857_v61  ;;  %v1113_v37 = vmul.f32 %v860_v4, %v860_v4  ;;  %v1832_v3 = vmov 0.0  }
 0x10c   : > { %v1570_v8 = vpack.c.bf16 %v852_v6, %v849_v0  ;;  %v1111_v14 = vmul.f32 %v852_v6, %v852_v6  ;;  %vm1012_vm2 = vcmp.lt.s32.totalorder %v996_v1, 196 }
 0x10d   : > { %1606 = vst [vmem:[%s2035_s18 + $0x18] sm:$0xff] %v1575_v7   ;;  %1060 = vadd.xlane.f32.xlu0 %v836_v54  ;;  %v1669_v10 = vpop.f32.mrb[8].mxu1  ;;  %v977_v54 = vadd.s32 8, %v2045_v52  ;;  %v981_v7 = vadd.s32 40, %v2045_v52 }
 0x10e   : > { %1605 = vst [vmem:[%s2035_s18 + $0x10] sm:$0xff] %v1570_v8   ;;  %v1701_v11 = vpop.f32.mrb[8].mxu0  ;;  %v719_v12 = vpop.f32.mrb[9].mxu1 }
 0x10f   : > { %1124 = vadd.xlane.f32.xlu1 %v1107_v9  ;;  %v873_v15 = vadd.f32 %v1701_v11, %v1669_v10  ;;  %v864_v16 = vpop.f32.mrb[9].mxu0  ;;  %v1670_v18 = vpop.f32.mrb[10].mxu1  ;;  %v995_v58 = vadd.s32 %v2049_v56, %v977_v54  ;;  %v998_v11 = vadd.s32 %v2049_v56, %v980_v2 }
 0x110   : > { %v865_v19 = vadd.f32 %v864_v16, %v719_v12  ;;  %v1702_v20 = vpop.f32.mrb[10].mxu0  ;;  %v722_v21 = vpop.f32.mrb[11].mxu1  ;;  %v999_v16 = vadd.s32 %v2049_v56, %v981_v7 }
 0x111   : > { %1070 = vadd.xlane.f32.xlu0 %v857_v61  ;;  %v876_v22 = vadd.f32 %v1702_v20, %v1670_v18  ;;  %v867_v23 = vpop.f32.mrb[11].mxu0  ;;  %v1116_v43 = vmul.f32 %v873_v15, %v873_v15  ;;  %v994_v61 = vadd.s32 %v2049_v56, %v2045_v52  ;;  %vm1011_vm0 = vcmp.lt.s32.totalorder %v995_v58, 196 }
 0x112   : > { %v868_v24 = vadd.f32 %v867_v23, %v722_v21  ;;  %v1114_v44 = vmul.f32 %v865_v19, %v865_v19  ;;  %v1493_v18 = vsel %vm1012_vm2, 1.0, %v1832_v3  ;;  %vm1014_vm5 = vcmp.lt.s32.totalorder %v998_v11, 196 }
 0x113   : > { %1134 = vadd.xlane.f32.xlu1 %v1112_v13  ;;  %v1585_v25 = vpack.c.bf16 %v876_v22, %v873_v15  ;;  %v1117_v45 = vmul.f32 %v876_v22, %v876_v22  ;;  %vm1010_vm1 = vcmp.lt.s32.totalorder %v994_v61, 196  ;;  %vm1015_vm6 = vcmp.lt.s32.totalorder %v999_v16, 196 }
 0x114   : > { %v1580_v26 = vpack.c.bf16 %v868_v24, %v865_v19  ;;  %v1115_v46 = vmul.f32 %v868_v24, %v868_v24  ;;  %v1491_v8 = vsel %vm1010_vm1, 1.0, %v1832_v3 }
 0x115   : > { %1066 = vadd.xlane.f32.xlu0 %v849_v0  ;;  %1608 = vst [vmem:[%s2035_s18 + $0x28] sm:$0xff] %v1585_v25   ;;  %v1673_v28 = vpop.f32.mrb[12].mxu1  ;;  %v983_v25 = vadd.s32 56, %v2045_v52 }
 0x116   : > { %1607 = vst [vmem:[%s2035_s18 + $0x20] sm:$0xff] %v1580_v26   ;;  %v1705_v29 = vpop.f32.mrb[12].mxu0  ;;  %v735_v30 = vpop.f32.mrb[13].mxu1 }
 0x117   : > { %1130 = vadd.xlane.f32.xlu1 %v1110_v27  ;;  %v889_v31 = vadd.f32 %v1705_v29, %v1673_v28  ;;  %v880_v32 = vpop.f32.mrb[13].mxu0  ;;  %v1674_v33 = vpop.f32.mrb[14].mxu1 }
 0x118   : > { %v881_v34 = vadd.f32 %v880_v32, %v735_v30  ;;  %v1706_v35 = vpop.f32.mrb[14].mxu0  ;;  %v738_v36 = vpop.f32.mrb[15].mxu1 }
 0x119   : > { %1072 = vadd.xlane.f32.xlu0 %v860_v4  ;;  %v892_v38 = vadd.f32 %v1706_v35, %v1674_v33  ;;  %v883_v39 = vpop.f32.mrb[15].mxu0  ;;  %v1120_v47 = vmul.f32 %v889_v31, %v889_v31  ;;  %v1492_v4 = vsel %vm1011_vm0, 1.0, %v1832_v3  ;;  %v984_v33 = vadd.s32 64, %v2045_v52 }
 0x11a   : > { %v884_v40 = vadd.f32 %v883_v39, %v738_v36  ;;  %v1118_v48 = vmul.f32 %v881_v34, %v881_v34  ;;  %v1496_v39 = vsel %vm1015_vm6, 1.0, %v1832_v3 }
 0x11b   : > { %1136 = vadd.xlane.f32.xlu1 %v1113_v37  ;;  %v1595_v41 = vpack.c.bf16 %v892_v38, %v889_v31  ;;  %v1121_v17 = vmul.f32 %v892_v38, %v892_v38  ;;  %v1001_v37 = vadd.s32 %v2049_v56, %v983_v25 }
 0x11c   : > { %v1590_v42 = vpack.c.bf16 %v884_v40, %v881_v34  ;;  %v1119_v49 = vmul.f32 %v884_v40, %v884_v40 }
 0x11d   : > { %1068 = vadd.xlane.f32.xlu0 %v852_v6  ;;  %1610 = vst [vmem:[%s2035_s18 + $0x38] sm:$0xff] %v1595_v41   ;;  %v997_v6 = vadd.s32 %v2049_v56, %v979_v63  ;;  %vm1017_vm8 = vcmp.lt.s32.totalorder %v1001_v37, 196 }
 0x11e   : > { %1609 = vst [vmem:[%s2035_s18 + $0x30] sm:$0xff] %v1590_v42   ;;  %v1498_v1 = vsel %vm1017_vm8, 1.0, %v1832_v3 }
 0x11f   : > { %1132 = vadd.xlane.f32.xlu1 %v1111_v14  ;;  %vm1013_vm3 = vcmp.lt.s32.totalorder %v997_v6, 196  ;;  %v1004_v6 = vadd.s32 %v2049_v56, %v986_v50 }
 0x120   : > { %v1494_v23 = vsel %vm1013_vm3, 1.0, %v1832_v3 }
 0x121   : > { %1078 = vadd.xlane.f32.xlu0 %v873_v15  ;;  %vm1020_vm11 = vcmp.lt.s32.totalorder %v1004_v6, 196 }
 0x123   : > { %1142 = vadd.xlane.f32.xlu1 %v1116_v43 }
 0x125   : > { %1074 = vadd.xlane.f32.xlu0 %v865_v19  ;;  %v982_v19 = vadd.s32 48, %v2045_v52 }
 0x127   : > { %1138 = vadd.xlane.f32.xlu1 %v1114_v44  ;;  %v1000_v30 = vadd.s32 %v2049_v56, %v982_v19  ;;  %v1002_v44 = vadd.s32 %v2049_v56, %v984_v33 }
 0x129   : > { %1080 = vadd.xlane.f32.xlu0 %v876_v22  ;;  %vm1016_vm7 = vcmp.lt.s32.totalorder %v1000_v30, 196  ;;  %vm1018_vm9 = vcmp.lt.s32.totalorder %v1002_v44, 196 }
 0x12a   : > { %v1499_v11 = vsel %vm1018_vm9, 1.0, %v1832_v3 }
 0x12b   : > { %1144 = vadd.xlane.f32.xlu1 %v1117_v45 }
 0x12d   : > { %1076 = vadd.xlane.f32.xlu0 %v868_v24 }
 0x12f   : > { %1140 = vadd.xlane.f32.xlu1 %v1115_v46 }
 0x131   : > { %1086 = vadd.xlane.f32.xlu0 %v889_v31  ;;  %v1495_v31 = vsel %vm1014_vm5, 1.0, %v1832_v3 }
 0x133   : > { %1150 = vadd.xlane.f32.xlu1 %v1120_v47 }
 0x135   : > { %1082 = vadd.xlane.f32.xlu0 %v881_v34 }
 0x137   : > { %1146 = vadd.xlane.f32.xlu1 %v1118_v48 }
 0x139   : > { %1084 = vadd.xlane.f32.xlu0 %v884_v40 }
 0x13b   : > { %1148 = vadd.xlane.f32.xlu1 %v1119_v49 }
 0x13d   : > { %1088 = vadd.xlane.f32.xlu0 %v892_v38 }
 0x13f   : > { %1152 = vadd.xlane.f32.xlu1 %v1121_v17 }
 0x18e   : > { %v1063_v51 = vpop.xlane.xlu0 %1062 }
 0x18f   : > { %v1092_v26 = vmul.f32 %v1493_v18, %v1063_v51 }
 0x190   : > { %v1127_v53 = vpop.xlane.xlu1 %1126 }
 0x191   : > { %v1156_v34 = vmul.f32 %v1493_v18, %v1127_v53  ;;  %v1174_v40 = vsel %vm1170_vm4, %v1092_v26, 0.0 }
 0x192   : > { %v1059_v55 = vpop.xlane.xlu0 %1058 }
 0x193   : > { %v1090_v13 = vmul.f32 %v1491_v8, %v1059_v55  ;;  %v1214_v45 = vsel %vm1170_vm4, %v1156_v34, 0.0  ;;  %v985_v55 = vadd.s32 72, %v2045_v52 }
 0x194   : > { %v1123_v57 = vpop.xlane.xlu1 %1122 }
 0x195   : > { %v1154_v21 = vmul.f32 %v1491_v8, %v1123_v57  ;;  %v1171_v27 = vsel %vm1170_vm4, %v1090_v13, 0.0  ;;  %v1497_v57 = vsel %vm1016_vm7, 1.0, %v1832_v3  ;;  %v1003_v7 = vadd.s32 %v2049_v56, %v985_v55 }
 0x196   : > { %v1065_v59 = vpop.xlane.xlu0 %1064 }
 0x197   : > { %v1211_v35 = vsel %vm1170_vm4, %v1154_v21, 0.0  ;;  %v1093_v41 = vmul.f32 %v1494_v23, %v1065_v59  ;;  %vm1019_vm10 = vcmp.lt.s32.totalorder %v1003_v7, 196 }
 0x198   : > { %v1129_v62 = vpop.xlane.xlu1 %1128 }
 0x199   : > { %v1157_v46 = vmul.f32 %v1494_v23, %v1129_v62  ;;  %v1176_v51 = vsel %vm1170_vm4, %v1093_v41, 0.0 }
 0x19a   : > { %v1061_v0 = vpop.xlane.xlu0 %1060 }
 0x19b   : > { %v1091_v10 = vmul.f32 %v1492_v4, %v1061_v0  ;;  %v1216_v60 = vsel %vm1170_vm4, %v1157_v46, 0.0 }
 0x19c   : > { %v1125_v5 = vpop.xlane.xlu1 %1124 }
 0x19d   : > { %v1155_v15 = vmul.f32 %v1492_v4, %v1125_v5  ;;  %v1172_v22 = vsel %vm1170_vm4, %v1091_v10, 0.0 }
 0x19e   : > { %v2062_v9 = vpop.xlane.xlu0 %1070  ;;  %v1173_v29 = vadd.f32 %v1172_v22, %v1171_v27 }
 0x19f   : > { %v1212_v28 = vsel %vm1170_vm4, %v1155_v15, 0.0  ;;  %v1096_v4 = vmul.f32 %v1497_v57, %v2062_v9  ;;  %v987_v15 = vadd.s32 88, %v2045_v52 }
 0x1a0   : > { %v2065_v12 = vpop.xlane.xlu1 %1134  ;;  %v1213_v36 = vadd.f32 %v1212_v28, %v1211_v35  ;;  %v1175_v14 = vadd.f32 %v1174_v40, %v1173_v29 }
 0x1a1   : > { %v1160_v16 = vmul.f32 %v1497_v57, %v2065_v12  ;;  %v1182_v9 = vsel %vm1170_vm4, %v1096_v4, 0.0  ;;  %v990_v12 = vadd.s32 112, %v2045_v52 }
 0x1a2   : > { %v1067_v20 = vpop.xlane.xlu0 %1066  ;;  %v1215_v49 = vadd.f32 %v1214_v45, %v1213_v36  ;;  %v1177_v58 = vadd.f32 %v1176_v51, %v1175_v14  ;;  %v1501_v36 = vsel %vm1020_vm11, 1.0, %v1832_v3 }
 0x1a3   : > { %v1094_v42 = vmul.f32 %v1495_v31, %v1067_v20  ;;  %v988_v20 = vadd.s32 96, %v2045_v52  ;;  %v1222_v26 = vsel %vm1170_vm4, %v1160_v16, 0.0 }
 0x1a4   : > { %v1131_v24 = vpop.xlane.xlu1 %1130  ;;  %v1217_v0 = vadd.f32 %v1216_v60, %v1215_v49  ;;  %v991_v49 = vadd.s32 120, %v2045_v52 }
 0x1a5   : > { %v1158_v47 = vmul.f32 %v1495_v31, %v1131_v24  ;;  %v1178_v53 = vsel %vm1170_vm4, %v1094_v42, 0.0  ;;  %v1005_v24 = vadd.s32 %v2049_v56, %v987_v15  ;;  %v1500_v31 = vsel %vm1019_vm10, 1.0, %v1832_v3 }
 0x1a6   : > { %v1073_v32 = vpop.xlane.xlu0 %1072  ;;  %v1179_v63 = vadd.f32 %v1178_v53, %v1177_v58  ;;  %v1006_v33 = vadd.s32 %v2049_v56, %v988_v20  ;;  %v1008_v42 = vadd.s32 %v2049_v56, %v990_v12 }
 0x1a7   : > { %v1218_v61 = vsel %vm1170_vm4, %v1158_v47, 0.0  ;;  %v1097_v21 = vmul.f32 %v1498_v1, %v1073_v32  ;;  %v989_v32 = vadd.s32 104, %v2045_v52  ;;  %vm1021_vm12 = vcmp.lt.s32.totalorder %v1005_v24, 196 }
 0x1a8   : > { %v1137_v38 = vpop.xlane.xlu1 %1136  ;;  %v1219_v8 = vadd.f32 %v1218_v61, %v1217_v0  ;;  %vm1022_vm13 = vcmp.lt.s32.totalorder %v1006_v33, 196  ;;  %v1502_v50 = vsel %vm1021_vm12, 1.0, %v1832_v3  ;;  %vm1024_vm14 = vcmp.lt.s32.totalorder %v1008_v42, 196 }
 0x1a9   : > { %v1161_v27 = vmul.f32 %v1498_v1, %v1137_v38  ;;  %v1184_v34 = vsel %vm1170_vm4, %v1097_v21, 0.0  ;;  %v1007_v45 = vadd.s32 %v2049_v56, %v989_v32  ;;  %v1503_v60 = vsel %vm1022_vm13, 1.0, %v1832_v3 }
 0x1aa   : > { %v1069_v43 = vpop.xlane.xlu0 %1068  ;;  %v1009_v52 = vadd.s32 %v2049_v56, %v991_v49 }
 0x1ab   : > { %v1095_v48 = vmul.f32 %v1496_v39, %v1069_v43  ;;  %vm1023_vm15 = vcmp.lt.s32.totalorder %v1007_v45, 196 }
 0x1ac   : > { %v1133_v17 = vpop.xlane.xlu1 %1132  ;;  %v1504_v7 = vsel %vm1023_vm15, 1.0, %v1832_v3  ;;  %vm1025_vm0 = vcmp.lt.s32.totalorder %v1009_v52, 196 }
 0x1ad   : > { %v1159_v54 = vmul.f32 %v1496_v39, %v1133_v17  ;;  %v1180_v62 = vsel %vm1170_vm4, %v1095_v48, 0.0  ;;  %v1224_v39 = vsel %vm1170_vm4, %v1161_v27, 0.0 }
 0x1ae   : > { %v1079_v59 = vpop.xlane.xlu0 %1078  ;;  %v1181_v10 = vadd.f32 %v1180_v62, %v1179_v63 }
 0x1af   : > { %v1220_v5 = vsel %vm1170_vm4, %v1159_v54, 0.0  ;;  %v1100_v46 = vmul.f32 %v1501_v36, %v1079_v59 }
 0x1b0   : > { %v1143_v2 = vpop.xlane.xlu1 %1142  ;;  %v1221_v18 = vadd.f32 %v1220_v5, %v1219_v8  ;;  %v1183_v23 = vadd.f32 %v1182_v9, %v1181_v10  ;;  %v1505_v5 = vsel %vm1024_vm14, 1.0, %v1832_v3 }
 0x1b1   : > { %v1164_v54 = vmul.f32 %v1501_v36, %v1143_v2  ;;  %v1190_v59 = vsel %vm1170_vm4, %v1100_v46, 0.0 }
 0x1b2   : > { %v1075_v13 = vpop.xlane.xlu0 %1074  ;;  %v1223_v29 = vadd.f32 %v1222_v26, %v1221_v18  ;;  %v1185_v37 = vadd.f32 %v1184_v34, %v1183_v23 }
 0x1b3   : > { %v1098_v22 = vmul.f32 %v1499_v11, %v1075_v13  ;;  %v1230_v0 = vsel %vm1170_vm4, %v1164_v54, 0.0 }
 0x1b4   : > { %v1139_v19 = vpop.xlane.xlu1 %1138  ;;  %v1225_v43 = vadd.f32 %v1224_v39, %v1223_v29 }
 0x1b5   : > { %v1162_v28 = vmul.f32 %v1499_v11, %v1139_v19  ;;  %v1186_v35 = vsel %vm1170_vm4, %v1098_v22, 0.0  ;;  %v1506_v22 = vsel %vm1025_vm0, 1.0, %v1832_v3 }
 0x1b6   : > { %v1081_v25 = vpop.xlane.xlu0 %1080  ;;  %v1187_v14 = vadd.f32 %v1186_v35, %v1185_v37 }
 0x1b7   : > { %v1226_v40 = vsel %vm1170_vm4, %v1162_v28, 0.0  ;;  %v1101_v61 = vmul.f32 %v1502_v50, %v1081_v25 }
 0x1b8   : > { %v1145_v30 = vpop.xlane.xlu1 %1144  ;;  %v1227_v17 = vadd.f32 %v1226_v40, %v1225_v43 }
 0x1b9   : > { %v1165_v1 = vmul.f32 %v1502_v50, %v1145_v30  ;;  %v1192_v8 = vsel %vm1170_vm4, %v1101_v61, 0.0 }
 0x1ba   : > { %v1077_v38 = vpop.xlane.xlu0 %1076 }
 0x1bb   : > { %v1099_v41 = vmul.f32 %v1500_v31, %v1077_v38  ;;  %v1232_v15 = vsel %vm1170_vm4, %v1165_v1, 0.0 }
 0x1bc   : > { %v1141_v44 = vpop.xlane.xlu1 %1140 }
 0x1bd   : > { %v1188_v47 = vsel %vm1170_vm4, %v1099_v41, 0.0  ;;  %v1163_v48 = vmul.f32 %v1500_v31, %v1141_v44 }
 0x1be   : > { %v1189_v51 = vadd.f32 %v1188_v47, %v1187_v14  ;;  %v1087_v53 = vpop.xlane.xlu0 %1086 }
 0x1bf   : > { %v1228_v55 = vsel %vm1170_vm4, %v1163_v48, 0.0  ;;  %v1104_v16 = vmul.f32 %v1505_v5, %v1087_v53 }
 0x1c0   : > { %v1229_v57 = vadd.f32 %v1228_v55, %v1227_v17  ;;  %v1151_v58 = vpop.xlane.xlu1 %1150  ;;  %v1191_v62 = vadd.f32 %v1190_v59, %v1189_v51 }
 0x1c1   : > { %v1168_v23 = vmul.f32 %v1505_v5, %v1151_v58  ;;  %v1198_v12 = vsel %vm1170_vm4, %v1104_v16, 0.0 }
 0x1c2   : > { %v1083_v63 = vpop.xlane.xlu0 %1082  ;;  %v1231_v2 = vadd.f32 %v1230_v0, %v1229_v57  ;;  %v1193_v13 = vadd.f32 %v1192_v8, %v1191_v62 }
 0x1c3   : > { %v1102_v4 = vmul.f32 %v1503_v60, %v1083_v63  ;;  %v1238_v34 = vsel %vm1170_vm4, %v1168_v23, 0.0 }
 0x1c4   : > { %v1147_v6 = vpop.xlane.xlu1 %1146  ;;  %v1233_v9 = vadd.f32 %v1232_v15, %v1231_v2 }
 0x1c5   : > { %v1194_v10 = vsel %vm1170_vm4, %v1102_v4, 0.0  ;;  %v1166_v11 = vmul.f32 %v1503_v60, %v1147_v6 }
 0x1c6   : > { %v1085_v56 = vpop.xlane.xlu0 %1084  ;;  %v1195_v20 = vadd.f32 %v1194_v10, %v1193_v13 }
 0x1c7   : > { %v1234_v18 = vsel %vm1170_vm4, %v1166_v11, 0.0  ;;  %v1103_v19 = vmul.f32 %v1504_v7, %v1085_v56 }
 0x1c8   : > { %v1149_v21 = vpop.xlane.xlu1 %1148  ;;  %v1235_v26 = vadd.f32 %v1234_v18, %v1233_v9 }
 0x1c9   : > { %v1196_v24 = vsel %vm1170_vm4, %v1103_v19, 0.0  ;;  %v1167_v25 = vmul.f32 %v1504_v7, %v1149_v21 }
 0x1ca   : > { %v1197_v27 = vadd.f32 %v1196_v24, %v1195_v20  ;;  %v1089_v28 = vpop.xlane.xlu0 %1088 }
 0x1cb   : > { %v1236_v29 = vsel %vm1170_vm4, %v1167_v25, 0.0  ;;  %v1105_v30 = vmul.f32 %v1506_v22, %v1089_v28 }
 0x1cc   : > { %v1237_v31 = vadd.f32 %v1236_v29, %v1235_v26  ;;  %v1153_v33 = vpop.xlane.xlu1 %1152  ;;  %v1199_v32 = vadd.f32 %v1198_v12, %v1197_v27 }
 0x1cd   : > { %v1169_v35 = vmul.f32 %v1506_v22, %v1153_v33  ;;  %v1200_v3 = vsel %vm1170_vm4, %v1105_v30, 0.0 }
 0x1ce   : > { %v1201_v36 = vadd.f32 %v1200_v3, %v1199_v32  ;;  %v1239_v37 = vadd.f32 %v1238_v34, %v1237_v31 }
 0x1cf   : > { %v1240_v38 = vsel %vm1170_vm4, %v1169_v35, 0.0 }
 0x1d0   : > { %1202 = vadd.xlane.f32.xlu0 %v1201_v36  ;;  %v1241_v39 = vadd.f32 %v1240_v38, %v1239_v37 }
 0x1d2   : > { %1242 = vadd.xlane.f32.xlu1 %v1241_v39 }
 0x25d   : > { %v1203_v40 = vpop.xlane.xlu0 %1202 }
 0x25e   : > { %v1204_v41 = vrot.slane %v1203_v40, 4 }
 0x25f   : > { %v1243_v42 = vpop.xlane.xlu1 %1242 }
 0x260   : > { %v1205_v14 = vadd.f32 %v1204_v41, %v1203_v40  ;;  %v1244_v43 = vrot.slane %v1243_v42, 4 }
 0x262   : > { %v1206_v44 = vrot.slane %v1205_v14, 2  ;;  %v1245_v45 = vadd.f32 %v1244_v43, %v1243_v42 }
 0x264   : > { %v1246_v46 = vrot.slane %v1245_v45, 2  ;;  %v1207_v47 = vadd.f32 %v1206_v44, %v1205_v14 }
 0x266   : > { %v1247_v48 = vadd.f32 %v1246_v46, %v1245_v45  ;;  %v1208_v49 = vrot.slane %v1207_v47, 1 }
 0x268   : > { %v1209_v17 = vadd.f32 %v1208_v49, %v1207_v47  ;;  %v1248_v50 = vrot.slane %v1247_v48, 1 }
 0x26a   : > { %1723 = vpush %v1209_v17  ;;  %v1249_v51 = vadd.f32 %v1248_v50, %v1247_v48 }
 0x26c   : > { %1725 = vpush %v1249_v51 }
 0x29b   : > { %s1724_s22 = spop %1723 }
 0x29c   : > { %v1251_v53 = vstv %s1724_s22 }
 0x29d   : > { %1252 = vst [vmem:[%s404_s20] sm:$0xff] %v1251_v53  ;;  %s1726_s23 = spop %1725 }
 0x29e   : > { %v1253_v54 = vstv %s1726_s23 }
 0x29f   : > { %1254 = vst [vmem:[%s404_s20 + $0x8] sm:$0xff] %v1253_v54 }
 0x2a0 PF: > { %s18_s28 = sadd.s32 1, %s1830_s28   ;;  %s2166_s24 = smov %s1822_s26 }
 0x2a1   : > { %p15_p8 = scmp.ge.s32.totalorder %s18_s28, 6   ;;  %s2167_s25 = smov %s1826_s27 }
 0x2a2   : > { %s2168_s26 = smov %s2171_s29  ;;  %s2169_s27 = smov %s2175_s30 }
 0x2a3   :  { %17 = sbr.rel (!%p15_p8) target bundleno = 3 (0x3), region = 95 }

</bundles_post_ra>
